<compile_context>
chip_gen: v5e
topology: v5e:2x2
jax: 0.10.0
libtpu: 0.0.40
codegen_flags: <defaults>
</compile_context>

<pallas_src>
import jax
import jax.numpy as jnp
from jax.experimental import pallas as pl
from jax.experimental.pallas import tpu as pltpu


def _band_matrices(w, width, pw):
    """w: (KH, KW, Ci, Co) torch cross-correlation weights.

    Returns (KH, width*Ci, width*Co) block-banded matrices M such that, for a
    row of pixels laid out x-major-then-channel,
        out_row[y] = sum_ky in_row[y + ky - PH] @ M[ky]
    reproduces the "same"-padded convolution along the width direction
    (out-of-range kx taps are zeroed inside M, so the data needs no W padding).
    """
    KH, KW, Ci, Co = w.shape
    xi = jnp.arange(width)
    xo = jnp.arange(width)
    kx = xi[:, None] - xo[None, :] + pw                       # (W, W)
    valid = ((kx >= 0) & (kx < KW)).astype(w.dtype)
    kx = jnp.clip(kx, 0, KW - 1)
    blocks = w[:, kx] * valid[None, :, :, None, None]         # (KH, W, W, Ci, Co)
    return blocks.transpose(0, 1, 3, 2, 4).reshape(KH, width * Ci, width * Co)


def convgru_layer(x_seq, wz, wr, wc, bz, br, bc, width):
    """One ConvGRU layer over the full sequence, one fused pallas_call.

    x_seq    : (B, T, H, W*Cin) f32   lane order = x-major-then-channel
    wz/wr/wc : (KH, KW, Cin+Ch, Ch) f32 HWIO (torch cross-correlation) weights
    bz/br/bc : (Ch,) f32
    returns  : (B, T, H, W*Ch) f32    hidden state after every time step
    """
    B, T, H, WCin = x_seq.shape
    KH, KW, Ctot, Ch = wz.shape
    W = width
    Cin = WCin // W
    assert Ctot == Cin + Ch and WCin == W * Cin
    PH, PW = KH // 2, KW // 2
    Hp = H + 2 * PH
    WC = W * Ch
    TH = T * H

    # ---- wrapper-side weight packing into lane-dense bf16 matmul operands ----
    wz_x, wz_h = wz[:, :, :Cin, :], wz[:, :, Cin:, :]
    wr_x, wr_h = wr[:, :, :Cin, :], wr[:, :, Cin:, :]
    wc_x, wc_h = wc[:, :, :Cin, :], wc[:, :, Cin:, :]

    # x-driven weights, all three gates fused along output columns: z | r | c
    wx_all = jnp.concatenate(
        [_band_matrices(wz_x, W, PW),
         _band_matrices(wr_x, W, PW),
         _band_matrices(wc_x, W, PW)], axis=-1
    ).reshape(KH * W * Cin, 3 * WC).astype(jnp.bfloat16)
    # h-driven weights, z/r gates fused: (KH*W*Ch, 2*W*Ch)
    wzr_hm = jnp.concatenate(
        [_band_matrices(wz_h, W, PW),
         _band_matrices(wr_h, W, PW)], axis=-1
    ).reshape(KH * WC, 2 * WC).astype(jnp.bfloat16)
    wc_hm = _band_matrices(wc_h, W, PW).reshape(KH * WC, WC).astype(jnp.bfloat16)
    # biases broadcast over x, same (gate, x, c) column order as wx_all; kept f32
    bvec = jnp.concatenate(
        [jnp.tile(bz, W), jnp.tile(br, W), jnp.tile(bc, W)]).reshape(1, 3 * WC)

    x_pad = jnp.pad(x_seq, ((0, 0), (0, 0), (PH, PH), (0, 0)))   # (B,T,Hp,WCin)

    def kernel(xp_ref, wx_ref, b_ref, wzr_ref, wch_ref, out_ref, ax_ref):
        # ---- all-timestep x-driven pre-activations: one MXU matmul, M=T*H ----
        cols_x = jnp.concatenate(
            [xp_ref[:, ky:ky + H, :].reshape(TH, WCin) for ky in range(KH)],
            axis=-1)                                        # (T*H, KH*W*Cin)
        ax_ref[...] = (
            jnp.dot(cols_x.astype(jnp.bfloat16), wx_ref[...],
                    preferred_element_type=jnp.float32)
            + b_ref[...])                                   # (T*H, 3*WC) f32

        # Constant halo masks for the zero-padded height shifts.
        row = jax.lax.broadcasted_iota(jnp.int32, (H, WC), 0)
        masks = {}
        for ky in range(KH):
            dy = ky - PH
            if dy != 0:
                masks[ky] = (row + dy >= 0) & (row + dy < H)

        def im2col_rows(v, masked):
            # (H, WC) -> (H, KH*WC): slab ky holds v shifted by (ky - PH) rows.
            slabs = []
            for ky in range(KH):
                dy = ky - PH
                if dy == 0:
                    s = v
                else:
                    s = pltpu.roll(v, (-dy) % H, axis=0)     # circular (XLU)
                    if masked:
                        s = jnp.where(masks[ky], s, 0.0)     # halo zeros
                slabs.append(s)
            return jnp.concatenate(slabs, axis=-1)           # lane-aligned concat

        # ---- serial recurrence over T, hidden state carried in registers ----
        h = jnp.zeros((H, WC), jnp.float32)
        for t in range(T):
            axv = ax_ref[t * H:(t + 1) * H, :]               # (H, 3*WC), aligned
            cols_h = im2col_rows(h, masked=True)             # (H, KH*WC)
            zr = jax.nn.sigmoid(
                axv[:, :2 * WC]
                + jnp.dot(cols_h.astype(jnp.bfloat16), wzr_ref[...],
                          preferred_element_type=jnp.float32))
            z = zr[:, :WC]
            r = zr[:, WC:]
            # im2col(r*h) == im2col(r) * im2col(h); the circular roll of r is
            # safe because cols_h already carries the halo zeros.
            cols_rh = im2col_rows(r, masked=False) * cols_h
            cnm = jnp.tanh(
                axv[:, 2 * WC:]
                + jnp.dot(cols_rh.astype(jnp.bfloat16), wch_ref[...],
                          preferred_element_type=jnp.float32))
            h = h + z * (cnm - h)                            # == (1-z)*h + z*cnm
            out_ref[t] = h

    return pl.pallas_call(
        kernel,
        out_shape=jax.ShapeDtypeStruct((B, T, H, WC), jnp.float32),
        grid_spec=pltpu.PrefetchScalarGridSpec(
            num_scalar_prefetch=0,
            grid=(B,),
            in_specs=[
                pl.BlockSpec((None, T, Hp, WCin), lambda b: (b, 0, 0, 0)),
                pl.BlockSpec((KH * W * Cin, 3 * WC), lambda b: (0, 0)),
                pl.BlockSpec((1, 3 * WC), lambda b: (0, 0)),
                pl.BlockSpec((KH * WC, 2 * WC), lambda b: (0, 0)),
                pl.BlockSpec((KH * WC, WC), lambda b: (0, 0)),
            ],
            out_specs=pl.BlockSpec((None, T, H, WC), lambda b: (b, 0, 0, 0)),
            scratch_shapes=[pltpu.VMEM((TH, 3 * WC), jnp.float32)],
        ),
        compiler_params=pltpu.CompilerParams(
            dimension_semantics=("parallel",)),
    )(x_pad, wx_all, bvec, wzr_hm, wc_hm)


def convgru_forward(x, params, batch_first=False, return_all_layers=False):
    """Matches ConvGRU.forward.  x: (T,B,C,H,W) if not batch_first else (B,T,C,H,W)."""
    if batch_first:
        x = jnp.transpose(x, (1, 0, 2, 3, 4))
    T, B, Cin, H, W = x.shape
    # batch-major, lane-packed (x-major-then-channel) frames: (B, T, H, W*Cin)
    cur = jnp.transpose(x, (1, 0, 3, 4, 2)).reshape(B, T, H, W * Cin)
    layer_outputs, last_states = [], []
    for (wz, wr, wc, bz, br, bc) in params:
        ch = wz.shape[-1]
        out = convgru_layer(cur, wz, wr, wc, bz, br, bc, width=W)  # (B,T,H,W*ch)
        out5 = out.reshape(B, T, H, W, ch)
        layer_outputs.append(out5)
        last_states.append(out5[:, -1])
        cur = out
    if not return_all_layers:
        layer_outputs = layer_outputs[-1:]
        last_states = last_states[-1:]
    # back to torch conventions: [(B,T,C,H,W)], [[(B,C,H,W)]]
    layer_output_list = [jnp.transpose(o, (0, 1, 4, 2, 3)) for o in layer_outputs]
    last_state_list = [[jnp.transpose(s, (0, 3, 1, 2))] for s in last_states]
    return layer_output_list, last_state_list


def ref_forward(x, params, batch_first=False, return_all_layers=False):
    """Pure-JAX reference (lax.conv, HIGHEST precision) with identical semantics."""
    if batch_first:
        x = jnp.transpose(x, (1, 0, 2, 3, 4))
    cur = jnp.transpose(x, (0, 1, 3, 4, 2))
    layer_outputs, last_states = [], []
    for (wz, wr, wc, bz, br, bc) in params:
        ch = wz.shape[-1]
        T, B, H, W, _ = cur.shape
        h = jnp.zeros((B, H, W, ch), jnp.float32)

        def conv(inp, w, b):
            return jax.lax.conv_general_dilated(
                inp, w, (1, 1), "SAME",
                dimension_numbers=("NHWC", "HWIO", "NHWC"),
                precision=jax.lax.Precision.HIGHEST) + b

        outs = []
        for t in range(T):
            xt = cur[t]
            xh = jnp.concatenate([xt, h], axis=-1)
            z = jax.nn.sigmoid(conv(xh, wz, bz))
            r = jax.nn.sigmoid(conv(xh, wr, br))
            xrh = jnp.concatenate([xt, r * h], axis=-1)
            c = jnp.tanh(conv(xrh, wc, bc))
            h = (1.0 - z) * h + z * c
            outs.append(h)
        cur = jnp.stack(outs, axis=0)
        layer_outputs.append(cur)
        last_states.append(h)
    if not return_all_layers:
        layer_outputs = layer_outputs[-1:]
        last_states = last_states[-1:]
    return ([jnp.transpose(o, (1, 0, 4, 2, 3)) for o in layer_outputs],
            [[jnp.transpose(s, (0, 3, 1, 2))] for s in last_states])


if __name__ == "__main__":
    # Shapes consistent with the module: batch=2, in-channels=4, spatial=8x8,
    # seq_len=8, hidden=16, num_layers=2, 3x3 kernels, bias=True.
    # (W*Ch = 128 makes the recurrent state exactly lane-dense.)
    T, B, Cin, H, W = 8, 2, 4, 8, 8
    hidden_dims = [16, 16]
    KH = KW = 3

    key = jax.random.PRNGKey(0)
    keys = jax.random.split(key, 1 + 6 * len(hidden_dims))
    x = jax.random.normal(keys[0], (T, B, Cin, H, W), jnp.float32)  # (t,b,c,h,w)

    # Deterministic parameter init (torch Conv2d shapes, stored here in HWIO).
    params = []
    k = 1
    cur_in = Cin
    for ch in hidden_dims:
        ws = []
        for _ in range(3):  # update / reset / candidate conv weights
            ws.append(0.1 * jax.random.normal(
                keys[k], (KH, KW, cur_in + ch, ch), jnp.float32))
            k += 1
        bs = []
        for _ in range(3):
            bs.append(0.1 * jax.random.normal(keys[k], (ch,), jnp.float32))
            k += 1
        params.append((ws[0], ws[1], ws[2], bs[0], bs[1], bs[2]))
        cur_in = ch

    layer_outs, last_states = convgru_forward(x, params)
    out = jax.block_until_ready(layer_outs[0])        # (B, T, Ch, H, W)
    last = jax.block_until_ready(last_states[0][0])   # (B, Ch, H, W)

    # Verify against the pure-JAX f32 HIGHEST reference.  The kernel uses bf16
    # MXU operands with f32 accumulation, so allow 5e-2 (values are in (-1,1);
    # a structural bug would produce errors >> 1e-1).
    ref_outs, ref_states = ref_forward(x, params)
    err_o = float(jnp.max(jnp.abs(out - ref_outs[0])))
    err_s = float(jnp.max(jnp.abs(last - ref_states[0][0])))
    assert err_o < 5e-2 and err_s < 5e-2, (err_o, err_s)

    print("KERNEL_OK")
</pallas_src>

<mosaic_0001>
module attributes {stable_mosaic.version = 11 : i64} {
  func.func @kernel(%arg0: i32, %arg1: memref<1x8x10x32xf32, #tpu.memory_space<vmem>>, %arg2: memref<96x384xbf16, #tpu.memory_space<vmem>>, %arg3: memref<1x384xf32, #tpu.memory_space<vmem>>, %arg4: memref<384x256xbf16, #tpu.memory_space<vmem>>, %arg5: memref<384x128xbf16, #tpu.memory_space<vmem>>, %arg6: memref<1x8x8x128xf32, #tpu.memory_space<vmem>>, %arg7: memref<64x384xf32, #tpu.memory_space<vmem>>) attributes {dimension_semantics = [#tpu.dimension_semantics<parallel>], iteration_bounds = array<i64: 2>, scalar_prefetch = 0 : i64, scratch_operands = 1 : i64, tpu.core_type = #tpu.core_type<tc>, window_params = [{transform_indices = @transform_0, window_bounds = array<i64: 1, 8, 10, 32>}, {pipeline_mode = #tpu.pipeline_mode<synchronous>, transform_indices = @transform_1, window_bounds = array<i64: 96, 384>}, {pipeline_mode = #tpu.pipeline_mode<synchronous>, transform_indices = @transform_2, window_bounds = array<i64: 1, 384>}, {pipeline_mode = #tpu.pipeline_mode<synchronous>, transform_indices = @transform_3, window_bounds = array<i64: 384, 256>}, {pipeline_mode = #tpu.pipeline_mode<synchronous>, transform_indices = @transform_4, window_bounds = array<i64: 384, 128>}, {transform_indices = @transform_5, window_bounds = array<i64: 1, 8, 8, 128>}]} {
    %c0 = arith.constant 0 : index
    %c0_0 = arith.constant 0 : index
    %c0_1 = arith.constant 0 : index
    %c0_2 = arith.constant 0 : index
    %0 = vector.load %arg1[%c0, %c0_0, %c0_1, %c0_2] : memref<1x8x10x32xf32, #tpu.memory_space<vmem>>, vector<1x8x8x32xf32>
    %1 = vector.shape_cast %0 : vector<1x8x8x32xf32> to vector<8x8x32xf32>
    %2 = vector.shape_cast %1 : vector<8x8x32xf32> to vector<64x32xf32>
    %c0_3 = arith.constant 0 : index
    %c0_4 = arith.constant 0 : index
    %c1 = arith.constant 1 : index
    %c0_5 = arith.constant 0 : index
    %3 = vector.load %arg1[%c0_3, %c0_4, %c1, %c0_5] : memref<1x8x10x32xf32, #tpu.memory_space<vmem>>, vector<1x8x8x32xf32>
    %4 = vector.shape_cast %3 : vector<1x8x8x32xf32> to vector<8x8x32xf32>
    %5 = vector.shape_cast %4 : vector<8x8x32xf32> to vector<64x32xf32>
    %c0_6 = arith.constant 0 : index
    %c0_7 = arith.constant 0 : index
    %c2 = arith.constant 2 : index
    %c0_8 = arith.constant 0 : index
    %6 = vector.load %arg1[%c0_6, %c0_7, %c2, %c0_8] : memref<1x8x10x32xf32, #tpu.memory_space<vmem>>, vector<1x8x8x32xf32>
    %7 = vector.shape_cast %6 : vector<1x8x8x32xf32> to vector<8x8x32xf32>
    %8 = vector.shape_cast %7 : vector<8x8x32xf32> to vector<64x32xf32>
    %9 = tpu.concatenate %2, %5, %8 in 1 : vector<64x32xf32>, vector<64x32xf32>, vector<64x32xf32> -> vector<64x96xf32>
    %10 = arith.truncf %9 : vector<64x96xf32> to vector<64x96xbf16>
    %c0_9 = arith.constant 0 : index
    %c0_10 = arith.constant 0 : index
    %11 = vector.load %arg2[%c0_9, %c0_10] : memref<96x384xbf16, #tpu.memory_space<vmem>>, vector<96x384xbf16>
    %cst = arith.constant dense<0.000000e+00> : vector<64x384xf32>
    %12 = tpu.matmul %10, %11, %cst {dimension_numbers = #tpu.dot_dimension_numbers<[1], [0], [0], [1], [0, 0, 1, 1], [], []>} : vector<64x96xbf16>, vector<96x384xbf16>, vector<64x384xf32> -> vector<64x384xf32>
    %c0_11 = arith.constant 0 : index
    %c0_12 = arith.constant 0 : index
    %13 = vector.load %arg3[%c0_11, %c0_12] : memref<1x384xf32, #tpu.memory_space<vmem>>, vector<1x384xf32>
    %14 = vector.broadcast %13 : vector<1x384xf32> to vector<64x384xf32>
    %15 = arith.addf %12, %14 : vector<64x384xf32>
    %c0_13 = arith.constant 0 : index
    %c0_14 = arith.constant 0 : index
    %16 = vector.load %arg7[%c0_13, %c0_14] : memref<64x384xf32, #tpu.memory_space<vmem>>, vector<64x384xf32>
    tpu.vector_store %arg7[%c0_13, %c0_14], %15 {strides = array<i32>} : memref<64x384xf32, #tpu.memory_space<vmem>>, vector<64x384xf32>,
    %17 = tpu.iota {dimensions = array<i32: 0>} : vector<8x128xi32>
    %c-1_i32 = arith.constant -1 : i32
    %18 = vector.broadcast %c-1_i32 : i32 to vector<8x128xi32>
    %19 = arith.addi %17, %18 : vector<8x128xi32>
    %c0_i32 = arith.constant 0 : i32
    %20 = vector.broadcast %c0_i32 : i32 to vector<8x128xi32>
    %21 = arith.cmpi sge, %19, %20 : vector<8x128xi32>
    %c-1_i32_15 = arith.constant -1 : i32
    %22 = vector.broadcast %c-1_i32_15 : i32 to vector<8x128xi32>
    %23 = arith.addi %17, %22 : vector<8x128xi32>
    %c8_i32 = arith.constant 8 : i32
    %24 = vector.broadcast %c8_i32 : i32 to vector<8x128xi32>
    %25 = arith.cmpi slt, %23, %24 : vector<8x128xi32>
    %26 = arith.andi %21, %25 : vector<8x128xi1>
    %c1_i32 = arith.constant 1 : i32
    %27 = vector.broadcast %c1_i32 : i32 to vector<8x128xi32>
    %28 = arith.addi %17, %27 : vector<8x128xi32>
    %c0_i32_16 = arith.constant 0 : i32
    %29 = vector.broadcast %c0_i32_16 : i32 to vector<8x128xi32>
    %30 = arith.cmpi sge, %28, %29 : vector<8x128xi32>
    %c1_i32_17 = arith.constant 1 : i32
    %31 = vector.broadcast %c1_i32_17 : i32 to vector<8x128xi32>
    %32 = arith.addi %17, %31 : vector<8x128xi32>
    %c8_i32_18 = arith.constant 8 : i32
    %33 = vector.broadcast %c8_i32_18 : i32 to vector<8x128xi32>
    %34 = arith.cmpi slt, %32, %33 : vector<8x128xi32>
    %35 = arith.andi %30, %34 : vector<8x128xi1>
    %cst_19 = arith.constant 0.000000e+00 : f32
    %36 = vector.broadcast %cst_19 : f32 to vector<8x128xf32>
    %c0_20 = arith.constant 0 : index
    %c0_21 = arith.constant 0 : index
    %37 = vector.load %arg7[%c0_20, %c0_21] : memref<64x384xf32, #tpu.memory_space<vmem>>, vector<8x384xf32>
    %c1_i32_22 = arith.constant 1 : i32
    %38 = tpu.dynamic_rotate %36 by %c1_i32_22 dim 0 : vector<8x128xf32>, i32 -> vector<8x128xf32>
    %cst_23 = arith.constant 0.000000e+00 : f32
    %39 = vector.broadcast %cst_23 : f32 to vector<8x128xf32>
    %40 = arith.select %26, %38, %39 : vector<8x128xi1>, vector<8x128xf32>
    %c7_i32 = arith.constant 7 : i32
    %41 = tpu.dynamic_rotate %36 by %c7_i32 dim 0 : vector<8x128xf32>, i32 -> vector<8x128xf32>
    %cst_24 = arith.constant 0.000000e+00 : f32
    %42 = vector.broadcast %cst_24 : f32 to vector<8x128xf32>
    %43 = arith.select %35, %41, %42 : vector<8x128xi1>, vector<8x128xf32>
    %44 = tpu.concatenate %40, %36, %43 in 1 : vector<8x128xf32>, vector<8x128xf32>, vector<8x128xf32> -> vector<8x384xf32>
    %45 = vector.extract_strided_slice %37 {offsets = [0, 0], sizes = [8, 256], strides = [1, 1]} : vector<8x384xf32> to vector<8x256xf32>
    %46 = arith.truncf %44 : vector<8x384xf32> to vector<8x384xbf16>
    %c0_25 = arith.constant 0 : index
    %c0_26 = arith.constant 0 : index
    %47 = vector.load %arg4[%c0_25, %c0_26] : memref<384x256xbf16, #tpu.memory_space<vmem>>, vector<384x256xbf16>
    %cst_27 = arith.constant dense<0.000000e+00> : vector<8x256xf32>
    %48 = tpu.matmul %46, %47, %cst_27 {dimension_numbers = #tpu.dot_dimension_numbers<[1], [0], [0], [1], [0, 0, 1, 1], [], []>} : vector<8x384xbf16>, vector<384x256xbf16>, vector<8x256xf32> -> vector<8x256xf32>
    %49 = arith.addf %45, %48 : vector<8x256xf32>
    %50 = arith.negf %49 : vector<8x256xf32>
    %51 = math.exp %50 : vector<8x256xf32>
    %cst_28 = arith.constant 1.000000e+00 : f32
    %52 = vector.broadcast %cst_28 : f32 to vector<8x256xf32>
    %53 = arith.addf %52, %51 : vector<8x256xf32>
    %54 = arith.divf %52, %53 : vector<8x256xf32>
    %55 = vector.extract_strided_slice %54 {offsets = [0, 0], sizes = [8, 128], strides = [1, 1]} : vector<8x256xf32> to vector<8x128xf32>
    %56 = vector.extract_strided_slice %54 {offsets = [0, 128], sizes = [8, 128], strides = [1, 1]} : vector<8x256xf32> to vector<8x128xf32>
    %c1_i32_29 = arith.constant 1 : i32
    %57 = tpu.dynamic_rotate %56 by %c1_i32_29 dim 0 : vector<8x128xf32>, i32 -> vector<8x128xf32>
    %c7_i32_30 = arith.constant 7 : i32
    %58 = tpu.dynamic_rotate %56 by %c7_i32_30 dim 0 : vector<8x128xf32>, i32 -> vector<8x128xf32>
    %59 = tpu.concatenate %57, %56, %58 in 1 : vector<8x128xf32>, vector<8x128xf32>, vector<8x128xf32> -> vector<8x384xf32>
    %60 = arith.mulf %59, %44 : vector<8x384xf32>
    %61 = vector.extract_strided_slice %37 {offsets = [0, 256], sizes = [8, 128], strides = [1, 1]} : vector<8x384xf32> to vector<8x128xf32>
    %62 = arith.truncf %60 : vector<8x384xf32> to vector<8x384xbf16>
    %c0_31 = arith.constant 0 : index
    %c0_32 = arith.constant 0 : index
    %63 = vector.load %arg5[%c0_31, %c0_32] : memref<384x128xbf16, #tpu.memory_space<vmem>>, vector<384x128xbf16>
    %cst_33 = arith.constant dense<0.000000e+00> : vector<8x128xf32>
    %64 = tpu.matmul %62, %63, %cst_33 {dimension_numbers = #tpu.dot_dimension_numbers<[1], [0], [0], [1], [0, 0, 1, 1], [], []>} : vector<8x384xbf16>, vector<384x128xbf16>, vector<8x128xf32> -> vector<8x128xf32>
    %65 = arith.addf %61, %64 : vector<8x128xf32>
    %66 = math.tanh %65 : vector<8x128xf32>
    %67 = arith.subf %66, %36 : vector<8x128xf32>
    %68 = arith.mulf %55, %67 : vector<8x128xf32>
    %69 = arith.addf %36, %68 : vector<8x128xf32>
    %c0_34 = arith.constant 0 : index
    %c0_35 = arith.constant 0 : index
    %c0_36 = arith.constant 0 : index
    %c0_37 = arith.constant 0 : index
    %70 = vector.load %arg6[%c0_34, %c0_35, %c0_36, %c0_37] : memref<1x8x8x128xf32, #tpu.memory_space<vmem>>, vector<1x1x8x128xf32>
    %71 = vector.shape_cast %70 : vector<1x1x8x128xf32> to vector<8x128xf32>
    %72 = vector.shape_cast %69 : vector<8x128xf32> to vector<1x1x8x128xf32>
    tpu.vector_store %arg6[%c0_34, %c0_35, %c0_36, %c0_37], %72 {strides = array<i32>} : memref<1x8x8x128xf32, #tpu.memory_space<vmem>>, vector<1x1x8x128xf32>,
    %c8 = arith.constant 8 : index
    %c0_38 = arith.constant 0 : index
    %73 = vector.load %arg7[%c8, %c0_38] : memref<64x384xf32, #tpu.memory_space<vmem>>, vector<8x384xf32>
    %c1_i32_39 = arith.constant 1 : i32
    %74 = tpu.dynamic_rotate %69 by %c1_i32_39 dim 0 : vector<8x128xf32>, i32 -> vector<8x128xf32>
    %cst_40 = arith.constant 0.000000e+00 : f32
    %75 = vector.broadcast %cst_40 : f32 to vector<8x128xf32>
    %76 = arith.select %26, %74, %75 : vector<8x128xi1>, vector<8x128xf32>
    %c7_i32_41 = arith.constant 7 : i32
    %77 = tpu.dynamic_rotate %69 by %c7_i32_41 dim 0 : vector<8x128xf32>, i32 -> vector<8x128xf32>
    %cst_42 = arith.constant 0.000000e+00 : f32
    %78 = vector.broadcast %cst_42 : f32 to vector<8x128xf32>
    %79 = arith.select %35, %77, %78 : vector<8x128xi1>, vector<8x128xf32>
    %80 = tpu.concatenate %76, %69, %79 in 1 : vector<8x128xf32>, vector<8x128xf32>, vector<8x128xf32> -> vector<8x384xf32>
    %81 = vector.extract_strided_slice %73 {offsets = [0, 0], sizes = [8, 256], strides = [1, 1]} : vector<8x384xf32> to vector<8x256xf32>
    %82 = arith.truncf %80 : vector<8x384xf32> to vector<8x384xbf16>
    %c0_43 = arith.constant 0 : index
    %c0_44 = arith.constant 0 : index
    %83 = vector.load %arg4[%c0_43, %c0_44] : memref<384x256xbf16, #tpu.memory_space<vmem>>, vector<384x256xbf16>
    %cst_45 = arith.constant dense<0.000000e+00> : vector<8x256xf32>
    %84 = tpu.matmul %82, %83, %cst_45 {dimension_numbers = #tpu.dot_dimension_numbers<[1], [0], [0], [1], [0, 0, 1, 1], [], []>} : vector<8x384xbf16>, vector<384x256xbf16>, vector<8x256xf32> -> vector<8x256xf32>
    %85 = arith.addf %81, %84 : vector<8x256xf32>
    %86 = arith.negf %85 : vector<8x256xf32>
    %87 = math.exp %86 : vector<8x256xf32>
    %cst_46 = arith.constant 1.000000e+00 : f32
    %88 = vector.broadcast %cst_46 : f32 to vector<8x256xf32>
    %89 = arith.addf %88, %87 : vector<8x256xf32>
    %90 = arith.divf %88, %89 : vector<8x256xf32>
    %91 = vector.extract_strided_slice %90 {offsets = [0, 0], sizes = [8, 128], strides = [1, 1]} : vector<8x256xf32> to vector<8x128xf32>
    %92 = vector.extract_strided_slice %90 {offsets = [0, 128], sizes = [8, 128], strides = [1, 1]} : vector<8x256xf32> to vector<8x128xf32>
    %c1_i32_47 = arith.constant 1 : i32
    %93 = tpu.dynamic_rotate %92 by %c1_i32_47 dim 0 : vector<8x128xf32>, i32 -> vector<8x128xf32>
    %c7_i32_48 = arith.constant 7 : i32
    %94 = tpu.dynamic_rotate %92 by %c7_i32_48 dim 0 : vector<8x128xf32>, i32 -> vector<8x128xf32>
    %95 = tpu.concatenate %93, %92, %94 in 1 : vector<8x128xf32>, vector<8x128xf32>, vector<8x128xf32> -> vector<8x384xf32>
    %96 = arith.mulf %95, %80 : vector<8x384xf32>
    %97 = vector.extract_strided_slice %73 {offsets = [0, 256], sizes = [8, 128], strides = [1, 1]} : vector<8x384xf32> to vector<8x128xf32>
    %98 = arith.truncf %96 : vector<8x384xf32> to vector<8x384xbf16>
    %c0_49 = arith.constant 0 : index
    %c0_50 = arith.constant 0 : index
    %99 = vector.load %arg5[%c0_49, %c0_50] : memref<384x128xbf16, #tpu.memory_space<vmem>>, vector<384x128xbf16>
    %cst_51 = arith.constant dense<0.000000e+00> : vector<8x128xf32>
    %100 = tpu.matmul %98, %99, %cst_51 {dimension_numbers = #tpu.dot_dimension_numbers<[1], [0], [0], [1], [0, 0, 1, 1], [], []>} : vector<8x384xbf16>, vector<384x128xbf16>, vector<8x128xf32> -> vector<8x128xf32>
    %101 = arith.addf %97, %100 : vector<8x128xf32>
    %102 = math.tanh %101 : vector<8x128xf32>
    %103 = arith.subf %102, %69 : vector<8x128xf32>
    %104 = arith.mulf %91, %103 : vector<8x128xf32>
    %105 = arith.addf %69, %104 : vector<8x128xf32>
    %c0_52 = arith.constant 0 : index
    %c1_53 = arith.constant 1 : index
    %c0_54 = arith.constant 0 : index
    %c0_55 = arith.constant 0 : index
    %106 = vector.load %arg6[%c0_52, %c1_53, %c0_54, %c0_55] : memref<1x8x8x128xf32, #tpu.memory_space<vmem>>, vector<1x1x8x128xf32>
    %107 = vector.shape_cast %106 : vector<1x1x8x128xf32> to vector<8x128xf32>
    %108 = vector.shape_cast %105 : vector<8x128xf32> to vector<1x1x8x128xf32>
    tpu.vector_store %arg6[%c0_52, %c1_53, %c0_54, %c0_55], %108 {strides = array<i32>} : memref<1x8x8x128xf32, #tpu.memory_space<vmem>>, vector<1x1x8x128xf32>,
    %c16 = arith.constant 16 : index
    %c0_56 = arith.constant 0 : index
    %109 = vector.load %arg7[%c16, %c0_56] : memref<64x384xf32, #tpu.memory_space<vmem>>, vector<8x384xf32>
    %c1_i32_57 = arith.constant 1 : i32
    %110 = tpu.dynamic_rotate %105 by %c1_i32_57 dim 0 : vector<8x128xf32>, i32 -> vector<8x128xf32>
    %cst_58 = arith.constant 0.000000e+00 : f32
    %111 = vector.broadcast %cst_58 : f32 to vector<8x128xf32>
    %112 = arith.select %26, %110, %111 : vector<8x128xi1>, vector<8x128xf32>
    %c7_i32_59 = arith.constant 7 : i32
    %113 = tpu.dynamic_rotate %105 by %c7_i32_59 dim 0 : vector<8x128xf32>, i32 -> vector<8x128xf32>
    %cst_60 = arith.constant 0.000000e+00 : f32
    %114 = vector.broadcast %cst_60 : f32 to vector<8x128xf32>
    %115 = arith.select %35, %113, %114 : vector<8x128xi1>, vector<8x128xf32>
    %116 = tpu.concatenate %112, %105, %115 in 1 : vector<8x128xf32>, vector<8x128xf32>, vector<8x128xf32> -> vector<8x384xf32>
    %117 = vector.extract_strided_slice %109 {offsets = [0, 0], sizes = [8, 256], strides = [1, 1]} : vector<8x384xf32> to vector<8x256xf32>
    %118 = arith.truncf %116 : vector<8x384xf32> to vector<8x384xbf16>
    %c0_61 = arith.constant 0 : index
    %c0_62 = arith.constant 0 : index
    %119 = vector.load %arg4[%c0_61, %c0_62] : memref<384x256xbf16, #tpu.memory_space<vmem>>, vector<384x256xbf16>
    %cst_63 = arith.constant dense<0.000000e+00> : vector<8x256xf32>
    %120 = tpu.matmul %118, %119, %cst_63 {dimension_numbers = #tpu.dot_dimension_numbers<[1], [0], [0], [1], [0, 0, 1, 1], [], []>} : vector<8x384xbf16>, vector<384x256xbf16>, vector<8x256xf32> -> vector<8x256xf32>
    %121 = arith.addf %117, %120 : vector<8x256xf32>
    %122 = arith.negf %121 : vector<8x256xf32>
    %123 = math.exp %122 : vector<8x256xf32>
    %cst_64 = arith.constant 1.000000e+00 : f32
    %124 = vector.broadcast %cst_64 : f32 to vector<8x256xf32>
    %125 = arith.addf %124, %123 : vector<8x256xf32>
    %126 = arith.divf %124, %125 : vector<8x256xf32>
    %127 = vector.extract_strided_slice %126 {offsets = [0, 0], sizes = [8, 128], strides = [1, 1]} : vector<8x256xf32> to vector<8x128xf32>
    %128 = vector.extract_strided_slice %126 {offsets = [0, 128], sizes = [8, 128], strides = [1, 1]} : vector<8x256xf32> to vector<8x128xf32>
    %c1_i32_65 = arith.constant 1 : i32
    %129 = tpu.dynamic_rotate %128 by %c1_i32_65 dim 0 : vector<8x128xf32>, i32 -> vector<8x128xf32>
    %c7_i32_66 = arith.constant 7 : i32
    %130 = tpu.dynamic_rotate %128 by %c7_i32_66 dim 0 : vector<8x128xf32>, i32 -> vector<8x128xf32>
    %131 = tpu.concatenate %129, %128, %130 in 1 : vector<8x128xf32>, vector<8x128xf32>, vector<8x128xf32> -> vector<8x384xf32>
    %132 = arith.mulf %131, %116 : vector<8x384xf32>
    %133 = vector.extract_strided_slice %109 {offsets = [0, 256], sizes = [8, 128], strides = [1, 1]} : vector<8x384xf32> to vector<8x128xf32>
    %134 = arith.truncf %132 : vector<8x384xf32> to vector<8x384xbf16>
    %c0_67 = arith.constant 0 : index
    %c0_68 = arith.constant 0 : index
    %135 = vector.load %arg5[%c0_67, %c0_68] : memref<384x128xbf16, #tpu.memory_space<vmem>>, vector<384x128xbf16>
    %cst_69 = arith.constant dense<0.000000e+00> : vector<8x128xf32>
    %136 = tpu.matmul %134, %135, %cst_69 {dimension_numbers = #tpu.dot_dimension_numbers<[1], [0], [0], [1], [0, 0, 1, 1], [], []>} : vector<8x384xbf16>, vector<384x128xbf16>, vector<8x128xf32> -> vector<8x128xf32>
    %137 = arith.addf %133, %136 : vector<8x128xf32>
    %138 = math.tanh %137 : vector<8x128xf32>
    %139 = arith.subf %138, %105 : vector<8x128xf32>
    %140 = arith.mulf %127, %139 : vector<8x128xf32>
    %141 = arith.addf %105, %140 : vector<8x128xf32>
    %c0_70 = arith.constant 0 : index
    %c2_71 = arith.constant 2 : index
    %c0_72 = arith.constant 0 : index
    %c0_73 = arith.constant 0 : index
    %142 = vector.load %arg6[%c0_70, %c2_71, %c0_72, %c0_73] : memref<1x8x8x128xf32, #tpu.memory_space<vmem>>, vector<1x1x8x128xf32>
    %143 = vector.shape_cast %142 : vector<1x1x8x128xf32> to vector<8x128xf32>
    %144 = vector.shape_cast %141 : vector<8x128xf32> to vector<1x1x8x128xf32>
    tpu.vector_store %arg6[%c0_70, %c2_71, %c0_72, %c0_73], %144 {strides = array<i32>} : memref<1x8x8x128xf32, #tpu.memory_space<vmem>>, vector<1x1x8x128xf32>,
    %c24 = arith.constant 24 : index
    %c0_74 = arith.constant 0 : index
    %145 = vector.load %arg7[%c24, %c0_74] : memref<64x384xf32, #tpu.memory_space<vmem>>, vector<8x384xf32>
    %c1_i32_75 = arith.constant 1 : i32
    %146 = tpu.dynamic_rotate %141 by %c1_i32_75 dim 0 : vector<8x128xf32>, i32 -> vector<8x128xf32>
    %cst_76 = arith.constant 0.000000e+00 : f32
    %147 = vector.broadcast %cst_76 : f32 to vector<8x128xf32>
    %148 = arith.select %26, %146, %147 : vector<8x128xi1>, vector<8x128xf32>
    %c7_i32_77 = arith.constant 7 : i32
    %149 = tpu.dynamic_rotate %141 by %c7_i32_77 dim 0 : vector<8x128xf32>, i32 -> vector<8x128xf32>
    %cst_78 = arith.constant 0.000000e+00 : f32
    %150 = vector.broadcast %cst_78 : f32 to vector<8x128xf32>
    %151 = arith.select %35, %149, %150 : vector<8x128xi1>, vector<8x128xf32>
    %152 = tpu.concatenate %148, %141, %151 in 1 : vector<8x128xf32>, vector<8x128xf32>, vector<8x128xf32> -> vector<8x384xf32>
    %153 = vector.extract_strided_slice %145 {offsets = [0, 0], sizes = [8, 256], strides = [1, 1]} : vector<8x384xf32> to vector<8x256xf32>
    %154 = arith.truncf %152 : vector<8x384xf32> to vector<8x384xbf16>
    %c0_79 = arith.constant 0 : index
    %c0_80 = arith.constant 0 : index
    %155 = vector.load %arg4[%c0_79, %c0_80] : memref<384x256xbf16, #tpu.memory_space<vmem>>, vector<384x256xbf16>
    %cst_81 = arith.constant dense<0.000000e+00> : vector<8x256xf32>
    %156 = tpu.matmul %154, %155, %cst_81 {dimension_numbers = #tpu.dot_dimension_numbers<[1], [0], [0], [1], [0, 0, 1, 1], [], []>} : vector<8x384xbf16>, vector<384x256xbf16>, vector<8x256xf32> -> vector<8x256xf32>
    %157 = arith.addf %153, %156 : vector<8x256xf32>
    %158 = arith.negf %157 : vector<8x256xf32>
    %159 = math.exp %158 : vector<8x256xf32>
    %cst_82 = arith.constant 1.000000e+00 : f32
    %160 = vector.broadcast %cst_82 : f32 to vector<8x256xf32>
    %161 = arith.addf %160, %159 : vector<8x256xf32>
    %162 = arith.divf %160, %161 : vector<8x256xf32>
    %163 = vector.extract_strided_slice %162 {offsets = [0, 0], sizes = [8, 128], strides = [1, 1]} : vector<8x256xf32> to vector<8x128xf32>
    %164 = vector.extract_strided_slice %162 {offsets = [0, 128], sizes = [8, 128], strides = [1, 1]} : vector<8x256xf32> to vector<8x128xf32>
    %c1_i32_83 = arith.constant 1 : i32
    %165 = tpu.dynamic_rotate %164 by %c1_i32_83 dim 0 : vector<8x128xf32>, i32 -> vector<8x128xf32>
    %c7_i32_84 = arith.constant 7 : i32
    %166 = tpu.dynamic_rotate %164 by %c7_i32_84 dim 0 : vector<8x128xf32>, i32 -> vector<8x128xf32>
    %167 = tpu.concatenate %165, %164, %166 in 1 : vector<8x128xf32>, vector<8x128xf32>, vector<8x128xf32> -> vector<8x384xf32>
    %168 = arith.mulf %167, %152 : vector<8x384xf32>
    %169 = vector.extract_strided_slice %145 {offsets = [0, 256], sizes = [8, 128], strides = [1, 1]} : vector<8x384xf32> to vector<8x128xf32>
    %170 = arith.truncf %168 : vector<8x384xf32> to vector<8x384xbf16>
    %c0_85 = arith.constant 0 : index
    %c0_86 = arith.constant 0 : index
    %171 = vector.load %arg5[%c0_85, %c0_86] : memref<384x128xbf16, #tpu.memory_space<vmem>>, vector<384x128xbf16>
    %cst_87 = arith.constant dense<0.000000e+00> : vector<8x128xf32>
    %172 = tpu.matmul %170, %171, %cst_87 {dimension_numbers = #tpu.dot_dimension_numbers<[1], [0], [0], [1], [0, 0, 1, 1], [], []>} : vector<8x384xbf16>, vector<384x128xbf16>, vector<8x128xf32> -> vector<8x128xf32>
    %173 = arith.addf %169, %172 : vector<8x128xf32>
    %174 = math.tanh %173 : vector<8x128xf32>
    %175 = arith.subf %174, %141 : vector<8x128xf32>
    %176 = arith.mulf %163, %175 : vector<8x128xf32>
    %177 = arith.addf %141, %176 : vector<8x128xf32>
    %c0_88 = arith.constant 0 : index
    %c3 = arith.constant 3 : index
    %c0_89 = arith.constant 0 : index
    %c0_90 = arith.constant 0 : index
    %178 = vector.load %arg6[%c0_88, %c3, %c0_89, %c0_90] : memref<1x8x8x128xf32, #tpu.memory_space<vmem>>, vector<1x1x8x128xf32>
    %179 = vector.shape_cast %178 : vector<1x1x8x128xf32> to vector<8x128xf32>
    %180 = vector.shape_cast %177 : vector<8x128xf32> to vector<1x1x8x128xf32>
    tpu.vector_store %arg6[%c0_88, %c3, %c0_89, %c0_90], %180 {strides = array<i32>} : memref<1x8x8x128xf32, #tpu.memory_space<vmem>>, vector<1x1x8x128xf32>,
    %c32 = arith.constant 32 : index
    %c0_91 = arith.constant 0 : index
    %181 = vector.load %arg7[%c32, %c0_91] : memref<64x384xf32, #tpu.memory_space<vmem>>, vector<8x384xf32>
    %c1_i32_92 = arith.constant 1 : i32
    %182 = tpu.dynamic_rotate %177 by %c1_i32_92 dim 0 : vector<8x128xf32>, i32 -> vector<8x128xf32>
    %cst_93 = arith.constant 0.000000e+00 : f32
    %183 = vector.broadcast %cst_93 : f32 to vector<8x128xf32>
    %184 = arith.select %26, %182, %183 : vector<8x128xi1>, vector<8x128xf32>
    %c7_i32_94 = arith.constant 7 : i32
    %185 = tpu.dynamic_rotate %177 by %c7_i32_94 dim 0 : vector<8x128xf32>, i32 -> vector<8x128xf32>
    %cst_95 = arith.constant 0.000000e+00 : f32
    %186 = vector.broadcast %cst_95 : f32 to vector<8x128xf32>
    %187 = arith.select %35, %185, %186 : vector<8x128xi1>, vector<8x128xf32>
    %188 = tpu.concatenate %184, %177, %187 in 1 : vector<8x128xf32>, vector<8x128xf32>, vector<8x128xf32> -> vector<8x384xf32>
    %189 = vector.extract_strided_slice %181 {offsets = [0, 0], sizes = [8, 256], strides = [1, 1]} : vector<8x384xf32> to vector<8x256xf32>
    %190 = arith.truncf %188 : vector<8x384xf32> to vector<8x384xbf16>
    %c0_96 = arith.constant 0 : index
    %c0_97 = arith.constant 0 : index
    %191 = vector.load %arg4[%c0_96, %c0_97] : memref<384x256xbf16, #tpu.memory_space<vmem>>, vector<384x256xbf16>
    %cst_98 = arith.constant dense<0.000000e+00> : vector<8x256xf32>
    %192 = tpu.matmul %190, %191, %cst_98 {dimension_numbers = #tpu.dot_dimension_numbers<[1], [0], [0], [1], [0, 0, 1, 1], [], []>} : vector<8x384xbf16>, vector<384x256xbf16>, vector<8x256xf32> -> vector<8x256xf32>
    %193 = arith.addf %189, %192 : vector<8x256xf32>
    %194 = arith.negf %193 : vector<8x256xf32>
    %195 = math.exp %194 : vector<8x256xf32>
    %cst_99 = arith.constant 1.000000e+00 : f32
    %196 = vector.broadcast %cst_99 : f32 to vector<8x256xf32>
    %197 = arith.addf %196, %195 : vector<8x256xf32>
    %198 = arith.divf %196, %197 : vector<8x256xf32>
    %199 = vector.extract_strided_slice %198 {offsets = [0, 0], sizes = [8, 128], strides = [1, 1]} : vector<8x256xf32> to vector<8x128xf32>
    %200 = vector.extract_strided_slice %198 {offsets = [0, 128], sizes = [8, 128], strides = [1, 1]} : vector<8x256xf32> to vector<8x128xf32>
    %c1_i32_100 = arith.constant 1 : i32
    %201 = tpu.dynamic_rotate %200 by %c1_i32_100 dim 0 : vector<8x128xf32>, i32 -> vector<8x128xf32>
    %c7_i32_101 = arith.constant 7 : i32
    %202 = tpu.dynamic_rotate %200 by %c7_i32_101 dim 0 : vector<8x128xf32>, i32 -> vector<8x128xf32>
    %203 = tpu.concatenate %201, %200, %202 in 1 : vector<8x128xf32>, vector<8x128xf32>, vector<8x128xf32> -> vector<8x384xf32>
    %204 = arith.mulf %203, %188 : vector<8x384xf32>
    %205 = vector.extract_strided_slice %181 {offsets = [0, 256], sizes = [8, 128], strides = [1, 1]} : vector<8x384xf32> to vector<8x128xf32>
    %206 = arith.truncf %204 : vector<8x384xf32> to vector<8x384xbf16>
    %c0_102 = arith.constant 0 : index
    %c0_103 = arith.constant 0 : index
    %207 = vector.load %arg5[%c0_102, %c0_103] : memref<384x128xbf16, #tpu.memory_space<vmem>>, vector<384x128xbf16>
    %cst_104 = arith.constant dense<0.000000e+00> : vector<8x128xf32>
    %208 = tpu.matmul %206, %207, %cst_104 {dimension_numbers = #tpu.dot_dimension_numbers<[1], [0], [0], [1], [0, 0, 1, 1], [], []>} : vector<8x384xbf16>, vector<384x128xbf16>, vector<8x128xf32> -> vector<8x128xf32>
    %209 = arith.addf %205, %208 : vector<8x128xf32>
    %210 = math.tanh %209 : vector<8x128xf32>
    %211 = arith.subf %210, %177 : vector<8x128xf32>
    %212 = arith.mulf %199, %211 : vector<8x128xf32>
    %213 = arith.addf %177, %212 : vector<8x128xf32>
    %c0_105 = arith.constant 0 : index
    %c4 = arith.constant 4 : index
    %c0_106 = arith.constant 0 : index
    %c0_107 = arith.constant 0 : index
    %214 = vector.load %arg6[%c0_105, %c4, %c0_106, %c0_107] : memref<1x8x8x128xf32, #tpu.memory_space<vmem>>, vector<1x1x8x128xf32>
    %215 = vector.shape_cast %214 : vector<1x1x8x128xf32> to vector<8x128xf32>
    %216 = vector.shape_cast %213 : vector<8x128xf32> to vector<1x1x8x128xf32>
    tpu.vector_store %arg6[%c0_105, %c4, %c0_106, %c0_107], %216 {strides = array<i32>} : memref<1x8x8x128xf32, #tpu.memory_space<vmem>>, vector<1x1x8x128xf32>,
    %c40 = arith.constant 40 : index
    %c0_108 = arith.constant 0 : index
    %217 = vector.load %arg7[%c40, %c0_108] : memref<64x384xf32, #tpu.memory_space<vmem>>, vector<8x384xf32>
    %c1_i32_109 = arith.constant 1 : i32
    %218 = tpu.dynamic_rotate %213 by %c1_i32_109 dim 0 : vector<8x128xf32>, i32 -> vector<8x128xf32>
    %cst_110 = arith.constant 0.000000e+00 : f32
    %219 = vector.broadcast %cst_110 : f32 to vector<8x128xf32>
    %220 = arith.select %26, %218, %219 : vector<8x128xi1>, vector<8x128xf32>
    %c7_i32_111 = arith.constant 7 : i32
    %221 = tpu.dynamic_rotate %213 by %c7_i32_111 dim 0 : vector<8x128xf32>, i32 -> vector<8x128xf32>
    %cst_112 = arith.constant 0.000000e+00 : f32
    %222 = vector.broadcast %cst_112 : f32 to vector<8x128xf32>
    %223 = arith.select %35, %221, %222 : vector<8x128xi1>, vector<8x128xf32>
    %224 = tpu.concatenate %220, %213, %223 in 1 : vector<8x128xf32>, vector<8x128xf32>, vector<8x128xf32> -> vector<8x384xf32>
    %225 = vector.extract_strided_slice %217 {offsets = [0, 0], sizes = [8, 256], strides = [1, 1]} : vector<8x384xf32> to vector<8x256xf32>
    %226 = arith.truncf %224 : vector<8x384xf32> to vector<8x384xbf16>
    %c0_113 = arith.constant 0 : index
    %c0_114 = arith.constant 0 : index
    %227 = vector.load %arg4[%c0_113, %c0_114] : memref<384x256xbf16, #tpu.memory_space<vmem>>, vector<384x256xbf16>
    %cst_115 = arith.constant dense<0.000000e+00> : vector<8x256xf32>
    %228 = tpu.matmul %226, %227, %cst_115 {dimension_numbers = #tpu.dot_dimension_numbers<[1], [0], [0], [1], [0, 0, 1, 1], [], []>} : vector<8x384xbf16>, vector<384x256xbf16>, vector<8x256xf32> -> vector<8x256xf32>
    %229 = arith.addf %225, %228 : vector<8x256xf32>
    %230 = arith.negf %229 : vector<8x256xf32>
    %231 = math.exp %230 : vector<8x256xf32>
    %cst_116 = arith.constant 1.000000e+00 : f32
    %232 = vector.broadcast %cst_116 : f32 to vector<8x256xf32>
    %233 = arith.addf %232, %231 : vector<8x256xf32>
    %234 = arith.divf %232, %233 : vector<8x256xf32>
    %235 = vector.extract_strided_slice %234 {offsets = [0, 0], sizes = [8, 128], strides = [1, 1]} : vector<8x256xf32> to vector<8x128xf32>
    %236 = vector.extract_strided_slice %234 {offsets = [0, 128], sizes = [8, 128], strides = [1, 1]} : vector<8x256xf32> to vector<8x128xf32>
    %c1_i32_117 = arith.constant 1 : i32
    %237 = tpu.dynamic_rotate %236 by %c1_i32_117 dim 0 : vector<8x128xf32>, i32 -> vector<8x128xf32>
    %c7_i32_118 = arith.constant 7 : i32
    %238 = tpu.dynamic_rotate %236 by %c7_i32_118 dim 0 : vector<8x128xf32>, i32 -> vector<8x128xf32>
    %239 = tpu.concatenate %237, %236, %238 in 1 : vector<8x128xf32>, vector<8x128xf32>, vector<8x128xf32> -> vector<8x384xf32>
    %240 = arith.mulf %239, %224 : vector<8x384xf32>
    %241 = vector.extract_strided_slice %217 {offsets = [0, 256], sizes = [8, 128], strides = [1, 1]} : vector<8x384xf32> to vector<8x128xf32>
    %242 = arith.truncf %240 : vector<8x384xf32> to vector<8x384xbf16>
    %c0_119 = arith.constant 0 : index
    %c0_120 = arith.constant 0 : index
    %243 = vector.load %arg5[%c0_119, %c0_120] : memref<384x128xbf16, #tpu.memory_space<vmem>>, vector<384x128xbf16>
    %cst_121 = arith.constant dense<0.000000e+00> : vector<8x128xf32>
    %244 = tpu.matmul %242, %243, %cst_121 {dimension_numbers = #tpu.dot_dimension_numbers<[1], [0], [0], [1], [0, 0, 1, 1], [], []>} : vector<8x384xbf16>, vector<384x128xbf16>, vector<8x128xf32> -> vector<8x128xf32>
    %245 = arith.addf %241, %244 : vector<8x128xf32>
    %246 = math.tanh %245 : vector<8x128xf32>
    %247 = arith.subf %246, %213 : vector<8x128xf32>
    %248 = arith.mulf %235, %247 : vector<8x128xf32>
    %249 = arith.addf %213, %248 : vector<8x128xf32>
    %c0_122 = arith.constant 0 : index
    %c5 = arith.constant 5 : index
    %c0_123 = arith.constant 0 : index
    %c0_124 = arith.constant 0 : index
    %250 = vector.load %arg6[%c0_122, %c5, %c0_123, %c0_124] : memref<1x8x8x128xf32, #tpu.memory_space<vmem>>, vector<1x1x8x128xf32>
    %251 = vector.shape_cast %250 : vector<1x1x8x128xf32> to vector<8x128xf32>
    %252 = vector.shape_cast %249 : vector<8x128xf32> to vector<1x1x8x128xf32>
    tpu.vector_store %arg6[%c0_122, %c5, %c0_123, %c0_124], %252 {strides = array<i32>} : memref<1x8x8x128xf32, #tpu.memory_space<vmem>>, vector<1x1x8x128xf32>,
    %c48 = arith.constant 48 : index
    %c0_125 = arith.constant 0 : index
    %253 = vector.load %arg7[%c48, %c0_125] : memref<64x384xf32, #tpu.memory_space<vmem>>, vector<8x384xf32>
    %c1_i32_126 = arith.constant 1 : i32
    %254 = tpu.dynamic_rotate %249 by %c1_i32_126 dim 0 : vector<8x128xf32>, i32 -> vector<8x128xf32>
    %cst_127 = arith.constant 0.000000e+00 : f32
    %255 = vector.broadcast %cst_127 : f32 to vector<8x128xf32>
    %256 = arith.select %26, %254, %255 : vector<8x128xi1>, vector<8x128xf32>
    %c7_i32_128 = arith.constant 7 : i32
    %257 = tpu.dynamic_rotate %249 by %c7_i32_128 dim 0 : vector<8x128xf32>, i32 -> vector<8x128xf32>
    %cst_129 = arith.constant 0.000000e+00 : f32
    %258 = vector.broadcast %cst_129 : f32 to vector<8x128xf32>
    %259 = arith.select %35, %257, %258 : vector<8x128xi1>, vector<8x128xf32>
    %260 = tpu.concatenate %256, %249, %259 in 1 : vector<8x128xf32>, vector<8x128xf32>, vector<8x128xf32> -> vector<8x384xf32>
    %261 = vector.extract_strided_slice %253 {offsets = [0, 0], sizes = [8, 256], strides = [1, 1]} : vector<8x384xf32> to vector<8x256xf32>
    %262 = arith.truncf %260 : vector<8x384xf32> to vector<8x384xbf16>
    %c0_130 = arith.constant 0 : index
    %c0_131 = arith.constant 0 : index
    %263 = vector.load %arg4[%c0_130, %c0_131] : memref<384x256xbf16, #tpu.memory_space<vmem>>, vector<384x256xbf16>
    %cst_132 = arith.constant dense<0.000000e+00> : vector<8x256xf32>
    %264 = tpu.matmul %262, %263, %cst_132 {dimension_numbers = #tpu.dot_dimension_numbers<[1], [0], [0], [1], [0, 0, 1, 1], [], []>} : vector<8x384xbf16>, vector<384x256xbf16>, vector<8x256xf32> -> vector<8x256xf32>
    %265 = arith.addf %261, %264 : vector<8x256xf32>
    %266 = arith.negf %265 : vector<8x256xf32>
    %267 = math.exp %266 : vector<8x256xf32>
    %cst_133 = arith.constant 1.000000e+00 : f32
    %268 = vector.broadcast %cst_133 : f32 to vector<8x256xf32>
    %269 = arith.addf %268, %267 : vector<8x256xf32>
    %270 = arith.divf %268, %269 : vector<8x256xf32>
    %271 = vector.extract_strided_slice %270 {offsets = [0, 0], sizes = [8, 128], strides = [1, 1]} : vector<8x256xf32> to vector<8x128xf32>
    %272 = vector.extract_strided_slice %270 {offsets = [0, 128], sizes = [8, 128], strides = [1, 1]} : vector<8x256xf32> to vector<8x128xf32>
    %c1_i32_134 = arith.constant 1 : i32
    %273 = tpu.dynamic_rotate %272 by %c1_i32_134 dim 0 : vector<8x128xf32>, i32 -> vector<8x128xf32>
    %c7_i32_135 = arith.constant 7 : i32
    %274 = tpu.dynamic_rotate %272 by %c7_i32_135 dim 0 : vector<8x128xf32>, i32 -> vector<8x128xf32>
    %275 = tpu.concatenate %273, %272, %274 in 1 : vector<8x128xf32>, vector<8x128xf32>, vector<8x128xf32> -> vector<8x384xf32>
    %276 = arith.mulf %275, %260 : vector<8x384xf32>
    %277 = vector.extract_strided_slice %253 {offsets = [0, 256], sizes = [8, 128], strides = [1, 1]} : vector<8x384xf32> to vector<8x128xf32>
    %278 = arith.truncf %276 : vector<8x384xf32> to vector<8x384xbf16>
    %c0_136 = arith.constant 0 : index
    %c0_137 = arith.constant 0 : index
    %279 = vector.load %arg5[%c0_136, %c0_137] : memref<384x128xbf16, #tpu.memory_space<vmem>>, vector<384x128xbf16>
    %cst_138 = arith.constant dense<0.000000e+00> : vector<8x128xf32>
    %280 = tpu.matmul %278, %279, %cst_138 {dimension_numbers = #tpu.dot_dimension_numbers<[1], [0], [0], [1], [0, 0, 1, 1], [], []>} : vector<8x384xbf16>, vector<384x128xbf16>, vector<8x128xf32> -> vector<8x128xf32>
    %281 = arith.addf %277, %280 : vector<8x128xf32>
    %282 = math.tanh %281 : vector<8x128xf32>
    %283 = arith.subf %282, %249 : vector<8x128xf32>
    %284 = arith.mulf %271, %283 : vector<8x128xf32>
    %285 = arith.addf %249, %284 : vector<8x128xf32>
    %c0_139 = arith.constant 0 : index
    %c6 = arith.constant 6 : index
    %c0_140 = arith.constant 0 : index
    %c0_141 = arith.constant 0 : index
    %286 = vector.load %arg6[%c0_139, %c6, %c0_140, %c0_141] : memref<1x8x8x128xf32, #tpu.memory_space<vmem>>, vector<1x1x8x128xf32>
    %287 = vector.shape_cast %286 : vector<1x1x8x128xf32> to vector<8x128xf32>
    %288 = vector.shape_cast %285 : vector<8x128xf32> to vector<1x1x8x128xf32>
    tpu.vector_store %arg6[%c0_139, %c6, %c0_140, %c0_141], %288 {strides = array<i32>} : memref<1x8x8x128xf32, #tpu.memory_space<vmem>>, vector<1x1x8x128xf32>,
    %c56 = arith.constant 56 : index
    %c0_142 = arith.constant 0 : index
    %289 = vector.load %arg7[%c56, %c0_142] : memref<64x384xf32, #tpu.memory_space<vmem>>, vector<8x384xf32>
    %c1_i32_143 = arith.constant 1 : i32
    %290 = tpu.dynamic_rotate %285 by %c1_i32_143 dim 0 : vector<8x128xf32>, i32 -> vector<8x128xf32>
    %cst_144 = arith.constant 0.000000e+00 : f32
    %291 = vector.broadcast %cst_144 : f32 to vector<8x128xf32>
    %292 = arith.select %26, %290, %291 : vector<8x128xi1>, vector<8x128xf32>
    %c7_i32_145 = arith.constant 7 : i32
    %293 = tpu.dynamic_rotate %285 by %c7_i32_145 dim 0 : vector<8x128xf32>, i32 -> vector<8x128xf32>
    %cst_146 = arith.constant 0.000000e+00 : f32
    %294 = vector.broadcast %cst_146 : f32 to vector<8x128xf32>
    %295 = arith.select %35, %293, %294 : vector<8x128xi1>, vector<8x128xf32>
    %296 = tpu.concatenate %292, %285, %295 in 1 : vector<8x128xf32>, vector<8x128xf32>, vector<8x128xf32> -> vector<8x384xf32>
    %297 = vector.extract_strided_slice %289 {offsets = [0, 0], sizes = [8, 256], strides = [1, 1]} : vector<8x384xf32> to vector<8x256xf32>
    %298 = arith.truncf %296 : vector<8x384xf32> to vector<8x384xbf16>
    %c0_147 = arith.constant 0 : index
    %c0_148 = arith.constant 0 : index
    %299 = vector.load %arg4[%c0_147, %c0_148] : memref<384x256xbf16, #tpu.memory_space<vmem>>, vector<384x256xbf16>
    %cst_149 = arith.constant dense<0.000000e+00> : vector<8x256xf32>
    %300 = tpu.matmul %298, %299, %cst_149 {dimension_numbers = #tpu.dot_dimension_numbers<[1], [0], [0], [1], [0, 0, 1, 1], [], []>} : vector<8x384xbf16>, vector<384x256xbf16>, vector<8x256xf32> -> vector<8x256xf32>
    %301 = arith.addf %297, %300 : vector<8x256xf32>
    %302 = arith.negf %301 : vector<8x256xf32>
    %303 = math.exp %302 : vector<8x256xf32>
    %cst_150 = arith.constant 1.000000e+00 : f32
    %304 = vector.broadcast %cst_150 : f32 to vector<8x256xf32>
    %305 = arith.addf %304, %303 : vector<8x256xf32>
    %306 = arith.divf %304, %305 : vector<8x256xf32>
    %307 = vector.extract_strided_slice %306 {offsets = [0, 0], sizes = [8, 128], strides = [1, 1]} : vector<8x256xf32> to vector<8x128xf32>
    %308 = vector.extract_strided_slice %306 {offsets = [0, 128], sizes = [8, 128], strides = [1, 1]} : vector<8x256xf32> to vector<8x128xf32>
    %c1_i32_151 = arith.constant 1 : i32
    %309 = tpu.dynamic_rotate %308 by %c1_i32_151 dim 0 : vector<8x128xf32>, i32 -> vector<8x128xf32>
    %c7_i32_152 = arith.constant 7 : i32
    %310 = tpu.dynamic_rotate %308 by %c7_i32_152 dim 0 : vector<8x128xf32>, i32 -> vector<8x128xf32>
    %311 = tpu.concatenate %309, %308, %310 in 1 : vector<8x128xf32>, vector<8x128xf32>, vector<8x128xf32> -> vector<8x384xf32>
    %312 = arith.mulf %311, %296 : vector<8x384xf32>
    %313 = vector.extract_strided_slice %289 {offsets = [0, 256], sizes = [8, 128], strides = [1, 1]} : vector<8x384xf32> to vector<8x128xf32>
    %314 = arith.truncf %312 : vector<8x384xf32> to vector<8x384xbf16>
    %c0_153 = arith.constant 0 : index
    %c0_154 = arith.constant 0 : index
    %315 = vector.load %arg5[%c0_153, %c0_154] : memref<384x128xbf16, #tpu.memory_space<vmem>>, vector<384x128xbf16>
    %cst_155 = arith.constant dense<0.000000e+00> : vector<8x128xf32>
    %316 = tpu.matmul %314, %315, %cst_155 {dimension_numbers = #tpu.dot_dimension_numbers<[1], [0], [0], [1], [0, 0, 1, 1], [], []>} : vector<8x384xbf16>, vector<384x128xbf16>, vector<8x128xf32> -> vector<8x128xf32>
    %317 = arith.addf %313, %316 : vector<8x128xf32>
    %318 = math.tanh %317 : vector<8x128xf32>
    %319 = arith.subf %318, %285 : vector<8x128xf32>
    %320 = arith.mulf %307, %319 : vector<8x128xf32>
    %321 = arith.addf %285, %320 : vector<8x128xf32>
    %c0_156 = arith.constant 0 : index
    %c7 = arith.constant 7 : index
    %c0_157 = arith.constant 0 : index
    %c0_158 = arith.constant 0 : index
    %322 = vector.load %arg6[%c0_156, %c7, %c0_157, %c0_158] : memref<1x8x8x128xf32, #tpu.memory_space<vmem>>, vector<1x1x8x128xf32>
    %323 = vector.shape_cast %322 : vector<1x1x8x128xf32> to vector<8x128xf32>
    %324 = vector.shape_cast %321 : vector<8x128xf32> to vector<1x1x8x128xf32>
    tpu.vector_store %arg6[%c0_156, %c7, %c0_157, %c0_158], %324 {strides = array<i32>} : memref<1x8x8x128xf32, #tpu.memory_space<vmem>>, vector<1x1x8x128xf32>,
    return
  }
  func.func @transform_0(%arg0: i32) -> (i32, i32, i32, i32) {
    %c0_i32 = arith.constant 0 : i32
    %c0_i32_0 = arith.constant 0 : i32
    %c0_i32_1 = arith.constant 0 : i32
    %c0_i32_2 = arith.constant 0 : i32
    return %arg0, %c0_i32, %c0_i32_0, %c0_i32_1 : i32, i32, i32, i32
  }
  func.func @transform_1(%arg0: i32) -> (i32, i32) {
    %c0_i32 = arith.constant 0 : i32
    %c0_i32_0 = arith.constant 0 : i32
    %c0_i32_1 = arith.constant 0 : i32
    return %c0_i32, %c0_i32_0 : i32, i32
  }
  func.func @transform_2(%arg0: i32) -> (i32, i32) {
    %c0_i32 = arith.constant 0 : i32
    %c0_i32_0 = arith.constant 0 : i32
    %c0_i32_1 = arith.constant 0 : i32
    return %c0_i32, %c0_i32_0 : i32, i32
  }
  func.func @transform_3(%arg0: i32) -> (i32, i32) {
    %c0_i32 = arith.constant 0 : i32
    %c0_i32_0 = arith.constant 0 : i32
    %c0_i32_1 = arith.constant 0 : i32
    return %c0_i32, %c0_i32_0 : i32, i32
  }
  func.func @transform_4(%arg0: i32) -> (i32, i32) {
    %c0_i32 = arith.constant 0 : i32
    %c0_i32_0 = arith.constant 0 : i32
    %c0_i32_1 = arith.constant 0 : i32
    return %c0_i32, %c0_i32_0 : i32, i32
  }
  func.func @transform_5(%arg0: i32) -> (i32, i32, i32, i32) {
    %c0_i32 = arith.constant 0 : i32
    %c0_i32_0 = arith.constant 0 : i32
    %c0_i32_1 = arith.constant 0 : i32
    %c0_i32_2 = arith.constant 0 : i32
    return %arg0, %c0_i32, %c0_i32_0, %c0_i32_1 : i32, i32, i32, i32
  }
}

</mosaic_0001>

<bundles_post_ra>
// kernel: tpu_custom_call.1
= control target key start
LH: loop header
LB: loop body
LE: loop exit
PB: predicated region body
PF: predicated region fallthrough
CT: control target
= control target key end

     0   :  { %10 = vsyncpa [#allocation4], 0  ;;  %s12420_s0 = inlined_call_operand.vmem [shape: f32[2,8,10,32], index: 0, kind: input, shape index: {}]   ;;  %s12421_s1 = inlined_call_operand.hbm [shape: bf16[96,384], index: 1, kind: input, shape index: {}]   ;;  %s12422_s2 = inlined_call_operand.vmem [shape: f32[1,384], index: 2, kind: input, shape index: {}]   ;;  %s12423_s3 = inlined_call_operand.vmem [shape: bf16[384,256], index: 3, kind: input, shape index: {}]   ;;  %s12424_s4 = inlined_call_operand.hbm [shape: bf16[384,128], index: 4, kind: input, shape index: {}]   ;;  %s12425_s5 = inlined_call_operand.hbm [shape: f32[2,8,8,128], index: 5, kind: output, shape index: {}]  }
   0x1   :  { %11 = vsyncpa [#allocation7], 0 }
   0x2   :  { %12 = vsyncpa [#allocation5], 0 }
   0x3   :  { %14 = vsyncpa [#allocation5 + $0x1], 0  ;;  %s9491_s18 = smov 0   ;;  %s9493_s19 = smov 0  }
   0x4   :  { %s9495_s20 = smov 0   ;;  %s9497_s21 = smov 0  }
   0x5 LB: > { %s9512_s22 = sadd.s32 4294967295, %s9448_s21   ;;  %s6022_s23 = sadd.s32 4294967294, %s9448_s21   ;;  %s9448_s21 = sphi %s9497_s21, %s12436_s21   ;;  %s9444_s20 = sphi %s9495_s20, %s12435_s20   ;;  %s9440_s19 = sphi %s9493_s19, %s12434_s19   ;;  %s9436_s18 = sphi %s9491_s18, %s12433_s18  }
   0x6   : > { %s9516_s24 = sadd.s32 1, %s9448_s21   ;;  %s137_s25 = sadd.s32 1, %s9444_s20 }
   0x7   : > { %s134_s26 = ssub.s32 %s9448_s21, %s9516_s24  ;;  %p147_p0 = scmp.ne.s32.totalorder %s9444_s20, %s9440_s19 }
   0x8   : > { %p135_p1 = scmp.eq.s32.totalorder %s134_s26, 0  ;;  %p148_p2 = scmp.eq.s32.totalorder %s9512_s22, 1 }
   0x9   : > { %p153_p3 = scmp.ne.s32.totalorder %s9440_s19, %s9436_s18  ;;  %p154_p4 = scmp.eq.s32.totalorder %s6022_s23, 1 }
   0xa   : > { %s9527_s27 = scalar_select %p135_p1, %s9444_s20, %s137_s25  }
   0xb   : > { %p9529_p5 = por %p148_p2, %p147_p0  ;;  %p9533_p6 = por %p154_p4, %p153_p3 }
   0xc   : > { %p6023_p7 = scmp.ge.s32.totalorder %s9448_s21, 1  ;;  %p161_p8 = scmp.lt.s32.totalorder %s9448_s21, 3 }
   0xd   : > { %p9150_p9 = scmp.eq.s32.totalorder %s9512_s22, 0  ;;  %s172_s8 = sshll.u32 %s12421_s1, 4  ;;  %s173_s8 = int_to_ptr.hbm [resolvable:$true] %s172_s8 }
   0xe   : > { %p9540_p10 = pnand %p6023_p7, %p161_p8  ;;  %s9450_s9 = smov [#allocation3]  }
   0xf   : > { %s174_s10 = sshll.u32 %s9450_s9, 4  ;;  %s192_s13 = sshll.u32 %s12424_s4, 4  ;;  %s175_s10 = int_to_ptr.vmem [resolvable:$true] %s174_s10  ;;  %s193_s13 = int_to_ptr.hbm [resolvable:$true] %s192_s13 }
  0x10   : > { %p9139_p11 = pneg %p9540_p10  ;;  %s9451_s14 = smov 192  }
  0x11   : > { %s9452_s15 = smov 12   ;;  %s9453_s16 = smov [#allocation6]  }
  0x12   : > { %p9140_p12 = pnand %p9150_p9, %p9139_p11  ;;  %s194_s17 = sshll.u32 %s9453_s16, 4  ;;  %s195_s17 = int_to_ptr.vmem [resolvable:$true] %s194_s17 }
  0x13   : > { %s9454_s23 = smov 64   ;;  %s9455_s25 = smov 4  }
  0x14   : > { %9142 = dma.hbm_to_vmem [thread:$0]  (!%p9140_p12), %s173_s8, 2304, %s175_s10, [#allocation4], %s9451_s14, %s9451_s14, %s9452_s15  }
  0x15   : > { %9145 = dma.hbm_to_vmem [thread:$0]  (!%p9140_p12), %s193_s13, 3072, %s195_s17, [#allocation7], %s9454_s23, %s9454_s23, %s9455_s25  }
  0x16   : > { %218 = sbr.rel (%p9540_p10) target bundleno = 2928 (0xb70), region = 40 }
  0x1b   : > { %9423 = dma.done.wait (%p9150_p9), [#allocation4], 2304  }
  0x1c   : > { %9425 = vsyncadd (%p9150_p9), [#allocation4], 4294964992 }
  0x1d   : > { %9427 = dma.done.wait (%p9150_p9), [#allocation7], 3072  }
  0x1e   : > { %9429 = vsyncadd (%p9150_p9), [#allocation7], 4294964224  ;;  %p252_p13 = scmp.lt.s32.totalorder %s9512_s22, 1  ;;  %s9456_s9 = smov 32   ;;  %v6175_v15 = vld [vmem:[%s12423_s3 + $0x70] sm:$0xf] }
  0x1f   : > { %v8567_v16 = vld [vmem:[%s12423_s3 + $0x74] sm:$0xf0]  ;;  %v6167_v18 = vld [vmem:[%s12423_s3 + $0x60] sm:$0xf]  ;;  %v8565_v19 = vld [vmem:[%s12423_s3 + $0x64] sm:$0xf0] }
  0x20   : > { %s253_s26 = scalar_select %p252_p13, %s9512_s22, 1  ;;  %v6176_v17 = vor.u32 %v8567_v16, %v6175_v15  ;;  %v6095_v20 = vld [vmem:[#allocation3 + $0x78] sm:$0xf]  ;;  %v8550_v22 = vld [vmem:[#allocation3 + $0x80] sm:$0xf0]  ;;  %v6168_v26 = vor.u32 %v8565_v19, %v6167_v18  ;;  %vm346_vm0 = vcmask 261120  }
  0x21   : > { %v8549_v23 = vld [vmem:[#allocation3 + $0x7c] sm:$0xf]  ;;  %v6097_v24 = vld [vmem:[#allocation3 + $0x84] sm:$0xf0]  ;;  %v6096_v27 = vor.u32 %v8550_v22, %v6095_v20  ;;  %v6103_v29 = vld [vmem:[#allocation3 + $0x80] sm:$0xf] }
  0x22   : > { %s8533_s6 = sshll.u32 %s253_s26, 7  ;;  %926 = vmatpush.bf16.msra.mxu3 %v6176_v17  ;;  %v6100_v28 = vor.u32 %v8549_v23, %v6097_v24  ;;  %v8551_v30 = vld [vmem:[#allocation3 + $0x88] sm:$0xf0]  ;;  %v6159_v31 = vld [vmem:[%s12423_s3 + $0x50] sm:$0xf]  ;;  %s9457_s7 = smov 64  }
  0x23   : > { %s9569_s8 = scalar_lea.vmem %s12420_s0, %s8533_s6  ;;  %v6104_v32 = vor.u32 %v8551_v30, %v6103_v29  ;;  %v8563_v33 = vld [vmem:[%s12423_s3 + $0x54] sm:$0xf0]  ;;  %v6083_v34 = vld [vmem:[#allocation3 + $0x60] sm:$0xf]  ;;  %v8547_v35 = vld [vmem:[#allocation3 + $0x68] sm:$0xf0]  ;;  %511 = vmatpush.bf16.msra.mxu0 %v6096_v27 }
  0x24   : > { %v266_v0 = vld [vmem:[%s9569_s8 + $0x1] sm:$0xff]  ;;  %v267_v1 = vld [vmem:[%s9569_s8 + $0x11] sm:$0xff]  ;;  %540 = vmatpush.bf16.msra.mxu1 %v6100_v28  ;;  %v6084_v39 = vor.u32 %v8547_v35, %v6083_v34  ;;  %v6160_v47 = vor.u32 %v8563_v33, %v6159_v31  ;;  %v8543_v51 = vld [vmem:[#allocation3 + $0x4c] sm:$0xf]  ;;  %vm355_vm1 = vcmask 523264   ;;  %vm496_vm2 = vcmask 785408  }
  0x25   : > { %v9198_v2 = vpack.i.bf16 %v267_v1, %v266_v0  ;;  %v268_v3 = vld [vmem:[%s9569_s8 + $0x21] sm:$0xff]  ;;  %v269_v4 = vld [vmem:[%s9569_s8 + $0x31] sm:$0xff]  ;;  %569 = vmatpush.bf16.msra.mxu2 %v6104_v32  ;;  %v8545_v57 = vld [vmem:[#allocation3 + $0x58] sm:$0xf0]  ;;  %s249_s10 = sand.u32 1, %s9440_s19   ;;  %s9128_s17 = sshll.u32 %s9512_s22, 6 }
  0x26   : > { %v9208_v5 = vpack.i.bf16 %v269_v4, %v268_v3  ;;  %v270_v6 = vld [vmem:[%s9569_s8 + $0x41] sm:$0xff]  ;;  %v271_v8 = vld [vmem:[%s9569_s8 + $0x51] sm:$0xff]  ;;  %927 = vmatpush.bf16.msra.mxu3 %v6168_v26  ;;  %v8541_v3 = vld [vmem:[#allocation3 + $0x38] sm:$0xf0]  ;;  %s6030_s11 = sshll.u32 %s249_s10, 6  ;;  %s5934_s25 = scalar_lea.hbm %s12425_s5, %s9128_s17 }
  0x27   : > { %9199 = vrot.lane.b32.xlu0 %v9198_v2, %s9456_s9  ;;  %v274_v7 = vld [vmem:[%s9569_s8 + $0x2] sm:$0xff]  ;;  %v275_v9 = vld [vmem:[%s9569_s8 + $0x12] sm:$0xff]  ;;  %v9218_v12 = vpack.i.bf16 %v271_v8, %v270_v6  ;;  %512 = vmatpush.bf16.msra.mxu0 %v6084_v39  ;;  %v8537_v17 = vld [vmem:[#allocation3 + $0x1c] sm:$0xf]  ;;  %s10316_s12 = scalar_lea.vmem [#allocation8], %s6030_s11  ;;  %s5937_s6 = sshll.u32 %s5934_s25, 4  ;;  %s5938_s6 = int_to_ptr.hbm [resolvable:$true] %s5937_s6 }
  0x28   : > { %9209 = vrot.lane.b32.xlu1 %v9208_v5, %s9456_s9  ;;  %v276_v10 = vld [vmem:[%s9569_s8 + $0x22] sm:$0xff]  ;;  %v277_v11 = vld [vmem:[%s9569_s8 + $0x32] sm:$0xff]  ;;  %v9203_v21 = vpack.i.bf16 %v275_v9, %v274_v7  ;;  %v8535_v27 = vld [vmem:[#allocation3 + $0x8] sm:$0xf0]  ;;  %s5935_s26 = sshll.u32 %s10316_s12, 4  ;;  %s5923_s22 = scalar_lea.sflag [#allocation5], %s249_s10  ;;  %s5936_s26 = int_to_ptr.vmem [resolvable:$true] %s5935_s26 }
  0x29   : > { %v278_v13 = vld [vmem:[%s9569_s8 + $0x42] sm:$0xff]  ;;  %v279_v14 = vld [vmem:[%s9569_s8 + $0x52] sm:$0xff]  ;;  %9219 = vrot.lane.b32.xlu2 %v9218_v12, %s9456_s9  ;;  %v9213_v25 = vpack.i.bf16 %v277_v11, %v276_v10  ;;  %s9398_s13 = scalar_lea.hbm %s12425_s5, 128 }
  0x2a   : > { %v272_v36 = vld [vmem:[%s9569_s8 + $0x61] sm:$0xff]  ;;  %v273_v37 = vld [vmem:[%s9569_s8 + $0x71] sm:$0xff]  ;;  %v9223_v38 = vpack.i.bf16 %v279_v14, %v278_v13  ;;  %928 = vmatpush.bf16.msra.mxu3 %v6160_v47 }
  0x2b   : > { %v8546_v40 = vld [vmem:[#allocation3 + $0x64] sm:$0xf]  ;;  %v6085_v41 = vld [vmem:[#allocation3 + $0x6c] sm:$0xf0]  ;;  %v6091_v42 = vld [vmem:[#allocation3 + $0x68] sm:$0xf]  ;;  %v9228_v58 = vpack.i.bf16 %v273_v37, %v272_v36 }
  0x2c   : > { %v280_v43 = vld [vmem:[%s9569_s8 + $0x62] sm:$0xff]  ;;  %v281_v44 = vld [vmem:[%s9569_s8 + $0x72] sm:$0xff]  ;;  %v6088_v45 = vor.u32 %v8546_v40, %v6085_v41 }
  0x2d   : > { %v8548_v46 = vld [vmem:[#allocation3 + $0x70] sm:$0xf0]  ;;  %v6071_v49 = vld [vmem:[#allocation3 + $0x48] sm:$0xf]  ;;  %v6151_v52 = vld [vmem:[%s12423_s3 + $0x40] sm:$0xf]  ;;  %v9233_v60 = vpack.i.bf16 %v281_v44, %v280_v43 }
  0x2e   : > { %v6092_v48 = vor.u32 %v8548_v46, %v6091_v42  ;;  %v8544_v50 = vld [vmem:[#allocation3 + $0x50] sm:$0xf0]  ;;  %v8561_v53 = vld [vmem:[%s12423_s3 + $0x44] sm:$0xf0]  ;;  %v6073_v54 = vld [vmem:[#allocation3 + $0x54] sm:$0xf0]  ;;  %541 = vmatpush.bf16.msra.mxu1 %v6088_v45 }
  0x2f   : > { %9204 = vrot.lane.b32.xlu0 %v9203_v21, %s9457_s7  ;;  %v6072_v55 = vor.u32 %v8544_v50, %v6071_v49  ;;  %v6079_v56 = vld [vmem:[#allocation3 + $0x50] sm:$0xf]  ;;  %v6076_v59 = vor.u32 %v8543_v51, %v6073_v54  ;;  %v6152_v61 = vor.u32 %v8561_v53, %v6151_v52  ;;  %v8559_v0 = vld [vmem:[%s12423_s3 + $0x34] sm:$0xf0]  ;;  %v8540_v4 = vld [vmem:[#allocation3 + $0x34] sm:$0xf] }
  0x30   : > { %9214 = vrot.lane.b32.xlu1 %v9213_v25, %s9457_s7  ;;  %570 = vmatpush.bf16.msra.mxu2 %v6092_v48  ;;  %v6080_v62 = vor.u32 %v8545_v57, %v6079_v56  ;;  %v6143_v63 = vld [vmem:[%s12423_s3 + $0x30] sm:$0xf]  ;;  %v6061_v6 = vld [vmem:[#allocation3 + $0x3c] sm:$0xf0]  ;;  %v6067_v8 = vld [vmem:[#allocation3 + $0x38] sm:$0xf] }
  0x31   : > { %9224 = vrot.lane.b32.xlu2 %v9223_v38, %s9457_s7  ;;  %513 = vmatpush.bf16.msra.mxu0 %v6072_v55  ;;  %v6144_v1 = vor.u32 %v8559_v0, %v6143_v63  ;;  %v6059_v2 = vld [vmem:[#allocation3 + $0x30] sm:$0xf]  ;;  %v6064_v7 = vor.u32 %v8540_v4, %v6061_v6  ;;  %v8542_v9 = vld [vmem:[#allocation3 + $0x40] sm:$0xf0]  ;;  %v6135_v10 = vld [vmem:[%s12423_s3 + $0x20] sm:$0xf] }
  0x32   : > { %542 = vmatpush.bf16.msra.mxu1 %v6076_v59  ;;  %929 = vmatpush.bf16.msra.mxu3 %v6152_v61  ;;  %v6060_v5 = vor.u32 %v8541_v3, %v6059_v2  ;;  %v6068_v11 = vor.u32 %v8542_v9, %v6067_v8  ;;  %v8557_v12 = vld [vmem:[%s12423_s3 + $0x24] sm:$0xf0]  ;;  %v6047_v13 = vld [vmem:[#allocation3 + $0x18] sm:$0xf]  ;;  %v8538_v14 = vld [vmem:[#allocation3 + $0x20] sm:$0xf0] }
  0x33   : > { %v6136_v15 = vor.u32 %v8557_v12, %v6135_v10  ;;  %v6048_v16 = vor.u32 %v8538_v14, %v6047_v13  ;;  %v6049_v18 = vld [vmem:[#allocation3 + $0x24] sm:$0xf0]  ;;  %v6055_v19 = vld [vmem:[#allocation3 + $0x20] sm:$0xf]  ;;  %v8539_v21 = vld [vmem:[#allocation3 + $0x28] sm:$0xf0] }
  0x34   : > { %571 = vmatpush.bf16.msra.mxu2 %v6080_v62  ;;  %v6052_v20 = vor.u32 %v8537_v17, %v6049_v18  ;;  %v6127_v22 = vld [vmem:[%s12423_s3 + $0x10] sm:$0xf]  ;;  %v8555_v23 = vld [vmem:[%s12423_s3 + $0x14] sm:$0xf0]  ;;  %v6056_v24 = vor.u32 %v8539_v21, %v6055_v19  ;;  %v6035_v26 = vld [vmem:[#allocation3] sm:$0xf] }
  0x35   : > { %514 = vmatpush.bf16.msra.mxu0 %v6060_v5  ;;  %v6128_v25 = vor.u32 %v8555_v23, %v6127_v22  ;;  %v8534_v28 = vld [vmem:[#allocation3 + $0x4] sm:$0xf]  ;;  %v6036_v29 = vor.u32 %v8535_v27, %v6035_v26  ;;  %v6037_v30 = vld [vmem:[#allocation3 + $0xc] sm:$0xf0]  ;;  %v6043_v32 = vld [vmem:[#allocation3 + $0x8] sm:$0xf] }
  0x36   : > { %930 = vmatpush.bf16.msra.mxu3 %v6144_v1  ;;  %543 = vmatpush.bf16.msra.mxu1 %v6064_v7  ;;  %v6040_v31 = vor.u32 %v8534_v28, %v6037_v30  ;;  %v8536_v33 = vld [vmem:[#allocation3 + $0x10] sm:$0xf0]  ;;  %v6119_v34 = vld [vmem:[%s12423_s3] sm:$0xf]  ;;  %v8553_v36 = vld [vmem:[%s12423_s3 + $0x4] sm:$0xf0] }
  0x37   : > { %9229 = vrot.lane.b32.xlu0 %v9228_v58, %s9456_s9  ;;  %v6044_v35 = vor.u32 %v8536_v33, %v6043_v32  ;;  %v6239_v37 = vld [vmem:[%s12423_s3 + $0xf0] sm:$0xf]  ;;  %v8583_v38 = vld [vmem:[%s12423_s3 + $0xf4] sm:$0xf0]  ;;  %v6120_v39 = vor.u32 %v8553_v36, %v6119_v34  ;;  %v6231_v41 = vld [vmem:[%s12423_s3 + $0xe0] sm:$0xf] }
  0x38   : > { %9234 = vrot.lane.b32.xlu1 %v9233_v60, %s9457_s7  ;;  %572 = vmatpush.bf16.msra.mxu2 %v6068_v11  ;;  %v6240_v40 = vor.u32 %v8583_v38, %v6239_v37  ;;  %v8581_v42 = vld [vmem:[%s12423_s3 + $0xe4] sm:$0xf0]  ;;  %v8582_v43 = vld [vmem:[%s12423_s3 + $0xf4] sm:$0xf]  ;;  %v6241_v44 = vld [vmem:[%s12423_s3 + $0xf8] sm:$0xf0] }
  0x39   : > { %515 = vmatpush.bf16.msra.mxu0 %v6048_v16  ;;  %v6232_v45 = vor.u32 %v8581_v42, %v6231_v41  ;;  %v6223_v46 = vld [vmem:[%s12423_s3 + $0xd0] sm:$0xf]  ;;  %v6244_v47 = vor.u32 %v8582_v43, %v6241_v44  ;;  %v8579_v48 = vld [vmem:[%s12423_s3 + $0xd4] sm:$0xf0]  ;;  %v8566_v49 = vld [vmem:[%s12423_s3 + $0x74] sm:$0xf] }
  0x3a   : > { %931 = vmatpush.bf16.msra.mxu3 %v6136_v15  ;;  %544 = vmatpush.bf16.msra.mxu1 %v6052_v20  ;;  %v6177_v50 = vld [vmem:[%s12423_s3 + $0x78] sm:$0xf0]  ;;  %v8580_v52 = vld [vmem:[%s12423_s3 + $0xe4] sm:$0xf]  ;;  %v6233_v53 = vld [vmem:[%s12423_s3 + $0xe8] sm:$0xf0]  ;;  %v6224_v55 = vor.u32 %v8579_v48, %v6223_v46 }
  0x3b   : > { %v6180_v51 = vor.u32 %v8566_v49, %v6177_v50  ;;  %v6236_v54 = vor.u32 %v8580_v52, %v6233_v53  ;;  %v8564_v56 = vld [vmem:[%s12423_s3 + $0x64] sm:$0xf]  ;;  %v6215_v57 = vld [vmem:[%s12423_s3 + $0xc0] sm:$0xf]  ;;  %v8577_v58 = vld [vmem:[%s12423_s3 + $0xc4] sm:$0xf0] }
  0x3c   : > { %573 = vmatpush.bf16.msra.mxu2 %v6056_v24  ;;  %v6169_v59 = vld [vmem:[%s12423_s3 + $0x68] sm:$0xf0]  ;;  %v6216_v61 = vor.u32 %v8577_v58, %v6215_v57  ;;  %v6207_v62 = vld [vmem:[%s12423_s3 + $0xb0] sm:$0xf]  ;;  %v8575_v63 = vld [vmem:[%s12423_s3 + $0xb4] sm:$0xf0] }
  0x3d   : > { %516 = vmatpush.bf16.msra.mxu0 %v6036_v29  ;;  %v6172_v60 = vor.u32 %v8564_v56, %v6169_v59  ;;  %v6208_v0 = vor.u32 %v8575_v63, %v6207_v62  ;;  %v6199_v1 = vld [vmem:[%s12423_s3 + $0xa0] sm:$0xf]  ;;  %v8573_v2 = vld [vmem:[%s12423_s3 + $0xa4] sm:$0xf0]  ;;  %v8578_v3 = vld [vmem:[%s12423_s3 + $0xd4] sm:$0xf] }
  0x3e   : > { %932 = vmatpush.bf16.msra.mxu3 %v6128_v25  ;;  %545 = vmatpush.bf16.msra.mxu1 %v6040_v31  ;;  %v6225_v4 = vld [vmem:[%s12423_s3 + $0xd8] sm:$0xf0]  ;;  %v6200_v5 = vor.u32 %v8573_v2, %v6199_v1  ;;  %v9458_v8 = vmov 0.0|0.0   ;;  %v6191_v9 = vld [vmem:[%s12423_s3 + $0x90] sm:$0xf]  ;;  %v258_v27 = vld [vmem:[%s9569_s8] sm:$0xff] }
  0x3f   : > { %v6228_v7 = vor.u32 %v8578_v3, %v6225_v4  ;;  %v8571_v10 = vld [vmem:[%s12423_s3 + $0x94] sm:$0xf0]  ;;  %v8562_v11 = vld [vmem:[%s12423_s3 + $0x54] sm:$0xf]  ;;  %v6161_v12 = vld [vmem:[%s12423_s3 + $0x58] sm:$0xf0] }
  0x40   : > { %574 = vmatpush.bf16.msra.mxu2 %v6044_v35  ;;  %v8576_v13 = vld [vmem:[%s12423_s3 + $0xc4] sm:$0xf]  ;;  %v6217_v14 = vld [vmem:[%s12423_s3 + $0xc8] sm:$0xf0]  ;;  %v6164_v15 = vor.u32 %v8562_v11, %v6161_v12  ;;  %v6192_v17 = vor.u32 %v8571_v10, %v6191_v9  ;;  %v6183_v20 = vld [vmem:[%s12423_s3 + $0x80] sm:$0xf] }
  0x41   : > { %v6220_v16 = vor.u32 %v8576_v13, %v6217_v14  ;;  %v8560_v18 = vld [vmem:[%s12423_s3 + $0x44] sm:$0xf]  ;;  %v6153_v19 = vld [vmem:[%s12423_s3 + $0x48] sm:$0xf0]  ;;  %v8569_v21 = vld [vmem:[%s12423_s3 + $0x84] sm:$0xf0] }
  0x42   : > { %933 = vmatpush.bf16.msra.mxu3 %v6120_v39  ;;  %965 = vmatpush.bf16.msrb.mxu1 %v6180_v51  ;;  %v6156_v22 = vor.u32 %v8560_v18, %v6153_v19  ;;  %v8598_v23 = vld [vmem:[%s12423_s3 + $0x174] sm:$0xf]  ;;  %v6305_v24 = vld [vmem:[%s12423_s3 + $0x178] sm:$0xf0]  ;;  %v6184_v29 = vor.u32 %v8569_v21, %v6183_v20  ;;  %v8596_v35 = vld [vmem:[%s12423_s3 + $0x164] sm:$0xf] }
  0x43   : > { %v259_v28 = vld [vmem:[%s9569_s8 + $0x10] sm:$0xff]  ;;  %v6308_v32 = vor.u32 %v8598_v23, %v6305_v24  ;;  %v6297_v36 = vld [vmem:[%s12423_s3 + $0x168] sm:$0xf0]  ;;  %v8599_v44 = vld [vmem:[%s12423_s3 + $0x174] sm:$0xf0]  ;;  %s9392_s7 = sshra.s32 %s5938_s6, 4  ;;  %s9393_s7 = int_to_ptr.hbm [resolvable:$true] %s9392_s7 }
  0x44   : > { %978 = vmatpush.bf16.msrb.mxu2 %v6244_v47  ;;  %v6300_v42 = vor.u32 %v8596_v35, %v6297_v36  ;;  %v6303_v43 = vld [vmem:[%s12423_s3 + $0x170] sm:$0xf]  ;;  %v8574_v46 = vld [vmem:[%s12423_s3 + $0xb4] sm:$0xf]  ;;  %v6209_v47 = vld [vmem:[%s12423_s3 + $0xb8] sm:$0xf0]  ;;  %p9399_p3 = scmp.lt.s32.totalorder %s9393_s7, %s12425_s5 }
  0x45   : > { %934 = vmatmul.bf16.vlgmr.msra.gmra.mxu3 %v9458_v8  ;;  %v8594_v48 = vld [vmem:[%s12423_s3 + $0x154] sm:$0xf]  ;;  %v6212_v49 = vor.u32 %v8574_v46, %v6209_v47  ;;  %v6289_v50 = vld [vmem:[%s12423_s3 + $0x158] sm:$0xf0]  ;;  %v6295_v51 = vld [vmem:[%s12423_s3 + $0x160] sm:$0xf] }
  0x46   : > { %939 = vmatpush.bf16.msrb.mxu3 %v6240_v40  ;;  %966 = vmatpush.bf16.msrb.mxu1 %v6172_v60  ;;  %v8597_v52 = vld [vmem:[%s12423_s3 + $0x164] sm:$0xf0]  ;;  %v260_v53 = vld [vmem:[%s9569_s8 + $0x20] sm:$0xff]  ;;  %v8558_v56 = vld [vmem:[%s12423_s3 + $0x34] sm:$0xf] }
  0x47   : > { %v6145_v57 = vld [vmem:[%s12423_s3 + $0x38] sm:$0xf0]  ;;  %v8592_v58 = vld [vmem:[%s12423_s3 + $0x144] sm:$0xf]  ;;  %v6281_v63 = vld [vmem:[%s12423_s3 + $0x148] sm:$0xf0] }
  0x48   : > { %979 = vmatpush.bf16.msrb.mxu2 %v6236_v54  ;;  %v6292_v54 = vor.u32 %v8594_v48, %v6289_v50  ;;  %v6148_v62 = vor.u32 %v8558_v56, %v6145_v57  ;;  %v6201_v1 = vld [vmem:[%s12423_s3 + $0xa8] sm:$0xf0]  ;;  %v261_v2 = vld [vmem:[%s9569_s8 + $0x30] sm:$0xff]  ;;  %v6273_v10 = vld [vmem:[%s12423_s3 + $0x138] sm:$0xf0] }
  0x49   : > { %v6287_v4 = vld [vmem:[%s12423_s3 + $0x150] sm:$0xf]  ;;  %v8590_v9 = vld [vmem:[%s12423_s3 + $0x134] sm:$0xf]  ;;  %v6279_v13 = vld [vmem:[%s12423_s3 + $0x140] sm:$0xf] }
  0x4a   : > { %940 = vmatpush.bf16.msrb.mxu3 %v6232_v45  ;;  %967 = vmatpush.bf16.msrb.mxu1 %v6164_v15  ;;  %v6304_v45 = vor.u32 %v8599_v44, %v6303_v43  ;;  %v8593_v14 = vld [vmem:[%s12423_s3 + $0x144] sm:$0xf0]  ;;  %v8556_v15 = vld [vmem:[%s12423_s3 + $0x24] sm:$0xf]  ;;  %v6137_v18 = vld [vmem:[%s12423_s3 + $0x28] sm:$0xf0]  ;;  %v6276_v21 = vor.u32 %v8590_v9, %v6273_v10 }
  0x4b   : > { %v6140_v19 = vor.u32 %v8556_v15, %v6137_v18  ;;  %v6257_v36 = vld [vmem:[%s12423_s3 + $0x118] sm:$0xf0]  ;;  %v8584_v44 = vld [vmem:[%s12423_s3 + $0x104] sm:$0xf] }
  0x4c   : > { %980 = vmatpush.bf16.msrb.mxu2 %v6228_v7  ;;  %952 = vmatpush.bf16.msrb.mxu0 %v6304_v45  ;;  %v6129_v43 = vld [vmem:[%s12423_s3 + $0x18] sm:$0xf0]  ;;  %v8568_v50 = vld [vmem:[%s12423_s3 + $0x84] sm:$0xf] }
  0x4e   : > { %941 = vmatpush.bf16.msrb.mxu3 %v6224_v55  ;;  %968 = vmatpush.bf16.msrb.mxu1 %v6156_v22  ;;  %v6296_v55 = vor.u32 %v8597_v52, %v6295_v51  ;;  %v6280_v22 = vor.u32 %v8593_v14, %v6279_v13  ;;  %v6185_v51 = vld [vmem:[%s12423_s3 + $0x88] sm:$0xf0]  ;;  %v263_v52 = vld [vmem:[%s9569_s8 + $0x50] sm:$0xff] }
  0x4f   : > { %v265_v13 = vld [vmem:[%s9569_s8 + $0x70] sm:$0xff] }
  0x50   : > { %981 = vmatpush.bf16.msrb.mxu2 %v6220_v16  ;;  %953 = vmatpush.bf16.msrb.mxu0 %v6296_v55  ;;  %v8587_v55 = vld [vmem:[%s12423_s3 + $0x114] sm:$0xf0] }
  0x52   : > { %942 = vmatpush.bf16.msrb.mxu3 %v6216_v61  ;;  %969 = vmatpush.bf16.msrb.mxu1 %v6148_v62  ;;  %v6247_v62 = vld [vmem:[%s12423_s3 + $0x100] sm:$0xf] }
  0x54   : > { %982 = vmatpush.bf16.msrb.mxu2 %v6212_v49  ;;  %v6249_v49 = vld [vmem:[%s12423_s3 + $0x108] sm:$0xf0] }
  0x55   : > { %v6252_v56 = vor.u32 %v8584_v44, %v6249_v49 }
  0x56   : > { %943 = vmatpush.bf16.msrb.mxu3 %v6208_v0  ;;  %v8572_v0 = vld [vmem:[%s12423_s3 + $0xa4] sm:$0xf]  ;;  %970 = vmatpush.bf16.msrb.mxu1 %v6140_v19 }
  0x57   : > { %v6204_v3 = vor.u32 %v8572_v0, %v6201_v1 }
  0x59   : > { %983 = vmatpush.bf16.msrb.mxu2 %v6204_v3 }
  0x5a   : > { %944 = vmatpush.bf16.msrb.mxu3 %v6200_v5  ;;  %v8595_v5 = vld [vmem:[%s12423_s3 + $0x154] sm:$0xf0] }
  0x5b   : > { %v6288_v7 = vor.u32 %v8595_v5, %v6287_v4 }
  0x5d   : > { %954 = vmatpush.bf16.msrb.mxu0 %v6288_v7 }
  0x5e   : > { %945 = vmatpush.bf16.msrb.mxu3 %v6192_v17 }
  0x61   : > { %955 = vmatpush.bf16.msrb.mxu0 %v6280_v22  ;;  %v392_v22 = vld [vmem:[%s12422_s2] sm:$0x7] }
  0x62   : > { %946 = vmatpush.bf16.msrb.mxu3 %v6184_v29  ;;  %v6271_v29 = vld [vmem:[%s12423_s3 + $0x130] sm:$0xf] }
  0x65   : > { %947 = vmatmul.bf16.vlgmr.msrb.gmra.mxu3 %v9458_v8 }
  0x66   : > { %991 = vmatpush.bf16.msra.mxu3 %v6308_v32  ;;  %v8570_v32 = vld [vmem:[%s12423_s3 + $0x94] sm:$0xf] }
  0x6a   : > { %992 = vmatpush.bf16.msra.mxu3 %v6300_v42  ;;  %v8554_v42 = vld [vmem:[%s12423_s3 + $0x14] sm:$0xf] }
  0x6b   : > { %v6132_v48 = vor.u32 %v8554_v42, %v6129_v43 }
  0x6d   : > { %971 = vmatpush.bf16.msrb.mxu1 %v6132_v48 }
  0x6e   : > { %993 = vmatpush.bf16.msra.mxu3 %v6292_v54  ;;  %v6255_v54 = vld [vmem:[%s12423_s3 + $0x110] sm:$0xf] }
  0x6f   : > { %v6256_v57 = vor.u32 %v8587_v55, %v6255_v54 }
  0x83   : > { %v9220_v20 = vpop.permute.xlu2 %9219 }
  0x84   : > { %v9222_v45 = vunpack.i.h.bf16 %v9220_v20  ;;  %v9221_v46 = vunpack.i.l.bf16 %v9220_v20 }
  0x8b   : > { %v9225_v47 = vpop.permute.xlu2 %9224 }
  0x99   : > { %v9200_v6 = vpop.permute.xlu0 %9199 }
  0x9a   : > { %v9202_v25 = vunpack.i.h.bf16 %v9200_v6  ;;  %v9201_v26 = vunpack.i.l.bf16 %v9200_v6  ;;  %v9748_v31 = vpop.permute.xlu1 %9209  ;;  %v6284_v6 = vor.u32 %v8592_v58, %v6281_v63  ;;  %v8552_v58 = vld [vmem:[%s12423_s3 + $0x4] sm:$0xf]  ;;  %v8585_v63 = vld [vmem:[%s12423_s3 + $0x104] sm:$0xf0] }
  0x9b   : > { %v9212_v59 = vunpack.i.h.bf16 %v9748_v31  ;;  %v9211_v60 = vunpack.i.l.bf16 %v9748_v31  ;;  %v6248_v3 = vor.u32 %v8585_v63, %v6247_v62 }
  0x9c   : > { %v347_v37 = vsel %vm346_vm0, %v258_v27, %v9201_v26  ;;  %v348_v38 = vsel %vm346_vm0, %v259_v28, %v9202_v25  ;;  %994 = vmatpush.bf16.msra.mxu3 %v6284_v6  ;;  %v8588_v25 = vld [vmem:[%s12423_s3 + $0x124] sm:$0xf]  ;;  %v6265_v26 = vld [vmem:[%s12423_s3 + $0x128] sm:$0xf0] }
  0x9d   : > { %v349_v16 = vsel %vm346_vm0, %v260_v53, %v9211_v60  ;;  %v350_v17 = vsel %vm346_vm0, %v261_v2, %v9212_v59  ;;  %v6268_v28 = vor.u32 %v8588_v25, %v6265_v26  ;;  %v6188_v53 = vor.u32 %v8568_v50, %v6185_v51  ;;  %v6121_v59 = vld [vmem:[%s12423_s3 + $0x8] sm:$0xf0] }
  0x9e   : > { %v9227_v60 = vunpack.i.h.bf16 %v9225_v47  ;;  %v6124_v0 = vor.u32 %v8552_v58, %v6121_v59  ;;  %v352_v2 = vsel %vm346_vm0, %v263_v52, %v9222_v45 }
  0xa0   : > { %995 = vmatpush.bf16.msra.mxu3 %v6276_v21  ;;  %v361_v5 = vsel %vm355_vm1, %v352_v2, %v9227_v60  ;;  %972 = vmatpush.bf16.msrb.mxu1 %v6124_v0  ;;  %v8607_v60 = vld [vmem:[#allocation6 + $0x38] sm:$0xff]  ;;  %v8614_v0 = vld [vmem:[#allocation6 + $0x70] sm:$0xff] }
  0xa1   : > { %v9205_v30 = vpop.permute.xlu0 %9204  ;;  %v8622_v2 = vld [vmem:[#allocation6 + $0xb0] sm:$0xff] }
  0xa2   : > { %v9207_v33 = vunpack.i.h.bf16 %v9205_v30  ;;  %v9206_v34 = vunpack.i.l.bf16 %v9205_v30  ;;  %v9215_v61 = vpop.permute.xlu1 %9214  ;;  %v8591_v30 = vld [vmem:[%s12423_s3 + $0x134] sm:$0xf0] }
  0xa3   : > { %v9217_v11 = vunpack.i.h.bf16 %v9215_v61  ;;  %v9216_v12 = vunpack.i.l.bf16 %v9215_v61  ;;  %v6272_v31 = vor.u32 %v8591_v30, %v6271_v29  ;;  %v9226_v61 = vunpack.i.l.bf16 %v9225_v47 }
  0xa4   : > { %v356_v39 = vsel %vm355_vm1, %v347_v37, %v9206_v34  ;;  %v357_v40 = vsel %vm355_vm1, %v348_v38, %v9207_v33  ;;  %v6193_v33 = vld [vmem:[%s12423_s3 + $0x98] sm:$0xf0]  ;;  %v8586_v34 = vld [vmem:[%s12423_s3 + $0x114] sm:$0xf]  ;;  %996 = vmatpush.bf16.msra.mxu3 %v6268_v28  ;;  %v6263_v37 = vld [vmem:[%s12423_s3 + $0x120] sm:$0xf] }
  0xa5   : > { %v364_v41 = vpack.c.bf16 %v357_v40, %v356_v39  ;;  %v358_v23 = vsel %vm355_vm1, %v349_v16, %v9216_v12  ;;  %v359_v24 = vsel %vm355_vm1, %v350_v17, %v9217_v11  ;;  %v6196_v35 = vor.u32 %v8570_v32, %v6193_v33  ;;  %956 = vmatpush.bf16.msrb.mxu0 %v6272_v31  ;;  %v8589_v38 = vld [vmem:[%s12423_s3 + $0x124] sm:$0xf0]  ;;  %v262_v39 = vld [vmem:[%s9569_s8 + $0x40] sm:$0xff] }
  0xa6   : > { %v365_v27 = vpack.c.bf16 %v359_v24, %v358_v23  ;;  %v6260_v40 = vor.u32 %v8586_v34, %v6257_v36  ;;  %v351_v1 = vsel %vm346_vm0, %v262_v39, %v9221_v46  ;;  %v264_v12 = vld [vmem:[%s9569_s8 + $0x60] sm:$0xff]  ;;  %v9932_v23 = vperm.slane %v392_v22, 0  ;;  %s9394_s8 = scalar_lea.hbm %s9393_s7, 64 }
  0xa7   : > { %6105 = vmatmul.msk.bf16.vlgmr.msra.gmra.mxu0 %vm496_vm2, %v364_v41  ;;  %6109 = vmatmul.msk.bf16.vlgmr.msra.gmra.mxu1 %vm496_vm2, %v364_v41  ;;  %v360_v4 = vsel %vm355_vm1, %v351_v1, %v9226_v61  ;;  %v9939_v28 = vperm.slane %v392_v22, 2  ;;  %v9950_v34 = vperm.slane %v392_v22, 1  ;;  %v8623_v61 = vld [vmem:[#allocation6 + $0xb8] sm:$0xff]  ;;  %v8606_v1 = vld [vmem:[#allocation6 + $0x30] sm:$0xff]  ;;  %p9395_p0 = scmp.ne.s32.totalorder %s9393_s7, %s9394_s8  ;;  %p9400_p4 = scmp.lt.s32.totalorder %s9398_s13, %s9394_s8 }
  0xa8   : > { %6113 = vmatmul.msk.bf16.vlgmr.msra.gmra.mxu2 %vm496_vm2, %v364_v41  ;;  %v6264_v41 = vor.u32 %v8589_v38, %v6263_v37  ;;  %997 = vmatpush.bf16.msra.mxu3 %v6260_v40  ;;  %v366_v6 = vpack.c.bf16 %v361_v5, %v360_v4 }
  0xa9   : > { %984 = vmatpush.bf16.msrb.mxu2 %v6196_v35  ;;  %v9230_v7 = vpop.permute.xlu0 %9229  ;;  %p9396_p1 = pnand %p9395_p0, %p9529_p5  ;;  %p9401_p7 = por %p9400_p4, %p9399_p3 }
  0xaa   : > { %957 = vmatpush.bf16.msrb.mxu0 %v6264_v41  ;;  %v9232_v9 = vunpack.i.h.bf16 %v9230_v7  ;;  %v9231_v10 = vunpack.i.l.bf16 %v9230_v7  ;;  %v9235_v11 = vpop.permute.xlu1 %9234 }
  0xab   : > { %v9237_v14 = vunpack.i.h.bf16 %v9235_v11  ;;  %v9236_v15 = vunpack.i.l.bf16 %v9235_v11  ;;  %v8612_v11 = vld [vmem:[#allocation6 + $0x60] sm:$0xff]  ;;  %p9397_p2 = pneg %p9396_p1 }
  0xac   : > { %998 = vmatpush.bf16.msra.mxu3 %v6252_v56  ;;  %v353_v16 = vsel %vm346_vm0, %v264_v12, %v9231_v10  ;;  %v354_v17 = vsel %vm346_vm0, %v265_v13, %v9232_v9  ;;  %v8615_v56 = vld [vmem:[#allocation6 + $0x78] sm:$0xff]  ;;  %v8605_v9 = vld [vmem:[#allocation6 + $0x28] sm:$0xff]  ;;  %v8604_v12 = vld [vmem:[#allocation6 + $0x20] sm:$0xff] }
  0xad   : > { %985 = vmatpush.bf16.msrb.mxu2 %v6188_v53  ;;  %v362_v18 = vsel %vm355_vm1, %v353_v16, %v9236_v15  ;;  %v363_v19 = vsel %vm355_vm1, %v354_v17, %v9237_v14  ;;  %1257 = vmatpush.bf16.msra.mxu1 %v8615_v56  ;;  %v8621_v10 = vld [vmem:[#allocation6 + $0xa8] sm:$0xff]  ;;  %v8620_v13 = vld [vmem:[#allocation6 + $0xa0] sm:$0xff]  ;;  %v8611_v14 = vld [vmem:[#allocation6 + $0x58] sm:$0xff]  ;;  %p9402_p8 = pnand %p9401_p7, %p9397_p2 }
  0xae   : > { %958 = vmatpush.bf16.msrb.mxu0 %v6256_v57  ;;  %v367_v20 = vpack.c.bf16 %v363_v19, %v362_v18  ;;  %v8603_v18 = vld [vmem:[#allocation6 + $0x18] sm:$0xff] }
  0xaf   : > { %999 = vmatmul.bf16.vlgmr.msra.gmra.mxu3 %v9458_v8  ;;  %v8619_v19 = vld [vmem:[#allocation6 + $0x98] sm:$0xff] }
  0xb1   : > { %1270 = vmatpush.bf16.msra.mxu2 %v8623_v61  ;;  %1258 = vmatpush.bf16.msra.mxu1 %v8614_v0  ;;  %v8639_v0 = vld [vmem:[%s12423_s3 + $0x74] sm:$0xf0] }
  0xb2   : > { %959 = vmatpush.bf16.msrb.mxu0 %v6248_v3  ;;  %v8613_v3 = vld [vmem:[#allocation6 + $0x68] sm:$0xff] }
  0xb5   : > { %1271 = vmatpush.bf16.msra.mxu2 %v8622_v2  ;;  %1259 = vmatpush.bf16.msra.mxu1 %v8613_v3  ;;  %v8653_v2 = vld [vmem:[%s12423_s3 + $0xe4] sm:$0xf0] }
  0xb6   : > { %1244 = vmatpush.bf16.msra.mxu0 %v8607_v60  ;;  %v6529_v60 = vld [vmem:[%s12423_s3 + $0xf0] sm:$0xf] }
  0xb7   : > { %6106 = vmatmul.msk.bf16.gmra.mxu0 %vm496_vm2, %v365_v27  ;;  %6110 = vmatmul.msk.bf16.gmra.mxu1 %vm496_vm2, %v365_v27 }
  0xb8   : > { %6114 = vmatmul.msk.bf16.gmra.mxu2 %vm496_vm2, %v365_v27 }
  0xb9   : > { %1272 = vmatpush.bf16.msra.mxu2 %v8621_v10  ;;  %1260 = vmatpush.bf16.msra.mxu1 %v8612_v11 }
  0xba   : > { %1245 = vmatpush.bf16.msra.mxu0 %v8606_v1  ;;  %v6521_v1 = vld [vmem:[%s12423_s3 + $0xe0] sm:$0xf] }
  0xbb   : > { %v6522_v10 = vor.u32 %v8653_v2, %v6521_v1 }
  0xbd   : > { %1273 = vmatpush.bf16.msra.mxu2 %v8620_v13  ;;  %1261 = vmatpush.bf16.msra.mxu1 %v8611_v14  ;;  %v8651_v13 = vld [vmem:[%s12423_s3 + $0xd4] sm:$0xf0]  ;;  %v6449_v14 = vld [vmem:[%s12423_s3 + $0x50] sm:$0xf] }
  0xbe   : > { %1246 = vmatpush.bf16.msra.mxu0 %v8605_v9  ;;  %v8637_v9 = vld [vmem:[%s12423_s3 + $0x64] sm:$0xf0] }
  0xc1   : > { %1274 = vmatpush.bf16.msra.mxu2 %v8619_v19 }
  0xc2   : > { %1247 = vmatpush.bf16.msra.mxu0 %v8604_v12  ;;  %v6513_v12 = vld [vmem:[%s12423_s3 + $0xd0] sm:$0xf] }
  0xc6   : > { %1248 = vmatpush.bf16.msra.mxu0 %v8603_v18  ;;  %v8671_v18 = vld [vmem:[%s12423_s3 + $0x174] sm:$0xf0] }
  0xc7   : > { %6107 = vmatmul.msk.bf16.gmra.mxu0 %vm496_vm2, %v366_v6  ;;  %6111 = vmatmul.msk.bf16.gmra.mxu1 %vm496_vm2, %v366_v6 }
  0xc8   : > { %6115 = vmatmul.msk.bf16.gmra.mxu2 %vm496_vm2, %v366_v6  ;;  %v935_v21 = vpop.f32.mrf.mxu3 }
  0xd0   : > { %v937_v27 = vpop.f32.mrf.mxu3 }
  0xd1   : > { %v8618_v27 = vld [vmem:[#allocation6 + $0x90] sm:$0xff] }
  0xd2   : > { %1275 = vmatpush.bf16.msra.mxu2 %v8618_v27 }
  0xd7   : > { %6108 = vmatmul.msk.bf16.gmra.mxu0 %vm496_vm2, %v367_v20  ;;  %6112 = vmatmul.msk.bf16.gmra.mxu1 %vm496_vm2, %v367_v20 }
  0xd8   : > { %6116 = vmatmul.msk.bf16.gmra.mxu2 %vm496_vm2, %v367_v20 }
  0xe7   : > { %960 = vmatmul.bf16.vlgmr.msrb.gmra.mxu0 %v9458_v8  ;;  %973 = vmatmul.bf16.vlgmr.msrb.gmra.mxu1 %v9458_v8 }
  0xe8   : > { %986 = vmatmul.bf16.vlgmr.msrb.gmra.mxu2 %v9458_v8  ;;  %v948_v32 = vpop.f32.mrf.mxu3 }
  0xe9   : > { %v9948_v33 = vadd.f32 %v948_v32, %v935_v21  ;;  %v8610_v21 = vld [vmem:[#allocation6 + $0x50] sm:$0xff]  ;;  %v8601_v32 = vld [vmem:[#allocation6 + $0x8] sm:$0xff] }
  0xea   : > { %1262 = vmatpush.bf16.msra.mxu1 %v8610_v21  ;;  %v8638_v21 = vld [vmem:[%s12423_s3 + $0x74] sm:$0xf] }
  0xf0   : > { %v950_v40 = vpop.f32.mrf.mxu3 }
 0x124   : > { %v518_v24 = vpop.f32.mrf.mxu0  ;;  %v9934_v25 = vpop.f32.mrf.mxu1 }
 0x125   : > { %v9937_v26 = vadd.f32 %v518_v24, %v9932_v23  ;;  %v8602_v24 = vld [vmem:[#allocation6 + $0x10] sm:$0xff] }
 0x126   : > { %1249 = vmatpush.bf16.msra.mxu0 %v8602_v24  ;;  %v6467_v24 = vld [vmem:[%s12423_s3 + $0x78] sm:$0xf0] }
 0x12a   : > { %1250 = vmatpush.bf16.msra.mxu0 %v8601_v32  ;;  %v6470_v32 = vor.u32 %v8638_v21, %v6467_v24 }
 0x12b   : > { %v576_v29 = vpop.f32.mrf.mxu2 }
 0x12c   : > { %v9942_v30 = vadd.f32 %v576_v29, %v9939_v28  ;;  %v9944_v8 = vpop.f32.mrf.mxu0  ;;  %v9946_v31 = vpop.f32.mrf.mxu1  ;;  %v8609_v29 = vld [vmem:[#allocation6 + $0x48] sm:$0xff] }
 0x12d   : > { %1263 = vmatpush.bf16.msra.mxu1 %v8609_v29  ;;  %v6514_v29 = vor.u32 %v8651_v13, %v6513_v12 }
 0x132   : > { %v9975_v50 = vpop.f32.mrf.mxu3 }
 0x133   : > { %v9952_v35 = vpop.f32.mrf.mxu2 }
 0x134   : > { %v523_v36 = vpop.f32.mrf.mxu0  ;;  %v552_v37 = vpop.f32.mrf.mxu1 }
 0x135   : > { %v9955_v38 = vadd.f32 %v523_v36, %v9932_v23  ;;  %v9958_v39 = vadd.f32 %v552_v37, %v9950_v34  ;;  %v8617_v36 = vld [vmem:[#allocation6 + $0x88] sm:$0xff] }
 0x136   : > { %1276 = vmatpush.bf16.msra.mxu2 %v8617_v36 }
 0x13a   : > { %v1002_v55 = vpop.f32.mrf.mxu3 }
 0x13b   : > { %v581_v41 = vpop.f32.mrf.mxu2  ;;  %v8616_v55 = vld [vmem:[#allocation6 + $0x80] sm:$0xff] }
 0x13c   : > { %v9961_v42 = vadd.f32 %v581_v41, %v9939_v28  ;;  %v9963_v43 = vpop.f32.mrf.mxu0  ;;  %v9965_v44 = vpop.f32.mrf.mxu1  ;;  %1277 = vmatpush.bf16.msra.mxu2 %v8616_v55  ;;  %v6459_v55 = vld [vmem:[%s12423_s3 + $0x68] sm:$0xf0] }
 0x140   : > { %1625 = vmatpush.bf16.msrb.mxu2 %v6470_v32 }
 0x143   : > { %v9967_v45 = vpop.f32.mrf.mxu2 }
 0x144   : > { %v528_v46 = vpop.f32.mrf.mxu0  ;;  %v557_v47 = vpop.f32.mrf.mxu1 }
 0x145   : > { %v9970_v48 = vadd.f32 %v528_v46, %v9932_v23  ;;  %v9973_v49 = vadd.f32 %v557_v47, %v9950_v34  ;;  %v8608_v46 = vld [vmem:[#allocation6 + $0x40] sm:$0xff]  ;;  %v548_v47 = vadd.f32 %v9934_v25, %v9950_v34  ;;  %v8655_v25 = vld [vmem:[%s12423_s3 + $0xf4] sm:$0xf0] }
 0x146   : > { %1264 = vmatpush.bf16.msra.mxu1 %v8608_v46  ;;  %v6530_v61 = vor.u32 %v8655_v25, %v6529_v60  ;;  %v6441_v46 = vld [vmem:[%s12423_s3 + $0x40] sm:$0xf]  ;;  %v6497_v60 = vld [vmem:[%s12423_s3 + $0xb0] sm:$0xf]  ;;  %v8647_v25 = vld [vmem:[%s12423_s3 + $0xb4] sm:$0xf0] }
 0x147   : > { %v6498_v1 = vor.u32 %v8647_v25, %v6497_v60  ;;  %v6417_v25 = vld [vmem:[%s12423_s3 + $0x10] sm:$0xf] }
 0x14b   : > { %v586_v51 = vpop.f32.mrf.mxu2 }
 0x14c   : > { %v9978_v52 = vadd.f32 %v586_v51, %v9939_v28  ;;  %v9980_v53 = vpop.f32.mrf.mxu0  ;;  %v9982_v54 = vpop.f32.mrf.mxu1  ;;  %v8600_v51 = vld [vmem:[#allocation6] sm:$0xff] }
 0x14d   : > { %1251 = vmatpush.bf16.msra.mxu0 %v8600_v51  ;;  %v8636_v51 = vld [vmem:[%s12423_s3 + $0x64] sm:$0xf] }
 0x151   : > { %1599 = vmatpush.bf16.msrb.mxu0 %v6530_v61  ;;  %v8631_v61 = vld [vmem:[%s12423_s3 + $0x34] sm:$0xf0] }
 0x153   : > { %v9984_v57 = vpop.f32.mrf.mxu2 }
 0x154   : > { %v533_v58 = vpop.f32.mrf.mxu0  ;;  %v562_v59 = vpop.f32.mrf.mxu1 }
 0x155   : > { %v9987_v62 = vadd.f32 %v533_v58, %v9932_v23  ;;  %v9990_v63 = vadd.f32 %v562_v59, %v9950_v34  ;;  %1600 = vmatpush.bf16.msrb.mxu0 %v6522_v10 }
 0x159   : > { %1601 = vmatpush.bf16.msrb.mxu0 %v6514_v29 }
 0x15b   : > { %v591_v4 = vpop.f32.mrf.mxu2 }
 0x15c   : > { %v9993_v5 = vadd.f32 %v591_v4, %v9939_v28  ;;  %v9995_v6 = vpop.f32.mrf.mxu0  ;;  %v9997_v7 = vpop.f32.mrf.mxu1  ;;  %v6457_v4 = vld [vmem:[%s12423_s3 + $0x60] sm:$0xf] }
 0x15d   : > { %v6458_v11 = vor.u32 %v8637_v9, %v6457_v4 }
 0x163   : > { %v9999_v15 = vpop.f32.mrf.mxu2 }
 0x164   : > { %v961_v16 = vpop.f32.mrf.mxu0  ;;  %v974_v17 = vpop.f32.mrf.mxu1 }
 0x165   : > { %v962_v20 = vadd.f32 %v961_v16, %v9948_v33  ;;  %v8635_v16 = vld [vmem:[%s12423_s3 + $0x54] sm:$0xf0] }
 0x166   : > { %v6450_v36 = vor.u32 %v8635_v16, %v6449_v14 }
 0x167   : > { %v10003_v22 = vadd.f32 %v962_v20, %v9937_v26 }
 0x16b   : > { %v987_v37 = vpop.f32.mrf.mxu2 }
 0x16c   : > { %v988_v40 = vadd.f32 %v987_v37, %v974_v17  ;;  %v976_v41 = vpop.f32.mrf.mxu1  ;;  %v963_v33 = vpop.f32.mrf.mxu0  ;;  %v6593_v17 = vld [vmem:[%s12423_s3 + $0x170] sm:$0xf]  ;;  %v6505_v37 = vld [vmem:[%s12423_s3 + $0xc0] sm:$0xf] }
 0x16d   : > { %v6594_v20 = vor.u32 %v8671_v18, %v6593_v17  ;;  %v6585_v41 = vld [vmem:[%s12423_s3 + $0x160] sm:$0xf]  ;;  %v8633_v33 = vld [vmem:[%s12423_s3 + $0x44] sm:$0xf0] }
 0x16e   : > { %v1001_v26 = vadd.f32 %v9975_v50, %v988_v40  ;;  %v6465_v50 = vld [vmem:[%s12423_s3 + $0x70] sm:$0xf]  ;;  %v8649_v40 = vld [vmem:[%s12423_s3 + $0xc4] sm:$0xf0] }
 0x16f   : > { %v6466_v3 = vor.u32 %v8639_v0, %v6465_v50  ;;  %1612 = vmatpush.bf16.msrb.mxu1 %v6594_v20  ;;  %v6433_v50 = vld [vmem:[%s12423_s3 + $0x30] sm:$0xf] }
 0x170   : > { %v1005_v56 = vadd.f32 %v1001_v26, %v548_v47  ;;  %v8669_v47 = vld [vmem:[%s12423_s3 + $0x164] sm:$0xf0] }
 0x171   : > { %1586 = vmatpush.bf16.msrb.mxu3 %v6466_v3  ;;  %v6586_v26 = vor.u32 %v8669_v47, %v6585_v41  ;;  %v6434_v3 = vor.u32 %v8631_v61, %v6433_v50  ;;  %v8629_v41 = vld [vmem:[%s12423_s3 + $0x24] sm:$0xf0]  ;;  %v8667_v47 = vld [vmem:[%s12423_s3 + $0x154] sm:$0xf0]  ;;  %v6569_v61 = vld [vmem:[%s12423_s3 + $0x140] sm:$0xf] }
 0x172   : > { %v6310_v58 = vmul.f32 -1.442695, %v1005_v56  ;;  %v6506_v56 = vor.u32 %v8649_v40, %v6505_v37  ;;  %v6425_v40 = vld [vmem:[%s12423_s3 + $0x20] sm:$0xf]  ;;  %v8627_v50 = vld [vmem:[%s12423_s3 + $0x14] sm:$0xf0] }
 0x173   : > { %v989_v59 = vpop.f32.mrf.mxu2  ;;  %1613 = vmatpush.bf16.msrb.mxu1 %v6586_v26  ;;  %v8634_v26 = vld [vmem:[%s12423_s3 + $0x54] sm:$0xf] }
 0x174   : > { %9238 = vpow2.f32 %v6310_v58  ;;  %v6462_v58 = vor.u32 %v8636_v51, %v6459_v55  ;;  %v6442_v59 = vor.u32 %v8633_v33, %v6441_v46  ;;  %1602 = vmatpush.bf16.msrb.mxu0 %v6506_v56  ;;  %v6426_v46 = vor.u32 %v8629_v41, %v6425_v40  ;;  %v6577_v33 = vld [vmem:[%s12423_s3 + $0x150] sm:$0xf]  ;;  %v6451_v55 = vld [vmem:[%s12423_s3 + $0x58] sm:$0xf0]  ;;  %v8668_v41 = vld [vmem:[%s12423_s3 + $0x164] sm:$0xf] }
 0x175   : > { %1587 = vmatpush.bf16.msrb.mxu3 %v6458_v11  ;;  %v6578_v51 = vor.u32 %v8667_v47, %v6577_v33  ;;  %v6481_v56 = vld [vmem:[%s12423_s3 + $0x90] sm:$0xf] }
 0x176   : > { %1626 = vmatpush.bf16.msrb.mxu2 %v6462_v58  ;;  %v8643_v58 = vld [vmem:[%s12423_s3 + $0x94] sm:$0xf0] }
 0x177   : > { %v6482_v60 = vor.u32 %v8643_v58, %v6481_v56  ;;  %1614 = vmatpush.bf16.msrb.mxu1 %v6578_v51  ;;  %v8661_v51 = vld [vmem:[%s12423_s3 + $0x124] sm:$0xf0]  ;;  %v6427_v58 = vld [vmem:[%s12423_s3 + $0x28] sm:$0xf0] }
 0x178   : > { %1603 = vmatpush.bf16.msrb.mxu0 %v6498_v1  ;;  %v8665_v1 = vld [vmem:[%s12423_s3 + $0x144] sm:$0xf0] }
 0x179   : > { %1588 = vmatpush.bf16.msrb.mxu3 %v6450_v36  ;;  %v8645_v36 = vld [vmem:[%s12423_s3 + $0xa4] sm:$0xf0] }
 0x17a   : > { %v9239_v19 = vpop.eup %9238 }
 0x17b   : > { %v1013_v27 = vadd.f32 1.0, %v9239_v19 }
 0x17d   : > { %9240 = vrcp.f32 %v1013_v27  ;;  %1589 = vmatpush.bf16.msrb.mxu3 %v6442_v59  ;;  %v1040_v9 = vand.u32 2147483648, %v1013_v27  ;;  %v1038_v11 = vand.u32 2147483647, %v1013_v27  ;;  %vm1034_vm4 = vweird.f32 %v1013_v27 }
 0x17e   : > { %v6454_v59 = vor.u32 %v8634_v26, %v6451_v55  ;;  %v6553_v26 = vld [vmem:[%s12423_s3 + $0x120] sm:$0xf]  ;;  %v8628_v55 = vld [vmem:[%s12423_s3 + $0x24] sm:$0xf] }
 0x17f   : > { %v1041_v13 = vor.u32 1.1754944e-38, %v1040_v9  ;;  %vm1039_vm6 = vcmp.eq.f32.partialorder %v1038_v11, 8.507059e+37  ;;  %v6473_v11 = vld [vmem:[%s12423_s3 + $0x80] sm:$0xf]  ;;  %v6554_v56 = vor.u32 %v8661_v51, %v6553_v26  ;;  %v8660_v26 = vld [vmem:[%s12423_s3 + $0x124] sm:$0xf] }
 0x180   : > { %1627 = vmatpush.bf16.msrb.mxu2 %v6454_v59  ;;  %v8652_v59 = vld [vmem:[%s12423_s3 + $0xe4] sm:$0xf]  ;;  %v6555_v51 = vld [vmem:[%s12423_s3 + $0x128] sm:$0xf0] }
 0x181   : > { %1590 = vmatpush.bf16.msrb.mxu3 %v6434_v3  ;;  %v6443_v3 = vld [vmem:[%s12423_s3 + $0x48] sm:$0xf0] }
 0x183   : > { %v9241_v0 = vpop.eup %9240 }
 0x184   : > { %v1030_v2 = vmul.f32 %v9241_v0, %v1013_v27  ;;  %vm1035_vm3 = vweird.f32 %v9241_v0  ;;  %v6489_v27 = vld [vmem:[%s12423_s3 + $0xa0] sm:$0xf] }
 0x185   : > { %vm1036_vm5 = vmor %vm1034_vm4, %vm1035_vm3  ;;  %v6490_v37 = vor.u32 %v8645_v36, %v6489_v27  ;;  %1591 = vmatpush.bf16.msrb.mxu3 %v6426_v46  ;;  %v8654_v27 = vld [vmem:[%s12423_s3 + $0xf4] sm:$0xf]  ;;  %v6531_v36 = vld [vmem:[%s12423_s3 + $0xf8] sm:$0xf0] }
 0x186   : > { %v1031_v4 = vsub.f32 1.0, %v1030_v2  ;;  %v8632_v2 = vld [vmem:[%s12423_s3 + $0x44] sm:$0xf]  ;;  %v6534_v40 = vor.u32 %v8654_v27, %v6531_v36  ;;  %v6587_v46 = vld [vmem:[%s12423_s3 + $0x168] sm:$0xf0] }
 0x187   : > { %1604 = vmatpush.bf16.msrb.mxu0 %v6490_v37  ;;  %v6446_v9 = vor.u32 %v8632_v2, %v6443_v3  ;;  %v6590_v47 = vor.u32 %v8668_v41, %v6587_v46  ;;  %v6545_v3 = vld [vmem:[%s12423_s3 + $0x110] sm:$0xf]  ;;  %v8648_v27 = vld [vmem:[%s12423_s3 + $0xc4] sm:$0xf]  ;;  %v6507_v36 = vld [vmem:[%s12423_s3 + $0xc8] sm:$0xf0] }
 0x188   : > { %v1032_v10 = vmul.f32 %v9241_v0, %v1031_v4  ;;  %v6570_v4 = vor.u32 %v8665_v1, %v6569_v61  ;;  %v6579_v1 = vld [vmem:[%s12423_s3 + $0x158] sm:$0xf0] }
 0x189   : > { %1628 = vmatpush.bf16.msrb.mxu2 %v6446_v9  ;;  %v8626_v9 = vld [vmem:[%s12423_s3 + $0x14] sm:$0xf]  ;;  %v6563_v41 = vld [vmem:[%s12423_s3 + $0x138] sm:$0xf0] }
 0x18a   : > { %v1033_v12 = vadd.f32 %v9241_v0, %v1032_v10  ;;  %v6309_v10 = vmul.f32 -1.442695, %v10003_v22  ;;  %1615 = vmatpush.bf16.msrb.mxu1 %v6570_v4  ;;  %v6595_v22 = vld [vmem:[%s12423_s3 + $0x178] sm:$0xf0]  ;;  %v8659_v4 = vld [vmem:[%s12423_s3 + $0x114] sm:$0xf0] }
 0x18b   : > { %1605 = vmatpush.bf16.msrb.mxu0 %v6482_v60  ;;  %v6523_v60 = vld [vmem:[%s12423_s3 + $0xe8] sm:$0xf0] }
 0x18c   : > { %v1037_v14 = vsel %vm1036_vm5, %v9241_v0, %v1033_v12  ;;  %v6418_v0 = vor.u32 %v8627_v50, %v6417_v25  ;;  %9242 = vpow2.f32 %v6309_v10  ;;  %v8641_v12 = vld [vmem:[%s12423_s3 + $0x84] sm:$0xf0]  ;;  %v6430_v50 = vor.u32 %v8628_v55, %v6427_v58 }
 0x18d   : > { %v1042_v16 = vsel %vm1039_vm6, %v1041_v13, %v1037_v14  ;;  %v6474_v13 = vor.u32 %v8641_v12, %v6473_v11  ;;  %v8670_v14 = vld [vmem:[%s12423_s3 + $0x174] sm:$0xf]  ;;  %v6526_v61 = vor.u32 %v8652_v59, %v6523_v60  ;;  %v6546_v10 = vor.u32 %v8659_v4, %v6545_v3  ;;  %v6419_v11 = vld [vmem:[%s12423_s3 + $0x18] sm:$0xf0]  ;;  %v8644_v59 = vld [vmem:[%s12423_s3 + $0xa4] sm:$0xf] }
 0x18e   : > { %v1047_v17 = vmul.f32 0.0, %v1042_v16  ;;  %v1044_v18 = vrot.slane %v1042_v16, 7  ;;  %v1045_v19 = vrot.slane %v1042_v16, 1  ;;  %1592 = vmatpush.bf16.msrb.mxu3 %v6418_v0  ;;  %v6598_v16 = vor.u32 %v8670_v14, %v6595_v22  ;;  %v8666_v0 = vld [vmem:[%s12423_s3 + $0x154] sm:$0xf] }
 0x18f   : > { %1606 = vmatpush.bf16.msrb.mxu0 %v6474_v13  ;;  %v6582_v2 = vor.u32 %v8666_v0, %v6579_v1  ;;  %v8650_v12 = vld [vmem:[%s12423_s3 + $0xd4] sm:$0xf]  ;;  %v6515_v13 = vld [vmem:[%s12423_s3 + $0xd8] sm:$0xf0]  ;;  %v6422_v14 = vor.u32 %v8626_v9, %v6419_v11  ;;  %v6558_v58 = vor.u32 %v8660_v26, %v6555_v51  ;;  %v6491_v60 = vld [vmem:[%s12423_s3 + $0xa8] sm:$0xf0] }
 0x190   : > { %v1050_v20 = vpack.c.bf16 %v1047_v17, %v1047_v17  ;;  %v1046_v21 = vmul.f32 0.0, %v1044_v18  ;;  %v1048_v24 = vmul.f32 0.0, %v1045_v19  ;;  %v6409_v17 = vld [vmem:[%s12423_s3] sm:$0xf]  ;;  %v8625_v18 = vld [vmem:[%s12423_s3 + $0x4] sm:$0xf0]  ;;  %v6518_v22 = vor.u32 %v8650_v12, %v6515_v13 }
 0x191   : > { %v6410_v19 = vor.u32 %v8625_v18, %v6409_v17  ;;  %v6571_v17 = vld [vmem:[%s12423_s3 + $0x148] sm:$0xf0]  ;;  %v6537_v18 = vld [vmem:[%s12423_s3 + $0x100] sm:$0xf]  ;;  %v8642_v9 = vld [vmem:[%s12423_s3 + $0x94] sm:$0xf] }
 0x192   : > { %1265 = vmatmul.bf16.vlgmr.msra.gmra.mxu1 %v1050_v20  ;;  %v1049_v29 = vpack.c.bf16 %v1046_v21, %v1046_v21  ;;  %v1051_v32 = vpack.c.bf16 %v1048_v24, %v1048_v24  ;;  %v6561_v20 = vld [vmem:[%s12423_s3 + $0x130] sm:$0xf]  ;;  %v8663_v21 = vld [vmem:[%s12423_s3 + $0x134] sm:$0xf0]  ;;  %v8630_v24 = vld [vmem:[%s12423_s3 + $0x34] sm:$0xf]  ;;  %v9243_v33 = vpop.eup %9242 }
 0x193   : > { %1593 = vmatpush.bf16.msrb.mxu3 %v6410_v19  ;;  %v10201_v25 = vadd.f32 1.0, %v9243_v33  ;;  %v8646_v33 = vld [vmem:[%s12423_s3 + $0xb4] sm:$0xf]  ;;  %v8656_v11 = vld [vmem:[%s12423_s3 + $0x104] sm:$0xf] }
 0x194   : > { %1252 = vmatmul.bf16.vlgmr.msra.gmra.mxu0 %v1049_v29  ;;  %1278 = vmatmul.bf16.vlgmr.msra.gmra.mxu2 %v1051_v32  ;;  %v6562_v29 = vor.u32 %v8663_v21, %v6561_v20  ;;  %v6435_v32 = vld [vmem:[%s12423_s3 + $0x38] sm:$0xf0]  ;;  %v8657_v20 = vld [vmem:[%s12423_s3 + $0x104] sm:$0xf0]  ;;  %v8624_v21 = vld [vmem:[%s12423_s3 + $0x4] sm:$0xf] }
 0x195   : > { %1651 = vmatpush.bf16.msra.mxu0 %v6598_v16  ;;  %v6438_v37 = vor.u32 %v8630_v24, %v6435_v32  ;;  %9244 = vrcp.f32 %v10201_v25  ;;  %v8664_v16 = vld [vmem:[%s12423_s3 + $0x144] sm:$0xf]  ;;  %v6411_v24 = vld [vmem:[%s12423_s3 + $0x8] sm:$0xf0]  ;;  %vm1019_vm8 = vweird.f32 %v10201_v25 }
 0x196   : > { %1616 = vmatpush.bf16.msrb.mxu1 %v6562_v29  ;;  %v6574_v19 = vor.u32 %v8664_v16, %v6571_v17  ;;  %v6538_v29 = vor.u32 %v8657_v20, %v6537_v18  ;;  %v6414_v32 = vor.u32 %v8624_v21, %v6411_v24  ;;  %v6539_v12 = vld [vmem:[%s12423_s3 + $0x108] sm:$0xf0]  ;;  %v8640_v16 = vld [vmem:[%s12423_s3 + $0x84] sm:$0xf] }
 0x197   : > { %1629 = vmatpush.bf16.msrb.mxu2 %v6438_v37  ;;  %1638 = vmatpush.bf16.msra.mxu3 %v6534_v40  ;;  %v8662_v37 = vld [vmem:[%s12423_s3 + $0x134] sm:$0xf]  ;;  %v6510_v40 = vor.u32 %v8648_v27, %v6507_v36  ;;  %v6475_v17 = vld [vmem:[%s12423_s3 + $0x88] sm:$0xf0] }
 0x198   : > { %v6566_v46 = vor.u32 %v8662_v37, %v6563_v41  ;;  %v1025_v41 = vand.u32 2147483648, %v10201_v25 }
 0x199   : > { %1652 = vmatpush.bf16.msra.mxu0 %v6590_v47  ;;  %v6499_v47 = vld [vmem:[%s12423_s3 + $0xb8] sm:$0xf0] }
 0x19a   : > { %1617 = vmatpush.bf16.msrb.mxu1 %v6554_v56  ;;  %v6502_v56 = vor.u32 %v8646_v33, %v6499_v47  ;;  %v1026_v51 = vor.u32 1.1754944e-38, %v1025_v41  ;;  %v8676_v41 = vld [vmem:[#allocation6 + $0x20] sm:$0xff] }
 0x19b   : > { %1630 = vmatpush.bf16.msrb.mxu2 %v6430_v50  ;;  %1639 = vmatpush.bf16.msra.mxu3 %v6526_v61  ;;  %v9245_v55 = vpop.eup %9244  ;;  %v8658_v50 = vld [vmem:[%s12423_s3 + $0x114] sm:$0xf]  ;;  %v6547_v61 = vld [vmem:[%s12423_s3 + $0x118] sm:$0xf0] }
 0x19c   : > { %v1015_v0 = vmul.f32 %v9245_v55, %v10201_v25  ;;  %v6550_v4 = vor.u32 %v8658_v50, %v6547_v61  ;;  %vm1020_vm7 = vweird.f32 %v9245_v55 }
 0x19d   : > { %1653 = vmatpush.bf16.msra.mxu0 %v6582_v2  ;;  %v6494_v2 = vor.u32 %v8644_v59, %v6491_v60  ;;  %vm1021_vm9 = vmor %vm1019_vm8, %vm1020_vm7  ;;  %v9117_v60 = vld [vmem:[#allocation6 + $0x68] sm:$0xff] }
 0x19e   : > { %1618 = vmatpush.bf16.msrb.mxu1 %v6546_v10  ;;  %v6483_v10 = vld [vmem:[%s12423_s3 + $0x98] sm:$0xf0]  ;;  %v1016_v13 = vsub.f32 1.0, %v1015_v0 }
 0x19f   : > { %1631 = vmatpush.bf16.msrb.mxu2 %v6422_v14  ;;  %1640 = vmatpush.bf16.msra.mxu3 %v6518_v22  ;;  %v6486_v14 = vor.u32 %v8642_v9, %v6483_v10  ;;  %v6542_v22 = vor.u32 %v8656_v11, %v6539_v12  ;;  %v8679_v9 = vld [vmem:[#allocation6 + $0x38] sm:$0xff]  ;;  %v8686_v11 = vld [vmem:[#allocation6 + $0x70] sm:$0xff] }
 0x1a0   : > { %v1017_v21 = vmul.f32 %v9245_v55, %v1016_v13  ;;  %v8695_v10 = vld [vmem:[#allocation6 + $0xb8] sm:$0xff] }
 0x1a1   : > { %1654 = vmatpush.bf16.msra.mxu0 %v6574_v19  ;;  %v620_v19 = vlaneseq }
 0x1a2   : > { %1619 = vmatpush.bf16.msrb.mxu1 %v6538_v29 }
 0x1a3   : > { %1632 = vmatpush.bf16.msrb.mxu2 %v6414_v32  ;;  %1641 = vmatpush.bf16.msra.mxu3 %v6510_v40  ;;  %v6478_v32 = vor.u32 %v8640_v16, %v6475_v17  ;;  %v621_v37 = vshrl.u32 %v620_v19, 7  ;;  %v1018_v40 = vadd.f32 %v9245_v55, %v1017_v21  ;;  %v8678_v16 = vld [vmem:[#allocation6 + $0x30] sm:$0xff]  ;;  %v521_v19 = vadd.f32 %v9944_v8, %v9932_v23  ;;  %v8685_v21 = vld [vmem:[#allocation6 + $0x68] sm:$0xff]  ;;  %v8683_v8 = vld [vmem:[#allocation6 + $0x58] sm:$0xff] }
 0x1a4   : > { %v8694_v17 = vld [vmem:[#allocation6 + $0xb0] sm:$0xff] }
 0x1a5   : > { %1655 = vmatpush.bf16.msra.mxu0 %v6566_v46  ;;  %v1023_v46 = vand.u32 2147483647, %v10201_v25  ;;  %v10306_v33 = vadd.s32 4294967295, %v621_v37  ;;  %v1022_v47 = vsel %vm1021_vm9, %v9245_v55, %v1018_v40 }
 0x1a6   : > { %1904 = vmatpush.bf16.msra.mxu1 %v8679_v9  ;;  %v8673_v9 = vld [vmem:[#allocation6 + $0x8] sm:$0xff] }
 0x1a7   : > { %1642 = vmatpush.bf16.msra.mxu3 %v6502_v56  ;;  %vm1024_vm10 = vcmp.eq.f32.partialorder %v1023_v46, 8.507059e+37  ;;  %vm623_vm11 = vcmp.ge.s32.totalorder %v10306_v33, 0  ;;  %v8692_v46 = vld [vmem:[#allocation6 + $0xa0] sm:$0xff] }
 0x1a8   : > { %vm10328_vm13 = vmpackc.low %vm623_vm11, %vm623_vm11 }
 0x1a9   : > { %1656 = vmatpush.bf16.msra.mxu0 %v6558_v58  ;;  %v1027_v58 = vsel %vm1024_vm10, %v1026_v51, %v1022_v47  ;;  %v8675_v47 = vld [vmem:[#allocation6 + $0x18] sm:$0xff]  ;;  %v8682_v51 = vld [vmem:[#allocation6 + $0x50] sm:$0xff] }
 0x1aa   : > { %1905 = vmatpush.bf16.msra.mxu1 %v8678_v16  ;;  %v8688_v16 = vld [vmem:[#allocation6 + $0x80] sm:$0xff] }
 0x1ab   : > { %1643 = vmatpush.bf16.msra.mxu3 %v6494_v2 }
 0x1ad   : > { %1657 = vmatpush.bf16.msra.mxu0 %v6550_v4  ;;  %v8687_v4 = vld [vmem:[#allocation6 + $0x78] sm:$0xff] }
 0x1ae   : > { %1917 = vmatpush.bf16.msra.mxu2 %v8687_v4 }
 0x1af   : > { %1644 = vmatpush.bf16.msra.mxu3 %v6486_v14 }
 0x1b1   : > { %1658 = vmatpush.bf16.msra.mxu0 %v6542_v22 }
 0x1b2   : > { %1918 = vmatpush.bf16.msra.mxu2 %v8686_v11 }
 0x1b3   : > { %1645 = vmatpush.bf16.msra.mxu3 %v6478_v32  ;;  %v8693_v32 = vld [vmem:[#allocation6 + $0xa8] sm:$0xff] }
 0x1b6   : > { %1919 = vmatpush.bf16.msra.mxu2 %v8685_v21  ;;  %v6824_v21 = vld [vmem:[%s12423_s3 + $0xe0] sm:$0xf] }
 0x20f   : > { %v1266_v1 = vpop.f32.mrf.mxu1 }
 0x211   : > { %v1253_v3 = vpop.f32.mrf.mxu0 }
 0x212   : > { %v1267_v18 = vadd.f32 %v1266_v1, %v1253_v3 }
 0x217   : > { %v1268_v20 = vpop.f32.mrf.mxu1  ;;  %v1279_v24 = vpop.f32.mrf.mxu2 }
 0x218   : > { %v1280_v29 = vadd.f32 %v1279_v24, %v1267_v18 }
 0x219   : > { %v1255_v27 = vpop.f32.mrf.mxu0 }
 0x21a   : > { %v1283_v36 = vadd.f32 %v1280_v29, %v9942_v30  ;;  %v10310_v30 = vadd.s32 1, %v621_v37  ;;  %v8677_v29 = vld [vmem:[#allocation6 + $0x28] sm:$0xff]  ;;  %v8684_v27 = vld [vmem:[#allocation6 + $0x60] sm:$0xff] }
 0x21b   : > { %1906 = vmatpush.bf16.msra.mxu1 %v8677_v29  ;;  %1920 = vmatpush.bf16.msra.mxu2 %v8684_v27  ;;  %v8725_v29 = vld [vmem:[%s12423_s3 + $0xe4] sm:$0xf0]  ;;  %v6760_v27 = vld [vmem:[%s12423_s3 + $0x60] sm:$0xf] }
 0x21c   : > { %9246 = vtanh.f32 %v1283_v36  ;;  %vm628_vm12 = vcmp.lt.s32.totalorder %v10310_v30, 8 }
 0x21d   : > { %vm10338_vm14 = vmpackc.low %vm628_vm12, %vm628_vm12 }
 0x21f   : > { %v1281_v26 = vpop.f32.mrf.mxu2  ;;  %1907 = vmatpush.bf16.msra.mxu1 %v8676_v41  ;;  %1921 = vmatpush.bf16.msra.mxu2 %v8683_v8  ;;  %v6816_v41 = vld [vmem:[%s12423_s3 + $0xd0] sm:$0xf] }
 0x220   : > { %v8691_v26 = vld [vmem:[#allocation6 + $0x98] sm:$0xff]  ;;  %v6752_v8 = vld [vmem:[%s12423_s3 + $0x50] sm:$0xf] }
 0x222   : > { %v9247_v56 = vpop.eup %9246 }
 0x223   : > { %v10313_v59 = vmul.f32 %v9247_v56, %v1027_v58  ;;  %1908 = vmatpush.bf16.msra.mxu1 %v8675_v47  ;;  %v8674_v56 = vld [vmem:[#allocation6 + $0x10] sm:$0xff]  ;;  %1922 = vmatpush.bf16.msra.mxu2 %v8682_v51  ;;  %v8707_v47 = vld [vmem:[%s12423_s3 + $0x54] sm:$0xf0] }
 0x224   : > { %v8690_v58 = vld [vmem:[#allocation6 + $0x90] sm:$0xff] }
 0x225   : > { %1287 = vst [vmem:[%s10316_s12] sm:$0xff] %v10313_v59  ;;  %v1296_v25 = vpack.c.bf16 %v10313_v59, %v10313_v59  ;;  %v10323_v55 = vrot.slane %v10313_v59, 7  ;;  %v10333_v50 = vrot.slane %v10313_v59, 1 }
 0x227   : > { %1607 = vmatmul.bf16.vlgmr.msrb.gmra.mxu0 %v1296_v25  ;;  %v6600_v0 = vpack.c.bf16 %v10323_v55, %v10323_v55  ;;  %v6603_v1 = vpack.c.bf16 %v10333_v50, %v10333_v50  ;;  %1909 = vmatpush.bf16.msra.mxu1 %v8674_v56  ;;  %v8743_v56 = vld [vmem:[%s12423_s3 + $0x174] sm:$0xf0] }
 0x229   : > { %6601 = vmatmul.msk.bf16.vlgmr.msrb.gmra.mxu3 %vm10328_vm13, %v6600_v0  ;;  %6604 = vmatmul.msk.bf16.vlgmr.msrb.gmra.mxu1 %vm10338_vm14, %v6603_v1 }
 0x22a   : > { %6607 = vmatmul.msk.bf16.vlgmr.msrb.gmra.mxu2 %vm10328_vm13, %v6600_v0  ;;  %1930 = vmatpush.bf16.msrb.mxu3 %v8695_v10  ;;  %v8689_v10 = vld [vmem:[#allocation6 + $0x88] sm:$0xff] }
 0x22b   : > { %1910 = vmatpush.bf16.msra.mxu1 %v8673_v9  ;;  %v6808_v9 = vld [vmem:[%s12423_s3 + $0xc0] sm:$0xf] }
 0x22e   : > { %1931 = vmatpush.bf16.msrb.mxu3 %v8694_v17 }
 0x232   : > { %1932 = vmatpush.bf16.msrb.mxu3 %v8693_v32 }
 0x236   : > { %1933 = vmatpush.bf16.msrb.mxu3 %v8692_v46  ;;  %v8723_v46 = vld [vmem:[%s12423_s3 + $0xd4] sm:$0xf0] }
 0x237   : > { %6610 = vmatmul.msk.bf16.vlgmr.msra.gmra.mxu0 %vm10338_vm14, %v6603_v1 }
 0x239   : > { %1646 = vmatmul.bf16.vlgmr.msra.gmra.mxu3 %v1296_v25 }
 0x23a   : > { %1934 = vmatpush.bf16.msrb.mxu3 %v8691_v26  ;;  %v6896_v26 = vld [vmem:[%s12423_s3 + $0x170] sm:$0xf] }
 0x23e   : > { %1935 = vmatpush.bf16.msrb.mxu3 %v8690_v58  ;;  %v8710_v58 = vld [vmem:[%s12423_s3 + $0x74] sm:$0xf] }
 0x242   : > { %1936 = vmatpush.bf16.msrb.mxu3 %v8689_v10  ;;  %v8721_v10 = vld [vmem:[%s12423_s3 + $0xc4] sm:$0xf0] }
 0x246   : > { %1937 = vmatpush.bf16.msrb.mxu3 %v8688_v16  ;;  %v6800_v16 = vld [vmem:[%s12423_s3 + $0xb0] sm:$0xf] }
 0x2a4   : > { %v1608_v2 = vpop.f32.mrf.mxu0 }
 0x2a6   : > { %v1621_v3 = vpop.f32.mrf.mxu1 }
 0x2ac   : > { %v1595_v12 = vpop.f32.mrf.mxu3  ;;  %v1610_v13 = vpop.f32.mrf.mxu0 }
 0x2ad   : > { %v1609_v14 = vadd.f32 %v1608_v2, %v1595_v12  ;;  %v1634_v22 = vpop.f32.mrf.mxu2  ;;  %v8681_v2 = vld [vmem:[#allocation6 + $0x48] sm:$0xff]  ;;  %v8680_v12 = vld [vmem:[#allocation6 + $0x40] sm:$0xff] }
 0x2ae   : > { %v1623_v18 = vpop.f32.mrf.mxu1  ;;  %1923 = vmatpush.bf16.msra.mxu2 %v8681_v2  ;;  %v6897_v2 = vor.u32 %v8743_v56, %v6896_v26 }
 0x2af   : > { %v1622_v20 = vadd.f32 %v1621_v3, %v1609_v14  ;;  %v550_v3 = vadd.f32 %v9946_v31, %v9950_v34  ;;  %v8672_v14 = vld [vmem:[#allocation6] sm:$0xff] }
 0x2b0   : > { %v6832_v31 = vld [vmem:[%s12423_s3 + $0xf0] sm:$0xf]  ;;  %1911 = vmatpush.bf16.msra.mxu1 %v8672_v14 }
 0x2b1   : > { %v10356_v24 = vadd.f32 %v1622_v20, %v521_v19  ;;  %v6768_v18 = vld [vmem:[%s12423_s3 + $0x70] sm:$0xf]  ;;  %v8711_v20 = vld [vmem:[%s12423_s3 + $0x74] sm:$0xf0] }
 0x2b2   : > { %1924 = vmatpush.bf16.msra.mxu2 %v8680_v12  ;;  %v6769_v32 = vor.u32 %v8711_v20, %v6768_v18  ;;  %v8705_v12 = vld [vmem:[%s12423_s3 + $0x44] sm:$0xf0] }
 0x2b4   : > { %v1597_v36 = vpop.f32.mrf.mxu3  ;;  %v1660_v37 = vpop.f32.mrf.mxu0  ;;  %2248 = vmatpush.bf16.msrb.mxu0 %v6769_v32 }
 0x2b5   : > { %v1636_v40 = vpop.f32.mrf.mxu2  ;;  %v8709_v36 = vld [vmem:[%s12423_s3 + $0x64] sm:$0xf0] }
 0x2b6   : > { %v6761_v40 = vor.u32 %v8709_v36, %v6760_v27  ;;  %2274 = vmatpush.bf16.msrb.mxu2 %v6897_v2  ;;  %v8741_v2 = vld [vmem:[%s12423_s3 + $0x164] sm:$0xf0] }
 0x2b8   : > { %2249 = vmatpush.bf16.msrb.mxu0 %v6761_v40 }
 0x2bc   : > { %v1647_v25 = vpop.f32.mrf.mxu3  ;;  %v1662_v0 = vpop.f32.mrf.mxu0 }
 0x2bd   : > { %v1648_v1 = vadd.f32 %v1647_v25, %v1634_v22  ;;  %v8727_v22 = vld [vmem:[%s12423_s3 + $0xf4] sm:$0xf0]  ;;  %v6770_v25 = vld [vmem:[%s12423_s3 + $0x78] sm:$0xf0] }
 0x2be   : > { %v6833_v19 = vor.u32 %v8727_v22, %v6832_v31 }
 0x2bf   : > { %v1661_v4 = vadd.f32 %v1660_v37, %v1648_v1  ;;  %v6825_v37 = vor.u32 %v8725_v29, %v6824_v21  ;;  %v6817_v1 = vor.u32 %v8723_v46, %v6816_v41 }
 0x2c0   : > { %2261 = vmatpush.bf16.msrb.mxu1 %v6833_v19 }
 0x2c1   : > { %v1665_v11 = vadd.f32 %v1661_v4, %v550_v3  ;;  %v6773_v3 = vor.u32 %v8710_v58, %v6770_v25  ;;  %v6753_v4 = vor.u32 %v8707_v47, %v6752_v8  ;;  %v1292_v8 = vsel %vm623_vm11, %v10323_v55, 0.0  ;;  %v8703_v55 = vld [vmem:[%s12423_s3 + $0x34] sm:$0xf0] }
 0x2c2   : > { %v1294_v47 = vsel %vm628_vm12, %v10333_v50, 0.0  ;;  %v6888_v50 = vld [vmem:[%s12423_s3 + $0x160] sm:$0xf] }
 0x2c3   : > { %v6612_v13 = vmul.f32 -1.442695, %v1665_v11  ;;  %v6744_v11 = vld [vmem:[%s12423_s3 + $0x40] sm:$0xf]  ;;  %2287 = vmatpush.bf16.msra.mxu3 %v6773_v3  ;;  %2250 = vmatpush.bf16.msrb.mxu0 %v6753_v4  ;;  %v8708_v3 = vld [vmem:[%s12423_s3 + $0x64] sm:$0xf] }
 0x2c4   : > { %v1649_v17 = vpop.f32.mrf.mxu3  ;;  %2262 = vmatpush.bf16.msrb.mxu1 %v6825_v37  ;;  %v6745_v14 = vor.u32 %v8705_v12, %v6744_v11  ;;  %v6762_v4 = vld [vmem:[%s12423_s3 + $0x68] sm:$0xf0]  ;;  %v6792_v11 = vld [vmem:[%s12423_s3 + $0xa0] sm:$0xf]  ;;  %v8717_v12 = vld [vmem:[%s12423_s3 + $0xa4] sm:$0xf0] }
 0x2c5   : > { %9248 = vpow2.f32 %v6612_v13  ;;  %v6809_v13 = vor.u32 %v8721_v10, %v6808_v9  ;;  %v8719_v17 = vld [vmem:[%s12423_s3 + $0xb4] sm:$0xf0]  ;;  %v6889_v9 = vor.u32 %v8741_v2, %v6888_v50  ;;  %v6765_v10 = vor.u32 %v8708_v3, %v6762_v4  ;;  %v8697_v2 = vld [vmem:[%s12423_s3 + $0x4] sm:$0xf0] }
 0x2c6   : > { %v6801_v22 = vor.u32 %v8719_v17, %v6800_v16  ;;  %v6728_v16 = vld [vmem:[%s12423_s3 + $0x20] sm:$0xf]  ;;  %v8701_v17 = vld [vmem:[%s12423_s3 + $0x24] sm:$0xf0] }
 0x2c7   : > { %2251 = vmatpush.bf16.msrb.mxu0 %v6745_v14  ;;  %v6611_v14 = vmul.f32 -1.442695, %v10356_v24  ;;  %2275 = vmatpush.bf16.msrb.mxu2 %v6889_v9  ;;  %v8739_v24 = vld [vmem:[%s12423_s3 + $0x154] sm:$0xf0]  ;;  %v6864_v9 = vld [vmem:[%s12423_s3 + $0x130] sm:$0xf] }
 0x2c8   : > { %2263 = vmatpush.bf16.msrb.mxu1 %v6817_v1  ;;  %2288 = vmatpush.bf16.msra.mxu3 %v6765_v10  ;;  %v8735_v10 = vld [vmem:[%s12423_s3 + $0x134] sm:$0xf0] }
 0x2cb   : > { %v9249_v51 = vpop.eup %9248 }
 0x2cc   : > { %v1673_v0 = vadd.f32 1.0, %v9249_v51  ;;  %2264 = vmatpush.bf16.msrb.mxu1 %v6809_v13  ;;  %v6793_v13 = vor.u32 %v8717_v12, %v6792_v11  ;;  %v8702_v11 = vld [vmem:[%s12423_s3 + $0x34] sm:$0xf]  ;;  %v6865_v12 = vor.u32 %v8735_v10, %v6864_v9  ;;  %v8729_v10 = vld [vmem:[%s12423_s3 + $0x104] sm:$0xf0] }
 0x2ce   : > { %9250 = vrcp.f32 %v1673_v0  ;;  %v1700_v20 = vand.u32 2147483648, %v1673_v0  ;;  %v1698_v29 = vand.u32 2147483647, %v1673_v0  ;;  %vm1694_vm0 = vweird.f32 %v1673_v0 }
 0x2cf   : > { %9252 = vpow2.f32 %v6611_v14  ;;  %v8726_v14 = vld [vmem:[%s12423_s3 + $0xf4] sm:$0xf] }
 0x2d0   : > { %2265 = vmatpush.bf16.msrb.mxu1 %v6801_v22  ;;  %v1701_v27 = vor.u32 1.1754944e-38, %v1700_v20  ;;  %vm1699_vm2 = vcmp.eq.f32.partialorder %v1698_v29, 8.507059e+37  ;;  %v6729_v22 = vor.u32 %v8701_v17, %v6728_v16  ;;  %v6784_v29 = vld [vmem:[%s12423_s3 + $0x90] sm:$0xf]  ;;  %v6834_v16 = vld [vmem:[%s12423_s3 + $0xf8] sm:$0xf0] }
 0x2d4   : > { %v9251_v31 = vpop.eup %9250  ;;  %2266 = vmatpush.bf16.msrb.mxu1 %v6793_v13  ;;  %v6738_v13 = vld [vmem:[%s12423_s3 + $0x38] sm:$0xf0] }
 0x2d5   : > { %v1690_v18 = vmul.f32 %v9251_v31, %v1673_v0  ;;  %vm1695_vm15 = vweird.f32 %v9251_v31  ;;  %v6736_v0 = vld [vmem:[%s12423_s3 + $0x30] sm:$0xf]  ;;  %v9253_v3 = vpop.eup %9252  ;;  %v6741_v17 = vor.u32 %v8702_v11, %v6738_v13  ;;  %v8696_v11 = vld [vmem:[%s12423_s3 + $0x4] sm:$0xf] }
 0x2d6   : > { %vm1696_vm1 = vmor %vm1694_vm0, %vm1695_vm15  ;;  %v6737_v1 = vor.u32 %v8703_v55, %v6736_v0  ;;  %v8742_v0 = vld [vmem:[%s12423_s3 + $0x174] sm:$0xf]  ;;  %v6898_v55 = vld [vmem:[%s12423_s3 + $0x178] sm:$0xf0] }
 0x2d7   : > { %v1691_v19 = vsub.f32 1.0, %v1690_v18  ;;  %v8706_v18 = vld [vmem:[%s12423_s3 + $0x54] sm:$0xf]  ;;  %v6901_v50 = vor.u32 %v8742_v0, %v6898_v55  ;;  %v6818_v55 = vld [vmem:[%s12423_s3 + $0xd8] sm:$0xf0] }
 0x2d8   : > { %2252 = vmatpush.bf16.msrb.mxu0 %v6737_v1  ;;  %v6712_v1 = vld [vmem:[%s12423_s3] sm:$0xf]  ;;  %v8722_v0 = vld [vmem:[%s12423_s3 + $0xd4] sm:$0xf] }
 0x2d9   : > { %v1692_v21 = vmul.f32 %v9251_v31, %v1691_v19  ;;  %v6754_v19 = vld [vmem:[%s12423_s3 + $0x58] sm:$0xf0]  ;;  %v6713_v4 = vor.u32 %v8697_v2, %v6712_v1  ;;  %v6821_v1 = vor.u32 %v8722_v0, %v6818_v55  ;;  %v8736_v2 = vld [vmem:[%s12423_s3 + $0x144] sm:$0xf]  ;;  %v8714_v0 = vld [vmem:[%s12423_s3 + $0x94] sm:$0xf] }
 0x2da   : > { %v6786_v55 = vld [vmem:[%s12423_s3 + $0x98] sm:$0xf0] }
 0x2db   : > { %v1693_v32 = vadd.f32 %v9251_v31, %v1692_v21  ;;  %v6757_v21 = vor.u32 %v8706_v18, %v6754_v19  ;;  %v10542_v18 = vadd.f32 1.0, %v9253_v3  ;;  %v6874_v3 = vld [vmem:[%s12423_s3 + $0x148] sm:$0xf0] }
 0x2dc   : > { %2253 = vmatpush.bf16.msrb.mxu0 %v6729_v22  ;;  %v8740_v22 = vld [vmem:[%s12423_s3 + $0x164] sm:$0xf]  ;;  %v6877_v9 = vor.u32 %v8736_v2, %v6874_v3  ;;  %v6842_v2 = vld [vmem:[%s12423_s3 + $0x108] sm:$0xf0] }
 0x2dd   : > { %v1697_v36 = vsel %vm1696_vm1, %v9251_v31, %v1693_v32  ;;  %v6880_v31 = vld [vmem:[%s12423_s3 + $0x150] sm:$0xf]  ;;  %v8715_v32 = vld [vmem:[%s12423_s3 + $0x94] sm:$0xf0]  ;;  %2289 = vmatpush.bf16.msra.mxu3 %v6757_v21  ;;  %v8733_v21 = vld [vmem:[%s12423_s3 + $0x124] sm:$0xf0]  ;;  %9254 = vrcp.f32 %v10542_v18  ;;  %vm1679_vm4 = vweird.f32 %v10542_v18 }
 0x2de   : > { %v1702_v37 = vsel %vm1699_vm2, %v1701_v27, %v1697_v36  ;;  %v6881_v20 = vor.u32 %v8739_v24, %v6880_v31  ;;  %v6785_v27 = vor.u32 %v8715_v32, %v6784_v29  ;;  %v6720_v36 = vld [vmem:[%s12423_s3 + $0x10] sm:$0xf]  ;;  %v6837_v31 = vor.u32 %v8726_v14, %v6834_v16  ;;  %v6890_v24 = vld [vmem:[%s12423_s3 + $0x168] sm:$0xf0]  ;;  %v8700_v29 = vld [vmem:[%s12423_s3 + $0x24] sm:$0xf] }
 0x2df   : > { %v1707_v40 = vmul.f32 %v1702_v37, %v10313_v59  ;;  %v1704_v41 = vrot.slane %v1702_v37, 7  ;;  %v1705_v46 = vrot.slane %v1702_v37, 1  ;;  %v8699_v37 = vld [vmem:[%s12423_s3 + $0x14] sm:$0xf0]  ;;  %v6893_v19 = vor.u32 %v8740_v22, %v6890_v24  ;;  %v8720_v16 = vld [vmem:[%s12423_s3 + $0xc4] sm:$0xf] }
 0x2e0   : > { %2276 = vmatpush.bf16.msrb.mxu2 %v6881_v20  ;;  %2267 = vmatpush.bf16.msrb.mxu1 %v6785_v27  ;;  %v6856_v20 = vld [vmem:[%s12423_s3 + $0x120] sm:$0xf]  ;;  %v6730_v27 = vld [vmem:[%s12423_s3 + $0x28] sm:$0xf0]  ;;  %v6866_v24 = vld [vmem:[%s12423_s3 + $0x138] sm:$0xf0] }
 0x2e1   : > { %v1710_v26 = vpack.c.bf16 %v1707_v40, %v1707_v40  ;;  %v1706_v51 = vmul.f32 %v1704_v41, %v1292_v8  ;;  %v1708_v56 = vmul.f32 %v1705_v46, %v1294_v47  ;;  %v6721_v40 = vor.u32 %v8699_v37, %v6720_v36  ;;  %v6872_v41 = vld [vmem:[%s12423_s3 + $0x140] sm:$0xf]  ;;  %v8737_v46 = vld [vmem:[%s12423_s3 + $0x144] sm:$0xf0]  ;;  %v8704_v8 = vld [vmem:[%s12423_s3 + $0x44] sm:$0xf] }
 0x2e2   : > { %v6873_v47 = vor.u32 %v8737_v46, %v6872_v41  ;;  %v6857_v32 = vor.u32 %v8733_v21, %v6856_v20  ;;  %v8724_v36 = vld [vmem:[%s12423_s3 + $0xe4] sm:$0xf]  ;;  %v6826_v37 = vld [vmem:[%s12423_s3 + $0xe8] sm:$0xf0]  ;;  %v8738_v46 = vld [vmem:[%s12423_s3 + $0x154] sm:$0xf] }
 0x2e3   : > { %1925 = vmatmul.bf16.vlgmr.msra.gmra.mxu2 %v1710_v26  ;;  %v1709_v58 = vpack.c.bf16 %v1706_v51, %v1706_v51  ;;  %v1711_v25 = vpack.c.bf16 %v1708_v56, %v1708_v56  ;;  %v6746_v26 = vld [vmem:[%s12423_s3 + $0x48] sm:$0xf0]  ;;  %v6776_v51 = vld [vmem:[%s12423_s3 + $0x80] sm:$0xf]  ;;  %v8713_v56 = vld [vmem:[%s12423_s3 + $0x84] sm:$0xf0]  ;;  %2254 = vmatpush.bf16.msrb.mxu0 %v6721_v40  ;;  %v6733_v40 = vor.u32 %v8700_v29, %v6730_v27 }
 0x2e4   : > { %2277 = vmatpush.bf16.msrb.mxu2 %v6873_v47  ;;  %v6829_v41 = vor.u32 %v8724_v36, %v6826_v37  ;;  %v8718_v21 = vld [vmem:[%s12423_s3 + $0xb4] sm:$0xf]  ;;  %v6802_v29 = vld [vmem:[%s12423_s3 + $0xb8] sm:$0xf0]  ;;  %v6858_v27 = vld [vmem:[%s12423_s3 + $0x128] sm:$0xf0] }
 0x2e5   : > { %1912 = vmatmul.bf16.vlgmr.msra.gmra.mxu1 %v1709_v58  ;;  %1938 = vmatmul.bf16.vlgmr.msrb.gmra.mxu3 %v1711_v25  ;;  %v6749_v58 = vor.u32 %v8704_v8, %v6746_v26  ;;  %v6777_v25 = vor.u32 %v8713_v56, %v6776_v51  ;;  %v6882_v8 = vld [vmem:[%s12423_s3 + $0x158] sm:$0xf0]  ;;  %v6848_v26 = vld [vmem:[%s12423_s3 + $0x110] sm:$0xf]  ;;  %v8731_v51 = vld [vmem:[%s12423_s3 + $0x114] sm:$0xf0]  ;;  %v6805_v36 = vor.u32 %v8718_v21, %v6802_v29 }
 0x2e6   : > { %v6885_v47 = vor.u32 %v8738_v46, %v6882_v8  ;;  %v8698_v56 = vld [vmem:[%s12423_s3 + $0x14] sm:$0xf]  ;;  %v8716_v46 = vld [vmem:[%s12423_s3 + $0xa4] sm:$0xf]  ;;  %v6794_v8 = vld [vmem:[%s12423_s3 + $0xa8] sm:$0xf0] }
 0x2e7   : > { %2290 = vmatpush.bf16.msra.mxu3 %v6749_v58  ;;  %2268 = vmatpush.bf16.msrb.mxu1 %v6777_v25  ;;  %v6849_v58 = vor.u32 %v8731_v51, %v6848_v26  ;;  %v6722_v25 = vld [vmem:[%s12423_s3 + $0x18] sm:$0xf0]  ;;  %v6797_v51 = vor.u32 %v8716_v46, %v6794_v8 }
 0x2e8   : > { %2255 = vmatpush.bf16.msrb.mxu0 %v6713_v4  ;;  %2278 = vmatpush.bf16.msrb.mxu2 %v6865_v12  ;;  %v6840_v4 = vld [vmem:[%s12423_s3 + $0x100] sm:$0xf]  ;;  %v6714_v12 = vld [vmem:[%s12423_s3 + $0x8] sm:$0xf0]  ;;  %v6850_v26 = vld [vmem:[%s12423_s3 + $0x118] sm:$0xf0] }
 0x2e9   : > { %v6841_v13 = vor.u32 %v8729_v10, %v6840_v4  ;;  %v6717_v14 = vor.u32 %v8696_v11, %v6714_v12  ;;  %v579_v4 = vadd.f32 %v9952_v35, %v9939_v28  ;;  %v6789_v10 = vor.u32 %v8714_v0, %v6786_v55  ;;  %v8750_v55 = vld [vmem:[#allocation6 + $0x30] sm:$0xff] }
 0x2eb   : > { %2313 = vmatpush.bf16.msra.mxu1 %v6901_v50  ;;  %2291 = vmatpush.bf16.msra.mxu3 %v6741_v17  ;;  %v6725_v50 = vor.u32 %v8698_v56, %v6722_v25  ;;  %v6810_v17 = vld [vmem:[%s12423_s3 + $0xc8] sm:$0xf0] }
 0x2ec   : > { %2300 = vmatpush.bf16.msra.mxu0 %v6837_v31  ;;  %2279 = vmatpush.bf16.msrb.mxu2 %v6857_v32  ;;  %v8734_v31 = vld [vmem:[%s12423_s3 + $0x134] sm:$0xf]  ;;  %v6813_v22 = vor.u32 %v8720_v16, %v6810_v17  ;;  %v8732_v32 = vld [vmem:[%s12423_s3 + $0x124] sm:$0xf]  ;;  %v6778_v16 = vld [vmem:[%s12423_s3 + $0x88] sm:$0xf0] }
 0x2ed   : > { %v6869_v20 = vor.u32 %v8734_v31, %v6866_v24  ;;  %v1685_v24 = vand.u32 2147483648, %v10542_v18 }
 0x2ef   : > { %2314 = vmatpush.bf16.msra.mxu1 %v6893_v19  ;;  %2292 = vmatpush.bf16.msra.mxu3 %v6733_v40  ;;  %v9255_v19 = vpop.eup %9254 }
 0x2f0   : > { %2301 = vmatpush.bf16.msra.mxu0 %v6829_v41  ;;  %2280 = vmatpush.bf16.msrb.mxu2 %v6849_v58  ;;  %v1675_v37 = vmul.f32 %v9255_v19, %v10542_v18  ;;  %v6861_v41 = vor.u32 %v8732_v32, %v6858_v27  ;;  %vm1680_vm3 = vweird.f32 %v9255_v19  ;;  %v1686_v27 = vor.u32 1.1754944e-38, %v1685_v24  ;;  %v8754_v24 = vld [vmem:[#allocation6 + $0x50] sm:$0xff] }
 0x2f1   : > { %vm1681_vm5 = vmor %vm1679_vm4, %vm1680_vm3 }
 0x2f2   : > { %v1676_v56 = vsub.f32 1.0, %v1675_v37 }
 0x2f3   : > { %2315 = vmatpush.bf16.msra.mxu1 %v6885_v47  ;;  %2293 = vmatpush.bf16.msra.mxu3 %v6725_v50  ;;  %v8730_v47 = vld [vmem:[%s12423_s3 + $0x114] sm:$0xf] }
 0x2f4   : > { %2302 = vmatpush.bf16.msra.mxu0 %v6821_v1  ;;  %2281 = vmatpush.bf16.msrb.mxu2 %v6841_v13  ;;  %v6853_v25 = vor.u32 %v8730_v47, %v6850_v26  ;;  %v8728_v1 = vld [vmem:[%s12423_s3 + $0x104] sm:$0xf]  ;;  %v1677_v11 = vmul.f32 %v9255_v19, %v1676_v56  ;;  %v8751_v26 = vld [vmem:[#allocation6 + $0x38] sm:$0xff] }
 0x2f5   : > { %v6845_v13 = vor.u32 %v8728_v1, %v6842_v2  ;;  %v8757_v1 = vld [vmem:[#allocation6 + $0x68] sm:$0xff] }
 0x2f6   : > { %v1678_v35 = vadd.f32 %v9255_v19, %v1677_v11  ;;  %v8749_v2 = vld [vmem:[#allocation6 + $0x28] sm:$0xff] }
 0x2f7   : > { %2316 = vmatpush.bf16.msra.mxu1 %v6877_v9  ;;  %2294 = vmatpush.bf16.msra.mxu3 %v6717_v14  ;;  %v8712_v14 = vld [vmem:[%s12423_s3 + $0x84] sm:$0xf] }
 0x2f8   : > { %2303 = vmatpush.bf16.msra.mxu0 %v6813_v22  ;;  %v6781_v31 = vor.u32 %v8712_v14, %v6778_v16  ;;  %v1682_v29 = vsel %vm1681_vm5, %v9255_v19, %v1678_v35  ;;  %2566 = vmatpush.bf16.msra.mxu2 %v8751_v26  ;;  %v8748_v16 = vld [vmem:[#allocation6 + $0x20] sm:$0xff]  ;;  %v8747_v35 = vld [vmem:[#allocation6 + $0x18] sm:$0xff] }
 0x2fb   : > { %2317 = vmatpush.bf16.msra.mxu1 %v6869_v20  ;;  %v1683_v20 = vand.u32 2147483647, %v10542_v18 }
 0x2fc   : > { %2304 = vmatpush.bf16.msra.mxu0 %v6805_v36  ;;  %2567 = vmatpush.bf16.msra.mxu2 %v8750_v55  ;;  %v8799_v55 = vld [vmem:[%s12423_s3 + $0xf4] sm:$0xf0] }
 0x2fd   : > { %vm1684_vm6 = vcmp.eq.f32.partialorder %v1683_v20, 8.507059e+37 }
 0x2fe   : > { %v1687_v37 = vsel %vm1684_vm6, %v1686_v27, %v1682_v29  ;;  %v8762_v27 = vld [vmem:[#allocation6 + $0x90] sm:$0xff] }
 0x2ff   : > { %2318 = vmatpush.bf16.msra.mxu1 %v6861_v41 }
 0x300   : > { %2305 = vmatpush.bf16.msra.mxu0 %v6797_v51  ;;  %v8767_v51 = vld [vmem:[#allocation6 + $0xb8] sm:$0xff]  ;;  %2568 = vmatpush.bf16.msra.mxu2 %v8749_v2  ;;  %v7127_v2 = vld [vmem:[%s12423_s3 + $0xe0] sm:$0xf] }
 0x303   : > { %2319 = vmatpush.bf16.msra.mxu1 %v6853_v25 }
 0x304   : > { %2306 = vmatpush.bf16.msra.mxu0 %v6789_v10  ;;  %2569 = vmatpush.bf16.msra.mxu2 %v8748_v16  ;;  %v8795_v16 = vld [vmem:[%s12423_s3 + $0xd4] sm:$0xf0] }
 0x307   : > { %2320 = vmatpush.bf16.msra.mxu1 %v6845_v13 }
 0x308   : > { %2307 = vmatpush.bf16.msra.mxu0 %v6781_v31  ;;  %v8755_v31 = vld [vmem:[#allocation6 + $0x58] sm:$0xff]  ;;  %2570 = vmatpush.bf16.msra.mxu2 %v8747_v35  ;;  %v7199_v35 = vld [vmem:[%s12423_s3 + $0x170] sm:$0xf] }
 0x362   : > { %v1913_v40 = vpop.f32.mrf.mxu1 }
 0x366   : > { %v1926_v58 = vpop.f32.mrf.mxu2 }
 0x367   : > { %v1927_v50 = vadd.f32 %v1926_v58, %v1913_v40  ;;  %v8758_v58 = vld [vmem:[#allocation6 + $0x70] sm:$0xff] }
 0x368   : > { %v1939_v3 = vpop.f32.mrf.mxu3 }
 0x369   : > { %v1940_v9 = vadd.f32 %v1939_v3, %v1927_v50  ;;  %v8766_v50 = vld [vmem:[#allocation6 + $0xb0] sm:$0xff]  ;;  %v8765_v3 = vld [vmem:[#allocation6 + $0xa8] sm:$0xff] }
 0x36a   : > { %v1915_v12 = vpop.f32.mrf.mxu1 }
 0x36b   : > { %v1943_v17 = vadd.f32 %v1940_v9, %v579_v4  ;;  %v8756_v12 = vld [vmem:[#allocation6 + $0x60] sm:$0xff] }
 0x36d   : > { %9256 = vtanh.f32 %v1943_v17  ;;  %v8764_v17 = vld [vmem:[#allocation6 + $0xa0] sm:$0xff] }
 0x36e   : > { %v1928_v22 = vpop.f32.mrf.mxu2 }
 0x36f   : > { %v8763_v22 = vld [vmem:[#allocation6 + $0x98] sm:$0xff] }
 0x370   : > { %v1941_v21 = vpop.f32.mrf.mxu3 }
 0x373   : > { %v9257_v32 = vpop.eup %9256 }
 0x374   : > { %v1945_v36 = vsub.f32 %v9257_v32, %v10313_v59  ;;  %v8746_v32 = vld [vmem:[#allocation6 + $0x10] sm:$0xff] }
 0x375   : > { %2571 = vmatpush.bf16.msra.mxu2 %v8746_v32 }
 0x376   : > { %v1946_v40 = vmul.f32 %v1945_v36, %v1687_v37  ;;  %v8753_v37 = vld [vmem:[#allocation6 + $0x48] sm:$0xff] }
 0x378   : > { %v10667_v41 = vadd.f32 %v1946_v40, %v10313_v59  ;;  %v8759_v59 = vld [vmem:[#allocation6 + $0x78] sm:$0xff] }
 0x379   : > { %2579 = vmatpush.bf16.msrb.mxu3 %v8759_v59  ;;  %v8752_v59 = vld [vmem:[#allocation6 + $0x40] sm:$0xff] }
 0x37a   : > { %6709 = vst [vmem:[%s10316_s12 + $0x8] sm:$0xff] %v10667_v41  ;;  %v1958_v46 = vpack.c.bf16 %v10667_v41, %v10667_v41  ;;  %v10674_v18 = vrot.slane %v10667_v41, 7  ;;  %v10677_v19 = vrot.slane %v10667_v41, 1 }
 0x37c   : > { %2269 = vmatmul.bf16.vlgmr.msrb.gmra.mxu1 %v1958_v46  ;;  %v6903_v8 = vpack.c.bf16 %v10674_v18, %v10674_v18  ;;  %v6906_v47 = vpack.c.bf16 %v10677_v19, %v10677_v19 }
 0x37d   : > { %2580 = vmatpush.bf16.msrb.mxu3 %v8758_v58  ;;  %v8760_v58 = vld [vmem:[#allocation6 + $0x80] sm:$0xff] }
 0x37e   : > { %6904 = vmatmul.msk.bf16.vlgmr.msrb.gmra.mxu0 %vm10328_vm13, %v6903_v8  ;;  %6907 = vmatmul.msk.bf16.vlgmr.msrb.gmra.mxu2 %vm10338_vm14, %v6906_v47 }
 0x37f   : > { %6910 = vmatmul.msk.bf16.vlgmr.msra.gmra.mxu3 %vm10328_vm13, %v6903_v8  ;;  %2592 = vmatpush.bf16.msrb.mxu0 %v8767_v51  ;;  %v8761_v8 = vld [vmem:[#allocation6 + $0x88] sm:$0xff] }
 0x381   : > { %2581 = vmatpush.bf16.msrb.mxu3 %v8757_v1  ;;  %v8783_v1 = vld [vmem:[%s12423_s3 + $0x74] sm:$0xf0] }
 0x383   : > { %2593 = vmatpush.bf16.msrb.mxu0 %v8766_v50 }
 0x385   : > { %2582 = vmatpush.bf16.msrb.mxu3 %v8756_v12 }
 0x387   : > { %2594 = vmatpush.bf16.msrb.mxu0 %v8765_v3  ;;  %v8797_v3 = vld [vmem:[%s12423_s3 + $0xe4] sm:$0xf0] }
 0x389   : > { %2583 = vmatpush.bf16.msrb.mxu3 %v8755_v31  ;;  %v8779_v31 = vld [vmem:[%s12423_s3 + $0x54] sm:$0xf0] }
 0x38b   : > { %2595 = vmatpush.bf16.msrb.mxu0 %v8764_v17  ;;  %v7055_v17 = vld [vmem:[%s12423_s3 + $0x50] sm:$0xf] }
 0x38c   : > { %6913 = vmatmul.msk.bf16.vlgmr.msra.gmra.mxu1 %vm10338_vm14, %v6906_v47 }
 0x38d   : > { %2584 = vmatpush.bf16.msrb.mxu3 %v8754_v24  ;;  %v8815_v24 = vld [vmem:[%s12423_s3 + $0x174] sm:$0xf0] }
 0x38e   : > { %2308 = vmatmul.bf16.vlgmr.msra.gmra.mxu0 %v1958_v46  ;;  %v8745_v46 = vld [vmem:[#allocation6 + $0x8] sm:$0xff]  ;;  %v7200_v32 = vor.u32 %v8815_v24, %v7199_v35  ;;  %v7191_v24 = vld [vmem:[%s12423_s3 + $0x160] sm:$0xf] }
 0x38f   : > { %2596 = vmatpush.bf16.msrb.mxu0 %v8763_v22  ;;  %2572 = vmatpush.bf16.msra.mxu2 %v8745_v46  ;;  %v7047_v46 = vld [vmem:[%s12423_s3 + $0x40] sm:$0xf] }
 0x391   : > { %2585 = vmatpush.bf16.msrb.mxu3 %v8753_v37  ;;  %v8793_v37 = vld [vmem:[%s12423_s3 + $0xc4] sm:$0xf0] }
 0x393   : > { %2597 = vmatpush.bf16.msrb.mxu0 %v8762_v27  ;;  %v7073_v27 = vld [vmem:[%s12423_s3 + $0x78] sm:$0xf0] }
 0x395   : > { %2586 = vmatpush.bf16.msrb.mxu3 %v8752_v59 }
 0x397   : > { %2598 = vmatpush.bf16.msrb.mxu0 %v8761_v8  ;;  %v8777_v8 = vld [vmem:[%s12423_s3 + $0x44] sm:$0xf0] }
 0x398   : > { %v7048_v59 = vor.u32 %v8777_v8, %v7047_v46  ;;  %v7031_v8 = vld [vmem:[%s12423_s3 + $0x20] sm:$0xf] }
 0x399   : > { %2936 = vmatpush.bf16.msra.mxu3 %v7200_v32  ;;  %v8780_v32 = vld [vmem:[%s12423_s3 + $0x64] sm:$0xf] }
 0x39b   : > { %2599 = vmatpush.bf16.msrb.mxu0 %v8760_v58 }
 0x3f9   : > { %v2270_v56 = vpop.f32.mrf.mxu1 }
 0x3fb   : > { %v2257_v25 = vpop.f32.mrf.mxu0 }
 0x3fc   : > { %v2271_v0 = vadd.f32 %v2270_v56, %v2257_v25  ;;  %v8744_v56 = vld [vmem:[#allocation6] sm:$0xff] }
 0x3fd   : > { %2573 = vmatpush.bf16.msra.mxu2 %v8744_v56 }
 0x401   : > { %v2272_v4 = vpop.f32.mrf.mxu1  ;;  %v2283_v9 = vpop.f32.mrf.mxu2 }
 0x402   : > { %v2284_v10 = vadd.f32 %v2283_v9, %v2271_v0  ;;  %v2296_v11 = vpop.f32.mrf.mxu3  ;;  %v7135_v0 = vld [vmem:[%s12423_s3 + $0xf0] sm:$0xf]  ;;  %v7063_v9 = vld [vmem:[%s12423_s3 + $0x60] sm:$0xf] }
 0x403   : > { %v2259_v13 = vpop.f32.mrf.mxu0  ;;  %v7136_v50 = vor.u32 %v8799_v55, %v7135_v0 }
 0x404   : > { %v10692_v14 = vadd.f32 %v2284_v10, %v9955_v38  ;;  %v8781_v10 = vld [vmem:[%s12423_s3 + $0x64] sm:$0xf0]  ;;  %v7119_v13 = vld [vmem:[%s12423_s3 + $0xd0] sm:$0xf] }
 0x405   : > { %2923 = vmatpush.bf16.msrb.mxu2 %v7136_v50  ;;  %v7064_v12 = vor.u32 %v8781_v10, %v7063_v9  ;;  %v1954_v9 = vsel %vm623_vm11, %v10674_v18, 0.0  ;;  %v1956_v10 = vsel %vm628_vm12, %v10677_v19, 0.0  ;;  %v8791_v18 = vld [vmem:[%s12423_s3 + $0xb4] sm:$0xf0]  ;;  %v7039_v19 = vld [vmem:[%s12423_s3 + $0x30] sm:$0xf] }
 0x406   : > { %v6914_v46 = vmul.f32 -1.442695, %v10692_v14  ;;  %v8778_v14 = vld [vmem:[%s12423_s3 + $0x54] sm:$0xf] }
 0x409   : > { %v2285_v20 = vpop.f32.mrf.mxu2  ;;  %v2322_v21 = vpop.f32.mrf.mxu1 }
 0x40a   : > { %v2298_v29 = vpop.f32.mrf.mxu3  ;;  %v8782_v20 = vld [vmem:[%s12423_s3 + $0x74] sm:$0xf] }
 0x40b   : > { %v2309_v36 = vpop.f32.mrf.mxu0  ;;  %v7120_v29 = vor.u32 %v8795_v16, %v7119_v13 }
 0x40c   : > { %v2310_v38 = vadd.f32 %v2309_v36, %v2296_v11  ;;  %v7128_v11 = vor.u32 %v8797_v3, %v7127_v2  ;;  %v7056_v36 = vor.u32 %v8779_v31, %v7055_v17  ;;  %v7103_v31 = vld [vmem:[%s12423_s3 + $0xb0] sm:$0xf] }
 0x40d   : > { %v7104_v35 = vor.u32 %v8791_v18, %v7103_v31  ;;  %v8814_v31 = vld [vmem:[%s12423_s3 + $0x174] sm:$0xf]  ;;  %v7201_v18 = vld [vmem:[%s12423_s3 + $0x178] sm:$0xf0] }
 0x40e   : > { %v2323_v40 = vadd.f32 %v2322_v21, %v2310_v38  ;;  %2924 = vmatpush.bf16.msrb.mxu2 %v7128_v11  ;;  %v7111_v38 = vld [vmem:[%s12423_s3 + $0xc0] sm:$0xf] }
 0x410   : > { %v2327_v47 = vadd.f32 %v2323_v40, %v9958_v39  ;;  %v7071_v39 = vld [vmem:[%s12423_s3 + $0x70] sm:$0xf]  ;;  %v7076_v40 = vor.u32 %v8782_v20, %v7073_v27  ;;  %v8813_v20 = vld [vmem:[%s12423_s3 + $0x164] sm:$0xf0]  ;;  %v7065_v27 = vld [vmem:[%s12423_s3 + $0x68] sm:$0xf0] }
 0x411   : > { %v2324_v26 = vpop.f32.mrf.mxu1  ;;  %v7072_v4 = vor.u32 %v8783_v1, %v7071_v39 }
 0x412   : > { %v6915_v51 = vmul.f32 -1.442695, %v2327_v47  ;;  %2949 = vmatpush.bf16.msra.mxu0 %v7076_v40  ;;  %2925 = vmatpush.bf16.msrb.mxu2 %v7120_v29  ;;  %v7112_v47 = vor.u32 %v8793_v37, %v7111_v38  ;;  %v7192_v29 = vor.u32 %v8813_v20, %v7191_v24  ;;  %v7095_v38 = vld [vmem:[%s12423_s3 + $0xa0] sm:$0xf]  ;;  %v8789_v37 = vld [vmem:[%s12423_s3 + $0xa4] sm:$0xf0] }
 0x413   : > { %v2311_v25 = vpop.f32.mrf.mxu0  ;;  %2910 = vmatpush.bf16.msrb.mxu1 %v7072_v4  ;;  %v7096_v40 = vor.u32 %v8789_v37, %v7095_v38  ;;  %v8798_v38 = vld [vmem:[%s12423_s3 + $0xf4] sm:$0xf]  ;;  %v7137_v37 = vld [vmem:[%s12423_s3 + $0xf8] sm:$0xf0] }
 0x414   : > { %9258 = vpow2.f32 %v6915_v51  ;;  %2937 = vmatpush.bf16.msra.mxu3 %v7192_v29  ;;  %v8807_v29 = vld [vmem:[%s12423_s3 + $0x134] sm:$0xf0] }
 0x416   : > { %2926 = vmatpush.bf16.msrb.mxu2 %v7112_v47  ;;  %v8773_v47 = vld [vmem:[%s12423_s3 + $0x24] sm:$0xf0] }
 0x417   : > { %2911 = vmatpush.bf16.msrb.mxu1 %v7064_v12 }
 0x41a   : > { %v9259_v22 = vpop.eup %9258  ;;  %2927 = vmatpush.bf16.msrb.mxu2 %v7104_v35  ;;  %v7015_v35 = vld [vmem:[%s12423_s3] sm:$0xf] }
 0x41b   : > { %v2335_v21 = vadd.f32 1.0, %v9259_v22  ;;  %2912 = vmatpush.bf16.msrb.mxu1 %v7056_v36  ;;  %v8775_v22 = vld [vmem:[%s12423_s3 + $0x34] sm:$0xf0]  ;;  %v7068_v36 = vor.u32 %v8780_v32, %v7065_v27  ;;  %v8774_v32 = vld [vmem:[%s12423_s3 + $0x34] sm:$0xf] }
 0x41d   : > { %9260 = vrcp.f32 %v2335_v21  ;;  %v2362_v58 = vand.u32 2147483648, %v2335_v21  ;;  %v2360_v0 = vand.u32 2147483647, %v2335_v21  ;;  %vm2356_vm8 = vweird.f32 %v2335_v21  ;;  %2950 = vmatpush.bf16.msra.mxu0 %v7068_v36  ;;  %v7041_v36 = vld [vmem:[%s12423_s3 + $0x38] sm:$0xf0] }
 0x41e   : > { %2928 = vmatpush.bf16.msrb.mxu2 %v7096_v40  ;;  %9262 = vpow2.f32 %v6914_v46  ;;  %v7044_v40 = vor.u32 %v8774_v32, %v7041_v36  ;;  %v7140_v46 = vor.u32 %v8798_v38, %v7137_v37  ;;  %v7113_v36 = vld [vmem:[%s12423_s3 + $0xc8] sm:$0xf0]  ;;  %v8806_v38 = vld [vmem:[%s12423_s3 + $0x134] sm:$0xf] }
 0x41f   : > { %2913 = vmatpush.bf16.msrb.mxu1 %v7048_v59  ;;  %v2363_v39 = vor.u32 1.1754944e-38, %v2362_v58  ;;  %vm2361_vm10 = vcmp.eq.f32.partialorder %v2360_v0, 8.507059e+37  ;;  %v7032_v59 = vor.u32 %v8773_v47, %v7031_v8  ;;  %v7057_v58 = vld [vmem:[%s12423_s3 + $0x58] sm:$0xf0]  ;;  %v8787_v0 = vld [vmem:[%s12423_s3 + $0x94] sm:$0xf0] }
 0x420   : > { %v8812_v8 = vld [vmem:[%s12423_s3 + $0x164] sm:$0xf]  ;;  %v7193_v47 = vld [vmem:[%s12423_s3 + $0x168] sm:$0xf0] }
 0x423   : > { %v9261_v26 = vpop.eup %9260 }
 0x424   : > { %v2352_v51 = vmul.f32 %v9261_v26, %v2335_v21  ;;  %vm2357_vm7 = vweird.f32 %v9261_v26  ;;  %v7040_v21 = vor.u32 %v8775_v22, %v7039_v19  ;;  %v7204_v19 = vor.u32 %v8814_v31, %v7201_v18  ;;  %v8769_v22 = vld [vmem:[%s12423_s3 + $0x4] sm:$0xf0]  ;;  %v9263_v24 = vpop.eup %9262  ;;  %v8808_v18 = vld [vmem:[%s12423_s3 + $0x144] sm:$0xf] }
 0x425   : > { %vm2358_vm9 = vmor %vm2356_vm8, %vm2357_vm7  ;;  %v7016_v20 = vor.u32 %v8769_v22, %v7015_v35  ;;  %v7143_v35 = vld [vmem:[%s12423_s3 + $0x100] sm:$0xf] }
 0x426   : > { %v2353_v56 = vsub.f32 1.0, %v2352_v51  ;;  %2914 = vmatpush.bf16.msrb.mxu1 %v7040_v21  ;;  %v8811_v51 = vld [vmem:[%s12423_s3 + $0x154] sm:$0xf0]  ;;  %v7167_v21 = vld [vmem:[%s12423_s3 + $0x130] sm:$0xf] }
 0x427   : > { %v7168_v27 = vor.u32 %v8807_v29, %v7167_v21  ;;  %v7017_v21 = vld [vmem:[%s12423_s3 + $0x8] sm:$0xf0] }
 0x428   : > { %v2354_v25 = vmul.f32 %v9261_v26, %v2353_v56 }
 0x42a   : > { %v2355_v55 = vadd.f32 %v9261_v26, %v2354_v25  ;;  %v7087_v25 = vld [vmem:[%s12423_s3 + $0x90] sm:$0xf]  ;;  %2915 = vmatpush.bf16.msrb.mxu1 %v7032_v59  ;;  %v10877_v59 = vadd.f32 1.0, %v9263_v24  ;;  %v8801_v24 = vld [vmem:[%s12423_s3 + $0x104] sm:$0xf0] }
 0x42b   : > { %v7144_v29 = vor.u32 %v8801_v24, %v7143_v35  ;;  %v8784_v24 = vld [vmem:[%s12423_s3 + $0x84] sm:$0xf] }
 0x42c   : > { %v2359_v50 = vsel %vm2358_vm9, %v9261_v26, %v2355_v55  ;;  %v7183_v26 = vld [vmem:[%s12423_s3 + $0x150] sm:$0xf]  ;;  %v7060_v55 = vor.u32 %v8778_v14, %v7057_v58  ;;  %v8805_v14 = vld [vmem:[%s12423_s3 + $0x124] sm:$0xf0]  ;;  %9264 = vrcp.f32 %v10877_v59  ;;  %vm2341_vm0 = vweird.f32 %v10877_v59 }
 0x42d   : > { %v2364_v1 = vsel %vm2361_vm10, %v2363_v39, %v2359_v50  ;;  %v7184_v56 = vor.u32 %v8811_v51, %v7183_v26  ;;  %v7088_v39 = vor.u32 %v8787_v0, %v7087_v25  ;;  %v7023_v50 = vld [vmem:[%s12423_s3 + $0x10] sm:$0xf]  ;;  %v7196_v26 = vor.u32 %v8812_v8, %v7193_v47  ;;  %v7159_v51 = vld [vmem:[%s12423_s3 + $0x120] sm:$0xf]  ;;  %v7033_v25 = vld [vmem:[%s12423_s3 + $0x28] sm:$0xf0] }
 0x42e   : > { %v2369_v2 = vmul.f32 %v2364_v1, %v10667_v41  ;;  %v2366_v3 = vrot.slane %v2364_v1, 7  ;;  %v2367_v4 = vrot.slane %v2364_v1, 1  ;;  %v8771_v1 = vld [vmem:[%s12423_s3 + $0x14] sm:$0xf0]  ;;  %2951 = vmatpush.bf16.msra.mxu0 %v7060_v55  ;;  %v7160_v58 = vor.u32 %v8805_v14, %v7159_v51  ;;  %v8796_v0 = vld [vmem:[%s12423_s3 + $0xe4] sm:$0xf] }
 0x42f   : > { %2938 = vmatpush.bf16.msra.mxu3 %v7184_v56  ;;  %2929 = vmatpush.bf16.msrb.mxu2 %v7088_v39  ;;  %v8772_v56 = vld [vmem:[%s12423_s3 + $0x24] sm:$0xf]  ;;  %v7129_v55 = vld [vmem:[%s12423_s3 + $0xe8] sm:$0xf0]  ;;  %v8790_v47 = vld [vmem:[%s12423_s3 + $0xb4] sm:$0xf] }
 0x430   : > { %v2372_v11 = vpack.c.bf16 %v2369_v2, %v2369_v2  ;;  %v2368_v12 = vmul.f32 %v2366_v3, %v1954_v9  ;;  %v2370_v13 = vmul.f32 %v2367_v4, %v1956_v10  ;;  %v7024_v2 = vor.u32 %v8771_v1, %v7023_v50  ;;  %v7175_v3 = vld [vmem:[%s12423_s3 + $0x140] sm:$0xf]  ;;  %v8809_v4 = vld [vmem:[%s12423_s3 + $0x144] sm:$0xf0]  ;;  %v8776_v9 = vld [vmem:[%s12423_s3 + $0x44] sm:$0xf] }
 0x431   : > { %v7176_v10 = vor.u32 %v8809_v4, %v7175_v3  ;;  %v7036_v39 = vor.u32 %v8772_v56, %v7033_v25  ;;  %v7132_v50 = vor.u32 %v8796_v0, %v7129_v55  ;;  %v8810_v1 = vld [vmem:[%s12423_s3 + $0x154] sm:$0xf]  ;;  %v7151_v4 = vld [vmem:[%s12423_s3 + $0x110] sm:$0xf]  ;;  %v8804_v51 = vld [vmem:[%s12423_s3 + $0x124] sm:$0xf] }
 0x432   : > { %2587 = vmatmul.bf16.vlgmr.msrb.gmra.mxu3 %v2372_v11  ;;  %v2371_v16 = vpack.c.bf16 %v2368_v12, %v2368_v12  ;;  %v2373_v17 = vpack.c.bf16 %v2370_v13, %v2370_v13  ;;  %v7049_v11 = vld [vmem:[%s12423_s3 + $0x48] sm:$0xf0]  ;;  %v7079_v12 = vld [vmem:[%s12423_s3 + $0x80] sm:$0xf]  ;;  %v8785_v13 = vld [vmem:[%s12423_s3 + $0x84] sm:$0xf0]  ;;  %2916 = vmatpush.bf16.msrb.mxu1 %v7024_v2 }
 0x433   : > { %2939 = vmatpush.bf16.msra.mxu3 %v7176_v10  ;;  %v7185_v2 = vld [vmem:[%s12423_s3 + $0x158] sm:$0xf0]  ;;  %v8770_v10 = vld [vmem:[%s12423_s3 + $0x14] sm:$0xf]  ;;  %v7161_v56 = vld [vmem:[%s12423_s3 + $0x128] sm:$0xf0] }
 0x434   : > { %2574 = vmatmul.bf16.vlgmr.msra.gmra.mxu2 %v2371_v16  ;;  %2600 = vmatmul.bf16.vlgmr.msrb.gmra.mxu0 %v2373_v17  ;;  %v7052_v16 = vor.u32 %v8776_v9, %v7049_v11  ;;  %v7080_v17 = vor.u32 %v8785_v13, %v7079_v12  ;;  %v7188_v3 = vor.u32 %v8810_v1, %v7185_v2  ;;  %v8803_v9 = vld [vmem:[%s12423_s3 + $0x114] sm:$0xf0]  ;;  %v7025_v12 = vld [vmem:[%s12423_s3 + $0x18] sm:$0xf0]  ;;  %v8794_v13 = vld [vmem:[%s12423_s3 + $0xd4] sm:$0xf] }
 0x435   : > { %v7152_v11 = vor.u32 %v8803_v9, %v7151_v4  ;;  %v7164_v0 = vor.u32 %v8804_v51, %v7161_v56  ;;  %v8788_v55 = vld [vmem:[%s12423_s3 + $0xa4] sm:$0xf]  ;;  %v7153_v1 = vld [vmem:[%s12423_s3 + $0x118] sm:$0xf0] }
 0x436   : > { %2952 = vmatpush.bf16.msra.mxu0 %v7052_v16  ;;  %2930 = vmatpush.bf16.msrb.mxu2 %v7080_v17  ;;  %v7121_v16 = vld [vmem:[%s12423_s3 + $0xd8] sm:$0xf0]  ;;  %v7028_v17 = vor.u32 %v8770_v10, %v7025_v12 }
 0x437   : > { %2917 = vmatpush.bf16.msrb.mxu1 %v7016_v20  ;;  %2940 = vmatpush.bf16.msra.mxu3 %v7168_v27  ;;  %v7124_v31 = vor.u32 %v8794_v13, %v7121_v16  ;;  %v8768_v20 = vld [vmem:[%s12423_s3 + $0x4] sm:$0xf]  ;;  %v7089_v12 = vld [vmem:[%s12423_s3 + $0x98] sm:$0xf0] }
 0x438   : > { %v7020_v32 = vor.u32 %v8768_v20, %v7017_v21  ;;  %v8792_v27 = vld [vmem:[%s12423_s3 + $0xc4] sm:$0xf]  ;;  %v7081_v20 = vld [vmem:[%s12423_s3 + $0x88] sm:$0xf0] }
 0x439   : > { %v7116_v37 = vor.u32 %v8792_v27, %v7113_v36  ;;  %v8800_v16 = vld [vmem:[%s12423_s3 + $0x104] sm:$0xf] }
 0x43a   : > { %2975 = vmatpush.bf16.msra.mxu2 %v7204_v19  ;;  %2953 = vmatpush.bf16.msra.mxu0 %v7044_v40  ;;  %v7177_v19 = vld [vmem:[%s12423_s3 + $0x148] sm:$0xf0]  ;;  %v7169_v40 = vld [vmem:[%s12423_s3 + $0x138] sm:$0xf0] }
 0x43b   : > { %2962 = vmatpush.bf16.msra.mxu1 %v7140_v46  ;;  %2941 = vmatpush.bf16.msra.mxu3 %v7160_v58  ;;  %v7180_v22 = vor.u32 %v8808_v18, %v7177_v19  ;;  %v9265_v46 = vpop.eup %9264  ;;  %v7172_v8 = vor.u32 %v8806_v38, %v7169_v40  ;;  %v2347_v38 = vand.u32 2147483648, %v10877_v59 }
 0x43c   : > { %v2337_v25 = vmul.f32 %v9265_v46, %v10877_v59  ;;  %vm2342_vm15 = vweird.f32 %v9265_v46 }
 0x43d   : > { %vm2343_vm1 = vmor %vm2341_vm0, %vm2342_vm15 }
 0x43e   : > { %2976 = vmatpush.bf16.msra.mxu2 %v7196_v26  ;;  %2954 = vmatpush.bf16.msra.mxu0 %v7036_v39  ;;  %v7105_v26 = vld [vmem:[%s12423_s3 + $0xb8] sm:$0xf0]  ;;  %v7097_v39 = vld [vmem:[%s12423_s3 + $0xa8] sm:$0xf0]  ;;  %v2338_v4 = vsub.f32 1.0, %v2337_v25 }
 0x43f   : > { %2963 = vmatpush.bf16.msra.mxu1 %v7132_v50  ;;  %2942 = vmatpush.bf16.msra.mxu3 %v7152_v11  ;;  %v7108_v58 = vor.u32 %v8790_v47, %v7105_v26  ;;  %v8802_v50 = vld [vmem:[%s12423_s3 + $0x114] sm:$0xf] }
 0x440   : > { %v7156_v10 = vor.u32 %v8802_v50, %v7153_v1  ;;  %v8786_v11 = vld [vmem:[%s12423_s3 + $0x94] sm:$0xf]  ;;  %v2339_v35 = vmul.f32 %v9265_v46, %v2338_v4  ;;  %v8830_v1 = vld [vmem:[#allocation6 + $0x70] sm:$0xff] }
 0x441   : > { %v7092_v19 = vor.u32 %v8786_v11, %v7089_v12  ;;  %v526_v12 = vadd.f32 %v9963_v43, %v9932_v23  ;;  %v8819_v43 = vld [vmem:[#allocation6 + $0x18] sm:$0xff] }
 0x442   : > { %2977 = vmatpush.bf16.msra.mxu2 %v7188_v3  ;;  %2955 = vmatpush.bf16.msra.mxu0 %v7028_v17  ;;  %v7100_v3 = vor.u32 %v8788_v55, %v7097_v39  ;;  %v7145_v17 = vld [vmem:[%s12423_s3 + $0x108] sm:$0xf0]  ;;  %v2340_v27 = vadd.f32 %v9265_v46, %v2339_v35  ;;  %v8828_v35 = vld [vmem:[#allocation6 + $0x60] sm:$0xff] }
 0x443   : > { %2964 = vmatpush.bf16.msra.mxu1 %v7124_v31  ;;  %2943 = vmatpush.bf16.msra.mxu3 %v7144_v29  ;;  %v8839_v55 = vld [vmem:[#allocation6 + $0xb8] sm:$0xff] }
 0x444   : > { %v2344_v40 = vsel %vm2343_vm1, %v9265_v46, %v2340_v27  ;;  %v8826_v27 = vld [vmem:[#allocation6 + $0x50] sm:$0xff] }
 0x446   : > { %2978 = vmatpush.bf16.msra.mxu2 %v7180_v22  ;;  %2956 = vmatpush.bf16.msra.mxu0 %v7020_v32  ;;  %v7148_v22 = vor.u32 %v8800_v16, %v7145_v17  ;;  %v7084_v32 = vor.u32 %v8784_v24, %v7081_v20  ;;  %v8821_v16 = vld [vmem:[#allocation6 + $0x28] sm:$0xff]  ;;  %v8836_v24 = vld [vmem:[#allocation6 + $0xa0] sm:$0xff] }
 0x447   : > { %2965 = vmatpush.bf16.msra.mxu1 %v7116_v37  ;;  %v2345_v37 = vand.u32 2147483647, %v10877_v59  ;;  %v8837_v17 = vld [vmem:[#allocation6 + $0xa8] sm:$0xff] }
 0x449   : > { %vm2346_vm2 = vcmp.eq.f32.partialorder %v2345_v37, 8.507059e+37  ;;  %v8834_v37 = vld [vmem:[#allocation6 + $0x90] sm:$0xff] }
 0x44a   : > { %2979 = vmatpush.bf16.msra.mxu2 %v7172_v8 }
 0x44b   : > { %2966 = vmatpush.bf16.msra.mxu1 %v7108_v58 }
 0x44e   : > { %2980 = vmatpush.bf16.msra.mxu2 %v7164_v0  ;;  %v8823_v0 = vld [vmem:[#allocation6 + $0x38] sm:$0xff] }
 0x44f   : > { %2967 = vmatpush.bf16.msra.mxu1 %v7100_v3  ;;  %3228 = vmatpush.bf16.msrb.mxu3 %v8823_v0  ;;  %v8838_v3 = vld [vmem:[#allocation6 + $0xb0] sm:$0xff] }
 0x452   : > { %2981 = vmatpush.bf16.msra.mxu2 %v7156_v10  ;;  %v8829_v10 = vld [vmem:[#allocation6 + $0x68] sm:$0xff] }
 0x453   : > { %2968 = vmatpush.bf16.msra.mxu1 %v7092_v19 }
 0x456   : > { %2982 = vmatpush.bf16.msra.mxu2 %v7148_v22  ;;  %v8820_v22 = vld [vmem:[#allocation6 + $0x20] sm:$0xff] }
 0x457   : > { %2969 = vmatpush.bf16.msra.mxu1 %v7084_v32  ;;  %v8835_v32 = vld [vmem:[#allocation6 + $0x98] sm:$0xff] }
 0x4b1   : > { %v2601_v14 = vpop.f32.mrf.mxu0 }
 0x4b5   : > { %v2588_v2 = vpop.f32.mrf.mxu3 }
 0x4b7   : > { %v2575_v9 = vpop.f32.mrf.mxu2 }
 0x4b8   : > { %v2589_v13 = vadd.f32 %v2588_v2, %v2575_v9  ;;  %v8822_v2 = vld [vmem:[#allocation6 + $0x30] sm:$0xff] }
 0x4b9   : > { %v2603_v31 = vpop.f32.mrf.mxu0  ;;  %3229 = vmatpush.bf16.msrb.mxu3 %v8822_v2 }
 0x4ba   : > { %v2602_v18 = vadd.f32 %v2601_v14, %v2589_v13 }
 0x4bc   : > { %v2605_v21 = vadd.f32 %v2602_v18, %v9961_v42  ;;  %v2348_v42 = vor.u32 1.1754944e-38, %v2347_v38  ;;  %v8818_v38 = vld [vmem:[#allocation6 + $0x10] sm:$0xff] }
 0x4bd   : > { %v2590_v29 = vpop.f32.mrf.mxu3  ;;  %3230 = vmatpush.bf16.msrb.mxu3 %v8821_v16 }
 0x4be   : > { %9266 = vtanh.f32 %v2605_v21  ;;  %v2349_v26 = vsel %vm2346_vm2, %v2348_v42, %v2344_v40  ;;  %v8827_v21 = vld [vmem:[#allocation6 + $0x58] sm:$0xff] }
 0x4bf   : > { %v2577_v36 = vpop.f32.mrf.mxu2 }
 0x4c1   : > { %3231 = vmatpush.bf16.msrb.mxu3 %v8820_v22  ;;  %v8851_v22 = vld [vmem:[%s12423_s3 + $0x54] sm:$0xf0] }
 0x4c4   : > { %v9267_v8 = vpop.eup %9266 }
 0x4c5   : > { %v2607_v47 = vsub.f32 %v9267_v8, %v10667_v41  ;;  %3232 = vmatpush.bf16.msrb.mxu3 %v8819_v43  ;;  %v8825_v8 = vld [vmem:[#allocation6 + $0x48] sm:$0xff]  ;;  %v7414_v43 = vld [vmem:[%s12423_s3 + $0xc0] sm:$0xf] }
 0x4c7   : > { %v2608_v51 = vmul.f32 %v2607_v47, %v2349_v26  ;;  %v555_v47 = vadd.f32 %v9965_v44, %v9950_v34  ;;  %v7438_v44 = vld [vmem:[%s12423_s3 + $0xf0] sm:$0xf] }
 0x4c9   : > { %v11001_v14 = vadd.f32 %v2608_v51, %v10667_v41  ;;  %v8831_v41 = vld [vmem:[#allocation6 + $0x78] sm:$0xff]  ;;  %3233 = vmatpush.bf16.msrb.mxu3 %v8818_v38  ;;  %v8817_v51 = vld [vmem:[#allocation6 + $0x8] sm:$0xff] }
 0x4ca   : > { %3241 = vmatpush.bf16.msrb.mxu0 %v8831_v41 }
 0x4cb   : > { %7012 = vst [vmem:[%s10316_s12 + $0x10] sm:$0xff] %v11001_v14  ;;  %v2620_v56 = vpack.c.bf16 %v11001_v14, %v11001_v14  ;;  %v11008_v59 = vrot.slane %v11001_v14, 7  ;;  %v11011_v46 = vrot.slane %v11001_v14, 1 }
 0x4cd   : > { %2931 = vmatmul.bf16.vlgmr.msrb.gmra.mxu2 %v2620_v56  ;;  %v7206_v58 = vpack.c.bf16 %v11008_v59, %v11008_v59  ;;  %v7209_v25 = vpack.c.bf16 %v11011_v46, %v11011_v46  ;;  %3234 = vmatpush.bf16.msrb.mxu3 %v8817_v51 }
 0x4ce   : > { %3242 = vmatpush.bf16.msrb.mxu0 %v8830_v1  ;;  %v7374_v1 = vld [vmem:[%s12423_s3 + $0x70] sm:$0xf] }
 0x4cf   : > { %7207 = vmatmul.msk.bf16.vlgmr.msrb.gmra.mxu1 %vm10328_vm13, %v7206_v58  ;;  %7210 = vmatmul.msk.bf16.vlgmr.msra.gmra.mxu3 %vm10338_vm14, %v7209_v25 }
 0x4d0   : > { %7213 = vmatmul.msk.bf16.vlgmr.msra.gmra.mxu0 %vm10328_vm13, %v7206_v58  ;;  %3254 = vmatpush.bf16.msrb.mxu1 %v8839_v55  ;;  %v8816_v55 = vld [vmem:[#allocation6] sm:$0xff] }
 0x4d1   : > { %3235 = vmatpush.bf16.msrb.mxu3 %v8816_v55  ;;  %v2618_v55 = vsel %vm628_vm12, %v11011_v46, 0.0  ;;  %v7502_v46 = vld [vmem:[%s12423_s3 + $0x170] sm:$0xf] }
 0x4d2   : > { %3243 = vmatpush.bf16.msrb.mxu0 %v8829_v10  ;;  %v8869_v10 = vld [vmem:[%s12423_s3 + $0xe4] sm:$0xf0] }
 0x4d4   : > { %3255 = vmatpush.bf16.msrb.mxu1 %v8838_v3 }
 0x4d6   : > { %3244 = vmatpush.bf16.msrb.mxu0 %v8828_v35  ;;  %v7358_v35 = vld [vmem:[%s12423_s3 + $0x50] sm:$0xf] }
 0x4d8   : > { %3256 = vmatpush.bf16.msrb.mxu1 %v8837_v17 }
 0x4da   : > { %3245 = vmatpush.bf16.msrb.mxu0 %v8827_v21 }
 0x4dc   : > { %3257 = vmatpush.bf16.msrb.mxu1 %v8836_v24 }
 0x4dd   : > { %7216 = vmatmul.msk.bf16.vlgmr.msra.gmra.mxu2 %vm10338_vm14, %v7209_v25  ;;  %v8824_v25 = vld [vmem:[#allocation6 + $0x40] sm:$0xff] }
 0x4de   : > { %3246 = vmatpush.bf16.msrb.mxu0 %v8826_v27 }
 0x4df   : > { %2970 = vmatmul.bf16.vlgmr.msra.gmra.mxu1 %v2620_v56  ;;  %v8833_v56 = vld [vmem:[#allocation6 + $0x88] sm:$0xff] }
 0x4e0   : > { %3258 = vmatpush.bf16.msrb.mxu1 %v8835_v32  ;;  %v8865_v32 = vld [vmem:[%s12423_s3 + $0xc4] sm:$0xf0] }
 0x4e1   : > { %v7415_v27 = vor.u32 %v8865_v32, %v7414_v43  ;;  %v7368_v43 = vld [vmem:[%s12423_s3 + $0x68] sm:$0xf0]  ;;  %v7398_v32 = vld [vmem:[%s12423_s3 + $0xa0] sm:$0xf] }
 0x4e2   : > { %3247 = vmatpush.bf16.msrb.mxu0 %v8825_v8 }
 0x4e4   : > { %3259 = vmatpush.bf16.msrb.mxu1 %v8834_v37 }
 0x4e6   : > { %3248 = vmatpush.bf16.msrb.mxu0 %v8824_v25 }
 0x4e8   : > { %3260 = vmatpush.bf16.msrb.mxu1 %v8833_v56 }
 0x54c   : > { %v2919_v39 = vpop.f32.mrf.mxu1 }
 0x54d   : > { %v2958_v50 = vpop.f32.mrf.mxu0 }
 0x550   : > { %v2932_v4 = vpop.f32.mrf.mxu2 }
 0x551   : > { %v2933_v9 = vadd.f32 %v2932_v4, %v2919_v39  ;;  %v8832_v39 = vld [vmem:[#allocation6 + $0x80] sm:$0xff]  ;;  %v8855_v4 = vld [vmem:[%s12423_s3 + $0x74] sm:$0xf0] }
 0x552   : > { %v2945_v11 = vpop.f32.mrf.mxu3  ;;  %3261 = vmatpush.bf16.msrb.mxu1 %v8832_v39 }
 0x553   : > { %v2946_v13 = vadd.f32 %v2945_v11, %v2933_v9  ;;  %v7430_v9 = vld [vmem:[%s12423_s3 + $0xe0] sm:$0xf]  ;;  %v7375_v11 = vor.u32 %v8855_v4, %v7374_v1 }
 0x554   : > { %v2921_v31 = vpop.f32.mrf.mxu1  ;;  %v7431_v16 = vor.u32 %v8869_v10, %v7430_v9  ;;  %v8887_v9 = vld [vmem:[%s12423_s3 + $0x174] sm:$0xf0]  ;;  %v8854_v10 = vld [vmem:[%s12423_s3 + $0x74] sm:$0xf] }
 0x555   : > { %v11027_v18 = vadd.f32 %v2946_v13, %v526_v12  ;;  %v2960_v19 = vpop.f32.mrf.mxu0  ;;  %v7366_v12 = vld [vmem:[%s12423_s3 + $0x60] sm:$0xf]  ;;  %v8853_v13 = vld [vmem:[%s12423_s3 + $0x64] sm:$0xf0]  ;;  %3572 = vmatpush.bf16.msrb.mxu2 %v7375_v11  ;;  %v7422_v31 = vld [vmem:[%s12423_s3 + $0xd0] sm:$0xf] }
 0x556   : > { %v7367_v17 = vor.u32 %v8853_v13, %v7366_v12  ;;  %v8867_v19 = vld [vmem:[%s12423_s3 + $0xd4] sm:$0xf0]  ;;  %v7376_v11 = vld [vmem:[%s12423_s3 + $0x78] sm:$0xf0]  ;;  %v7503_v12 = vor.u32 %v8887_v9, %v7502_v46  ;;  %v7382_v46 = vld [vmem:[%s12423_s3 + $0x80] sm:$0xf] }
 0x557   : > { %v7423_v21 = vor.u32 %v8867_v19, %v7422_v31  ;;  %v7379_v13 = vor.u32 %v8854_v10, %v7376_v11  ;;  %v7342_v31 = vld [vmem:[%s12423_s3 + $0x30] sm:$0xf]  ;;  %v8886_v11 = vld [vmem:[%s12423_s3 + $0x174] sm:$0xf] }
 0x558   : > { %v2934_v20 = vpop.f32.mrf.mxu2  ;;  %3598 = vmatpush.bf16.msra.mxu0 %v7503_v12  ;;  %v7504_v12 = vld [vmem:[%s12423_s3 + $0x178] sm:$0xf0] }
 0x559   : > { %3573 = vmatpush.bf16.msrb.mxu2 %v7367_v17  ;;  %v8863_v17 = vld [vmem:[%s12423_s3 + $0xb4] sm:$0xf0]  ;;  %3611 = vmatpush.bf16.msra.mxu1 %v7379_v13  ;;  %v7507_v13 = vor.u32 %v8886_v11, %v7504_v12  ;;  %v7446_v11 = vld [vmem:[%s12423_s3 + $0x100] sm:$0xf] }
 0x55a   : > { %v2947_v29 = vpop.f32.mrf.mxu3 }
 0x55b   : > { %v7359_v29 = vor.u32 %v8851_v22, %v7358_v35  ;;  %v8847_v35 = vld [vmem:[%s12423_s3 + $0x34] sm:$0xf0]  ;;  %v7494_v22 = vld [vmem:[%s12423_s3 + $0x160] sm:$0xf] }
 0x55c   : > { %v2971_v36 = vpop.f32.mrf.mxu1 }
 0x55d   : > { %v2972_v40 = vadd.f32 %v2971_v36, %v2958_v50  ;;  %v8871_v50 = vld [vmem:[%s12423_s3 + $0xf4] sm:$0xf0]  ;;  %3574 = vmatpush.bf16.msrb.mxu2 %v7359_v29  ;;  %v8852_v29 = vld [vmem:[%s12423_s3 + $0x64] sm:$0xf] }
 0x55e   : > { %v7439_v3 = vor.u32 %v8871_v50, %v7438_v44 }
 0x560   : > { %v2984_v42 = vpop.f32.mrf.mxu2  ;;  %3585 = vmatpush.bf16.msra.mxu3 %v7439_v3  ;;  %v7350_v3 = vld [vmem:[%s12423_s3 + $0x40] sm:$0xf] }
 0x561   : > { %v2985_v26 = vadd.f32 %v2984_v42, %v2972_v40 }
 0x563   : > { %v2989_v58 = vadd.f32 %v2985_v26, %v555_v47 }
 0x564   : > { %v2973_v41 = vpop.f32.mrf.mxu1  ;;  %3586 = vmatpush.bf16.msra.mxu3 %v7431_v16  ;;  %v7406_v16 = vld [vmem:[%s12423_s3 + $0xb0] sm:$0xf] }
 0x565   : > { %v7218_v0 = vmul.f32 -1.442695, %v2989_v58  ;;  %v7407_v19 = vor.u32 %v8863_v17, %v7406_v16  ;;  %v7318_v16 = vld [vmem:[%s12423_s3] sm:$0xf]  ;;  %v8841_v17 = vld [vmem:[%s12423_s3 + $0x4] sm:$0xf0] }
 0x567   : > { %9268 = vpow2.f32 %v7218_v0  ;;  %v2616_v0 = vsel %vm623_vm11, %v11008_v59, 0.0  ;;  %v8849_v59 = vld [vmem:[%s12423_s3 + $0x44] sm:$0xf0] }
 0x568   : > { %v2986_v2 = vpop.f32.mrf.mxu2  ;;  %3587 = vmatpush.bf16.msra.mxu3 %v7423_v21  ;;  %v7351_v4 = vor.u32 %v8849_v59, %v7350_v3  ;;  %v7352_v59 = vld [vmem:[%s12423_s3 + $0x48] sm:$0xf0] }
 0x56a   : > { %3575 = vmatpush.bf16.msrb.mxu2 %v7351_v4  ;;  %v8857_v4 = vld [vmem:[%s12423_s3 + $0x84] sm:$0xf0] }
 0x56b   : > { %v7383_v10 = vor.u32 %v8857_v4, %v7382_v46 }
 0x56c   : > { %3588 = vmatpush.bf16.msra.mxu3 %v7415_v27  ;;  %v7371_v27 = vor.u32 %v8852_v29, %v7368_v43  ;;  %v8870_v29 = vld [vmem:[%s12423_s3 + $0xf4] sm:$0xf]  ;;  %v7440_v43 = vld [vmem:[%s12423_s3 + $0xf8] sm:$0xf0] }
 0x56d   : > { %v9269_v24 = vpop.eup %9268 }
 0x56e   : > { %v2997_v20 = vadd.f32 1.0, %v9269_v24  ;;  %v8885_v24 = vld [vmem:[%s12423_s3 + $0x164] sm:$0xf0]  ;;  %3612 = vmatpush.bf16.msra.mxu1 %v7371_v27  ;;  %v7443_v27 = vor.u32 %v8870_v29, %v7440_v43  ;;  %v7472_v29 = vld [vmem:[%s12423_s3 + $0x138] sm:$0xf0] }
 0x56f   : > { %v7495_v21 = vor.u32 %v8885_v24, %v7494_v22  ;;  %v8879_v22 = vld [vmem:[%s12423_s3 + $0x134] sm:$0xf0]  ;;  %v8846_v24 = vld [vmem:[%s12423_s3 + $0x34] sm:$0xf] }
 0x570   : > { %9270 = vrcp.f32 %v2997_v20  ;;  %v3024_v40 = vand.u32 2147483648, %v2997_v20  ;;  %v3022_v42 = vand.u32 2147483647, %v2997_v20  ;;  %vm3018_vm4 = vweird.f32 %v2997_v20  ;;  %3589 = vmatpush.bf16.msra.mxu3 %v7407_v19 }
 0x571   : > { %3599 = vmatpush.bf16.msra.mxu0 %v7495_v21  ;;  %v7319_v19 = vor.u32 %v8841_v17, %v7318_v16  ;;  %v7344_v21 = vld [vmem:[%s12423_s3 + $0x38] sm:$0xf0]  ;;  %v8840_v16 = vld [vmem:[%s12423_s3 + $0x4] sm:$0xf]  ;;  %v7320_v17 = vld [vmem:[%s12423_s3 + $0x8] sm:$0xf0] }
 0x572   : > { %v3025_v26 = vor.u32 1.1754944e-38, %v3024_v40  ;;  %vm3023_vm6 = vcmp.eq.f32.partialorder %v3022_v42, 8.507059e+37  ;;  %v7334_v40 = vld [vmem:[%s12423_s3 + $0x20] sm:$0xf] }
 0x576   : > { %v9271_v36 = vpop.eup %9270 }
 0x577   : > { %v3014_v38 = vmul.f32 %v9271_v36, %v2997_v20  ;;  %vm3019_vm3 = vweird.f32 %v9271_v36  ;;  %v7343_v20 = vor.u32 %v8847_v35, %v7342_v31  ;;  %v7470_v35 = vld [vmem:[%s12423_s3 + $0x130] sm:$0xf] }
 0x578   : > { %vm3020_vm5 = vmor %vm3018_vm4, %vm3019_vm3 }
 0x579   : > { %v3015_v37 = vsub.f32 1.0, %v3014_v38  ;;  %3576 = vmatpush.bf16.msrb.mxu2 %v7343_v20  ;;  %v7471_v20 = vor.u32 %v8879_v22, %v7470_v35  ;;  %v8864_v35 = vld [vmem:[%s12423_s3 + $0xc4] sm:$0xf]  ;;  %v7416_v22 = vld [vmem:[%s12423_s3 + $0xc8] sm:$0xf0] }
 0x57b   : > { %v3016_v8 = vmul.f32 %v9271_v36, %v3015_v37  ;;  %v7217_v37 = vmul.f32 -1.442695, %v11027_v18  ;;  %v8850_v18 = vld [vmem:[%s12423_s3 + $0x54] sm:$0xf] }
 0x57d   : > { %v3017_v47 = vadd.f32 %v9271_v36, %v3016_v8  ;;  %v8845_v8 = vld [vmem:[%s12423_s3 + $0x24] sm:$0xf0]  ;;  %9272 = vpow2.f32 %v7217_v37 }
 0x57e   : > { %v7335_v42 = vor.u32 %v8845_v8, %v7334_v40  ;;  %v7462_v8 = vld [vmem:[%s12423_s3 + $0x120] sm:$0xf] }
 0x57f   : > { %v3021_v51 = vsel %vm3020_vm5, %v9271_v36, %v3017_v47  ;;  %v8861_v36 = vld [vmem:[%s12423_s3 + $0xa4] sm:$0xf0]  ;;  %v7486_v47 = vld [vmem:[%s12423_s3 + $0x150] sm:$0xf] }
 0x580   : > { %v3026_v56 = vsel %vm3023_vm6, %v3025_v26, %v3021_v51  ;;  %v7399_v38 = vor.u32 %v8861_v36, %v7398_v32  ;;  %v8883_v26 = vld [vmem:[%s12423_s3 + $0x154] sm:$0xf0]  ;;  %3577 = vmatpush.bf16.msrb.mxu2 %v7335_v42  ;;  %v7347_v32 = vor.u32 %v8846_v24, %v7344_v21  ;;  %v8884_v36 = vld [vmem:[%s12423_s3 + $0x164] sm:$0xf]  ;;  %v8877_v42 = vld [vmem:[%s12423_s3 + $0x124] sm:$0xf0]  ;;  %v7419_v21 = vor.u32 %v8864_v35, %v7416_v22 }
 0x581   : > { %v3031_v58 = vmul.f32 %v3026_v56, %v11001_v14  ;;  %v3028_v25 = vrot.slane %v3026_v56, 7  ;;  %v3029_v41 = vrot.slane %v3026_v56, 1  ;;  %v7487_v51 = vor.u32 %v8883_v26, %v7486_v47  ;;  %v7360_v56 = vld [vmem:[%s12423_s3 + $0x58] sm:$0xf0]  ;;  %v8844_v47 = vld [vmem:[%s12423_s3 + $0x24] sm:$0xf] }
 0x582   : > { %3590 = vmatpush.bf16.msra.mxu3 %v7399_v38  ;;  %v7496_v38 = vld [vmem:[%s12423_s3 + $0x168] sm:$0xf0]  ;;  %v7463_v26 = vor.u32 %v8877_v42, %v7462_v8  ;;  %v8878_v24 = vld [vmem:[%s12423_s3 + $0x134] sm:$0xf] }
 0x583   : > { %v3034_v39 = vpack.c.bf16 %v3031_v58, %v3031_v58  ;;  %v3030_v44 = vmul.f32 %v3028_v25, %v2616_v0  ;;  %v3032_v50 = vmul.f32 %v3029_v41, %v2618_v55  ;;  %v7390_v58 = vld [vmem:[%s12423_s3 + $0x90] sm:$0xf]  ;;  %v8859_v25 = vld [vmem:[%s12423_s3 + $0x94] sm:$0xf0]  ;;  %v7363_v41 = vor.u32 %v8850_v18, %v7360_v56  ;;  %3600 = vmatpush.bf16.msra.mxu0 %v7487_v51  ;;  %v9273_v31 = vpop.eup %9272  ;;  %v7336_v18 = vld [vmem:[%s12423_s3 + $0x28] sm:$0xf0] }
 0x584   : > { %v7391_v0 = vor.u32 %v8859_v25, %v7390_v58  ;;  %v7326_v55 = vld [vmem:[%s12423_s3 + $0x10] sm:$0xf]  ;;  %v11213_v37 = vadd.f32 1.0, %v9273_v31  ;;  %v7499_v40 = vor.u32 %v8884_v36, %v7496_v38  ;;  %v8868_v51 = vld [vmem:[%s12423_s3 + $0xe4] sm:$0xf]  ;;  %v7339_v58 = vor.u32 %v8844_v47, %v7336_v18 }
 0x585   : > { %3249 = vmatmul.bf16.vlgmr.msrb.gmra.mxu0 %v3034_v39  ;;  %v3033_v1 = vpack.c.bf16 %v3030_v44, %v3030_v44  ;;  %v3035_v2 = vpack.c.bf16 %v3032_v50, %v3032_v50  ;;  %v8843_v39 = vld [vmem:[%s12423_s3 + $0x14] sm:$0xf0]  ;;  %3613 = vmatpush.bf16.msra.mxu1 %v7363_v41  ;;  %v7478_v50 = vld [vmem:[%s12423_s3 + $0x140] sm:$0xf]  ;;  %v7432_v56 = vld [vmem:[%s12423_s3 + $0xe8] sm:$0xf0] }
 0x586   : > { %3591 = vmatpush.bf16.msra.mxu3 %v7391_v0  ;;  %v7327_v44 = vor.u32 %v8843_v39, %v7326_v55  ;;  %v7435_v25 = vor.u32 %v8868_v51, %v7432_v56  ;;  %v8882_v41 = vld [vmem:[%s12423_s3 + $0x154] sm:$0xf]  ;;  %v7488_v0 = vld [vmem:[%s12423_s3 + $0x158] sm:$0xf0]  ;;  %9274 = vrcp.f32 %v11213_v37  ;;  %v7454_v39 = vld [vmem:[%s12423_s3 + $0x110] sm:$0xf]  ;;  %vm3003_vm8 = vweird.f32 %v11213_v37 }
 0x587   : > { %3236 = vmatmul.bf16.vlgmr.msrb.gmra.mxu3 %v3033_v1  ;;  %3262 = vmatmul.bf16.vlgmr.msrb.gmra.mxu1 %v3035_v2  ;;  %v8881_v1 = vld [vmem:[%s12423_s3 + $0x144] sm:$0xf0]  ;;  %v8848_v2 = vld [vmem:[%s12423_s3 + $0x44] sm:$0xf]  ;;  %v7491_v55 = vor.u32 %v8882_v41, %v7488_v0  ;;  %v7408_v36 = vld [vmem:[%s12423_s3 + $0xb8] sm:$0xf0] }
 0x588   : > { %v7479_v3 = vor.u32 %v8881_v1, %v7478_v50  ;;  %3578 = vmatpush.bf16.msrb.mxu2 %v7327_v44  ;;  %v7355_v9 = vor.u32 %v8848_v2, %v7352_v59  ;;  %v8875_v44 = vld [vmem:[%s12423_s3 + $0x114] sm:$0xf0]  ;;  %v8842_v50 = vld [vmem:[%s12423_s3 + $0x14] sm:$0xf]  ;;  %v7328_v2 = vld [vmem:[%s12423_s3 + $0x18] sm:$0xf0] }
 0x589   : > { %v7455_v1 = vor.u32 %v8875_v44, %v7454_v39  ;;  %v7424_v59 = vld [vmem:[%s12423_s3 + $0xd8] sm:$0xf0]  ;;  %v7331_v46 = vor.u32 %v8842_v50, %v7328_v2  ;;  %v8876_v38 = vld [vmem:[%s12423_s3 + $0x124] sm:$0xf]  ;;  %v7464_v8 = vld [vmem:[%s12423_s3 + $0x128] sm:$0xf0] }
 0x58a   : > { %3601 = vmatpush.bf16.msra.mxu0 %v7479_v3  ;;  %3614 = vmatpush.bf16.msra.mxu1 %v7355_v9  ;;  %v8866_v3 = vld [vmem:[%s12423_s3 + $0xd4] sm:$0xf]  ;;  %v8880_v9 = vld [vmem:[%s12423_s3 + $0x144] sm:$0xf]  ;;  %v7400_v51 = vld [vmem:[%s12423_s3 + $0xa8] sm:$0xf0] }
 0x58b   : > { %3592 = vmatpush.bf16.msra.mxu3 %v7383_v10  ;;  %v7427_v4 = vor.u32 %v8866_v3, %v7424_v59  ;;  %v7480_v10 = vld [vmem:[%s12423_s3 + $0x148] sm:$0xf0]  ;;  %v8860_v18 = vld [vmem:[%s12423_s3 + $0xa4] sm:$0xf]  ;;  %v8874_v56 = vld [vmem:[%s12423_s3 + $0x114] sm:$0xf] }
 0x58c   : > { %3579 = vmatpush.bf16.msrb.mxu2 %v7319_v19  ;;  %v7483_v12 = vor.u32 %v8880_v9, %v7480_v10  ;;  %v7323_v19 = vor.u32 %v8840_v16, %v7320_v17  ;;  %v9275_v43 = vpop.eup %9274  ;;  %v8858_v44 = vld [vmem:[%s12423_s3 + $0x94] sm:$0xf]  ;;  %v7392_v50 = vld [vmem:[%s12423_s3 + $0x98] sm:$0xf0]  ;;  %v8872_v2 = vld [vmem:[%s12423_s3 + $0x104] sm:$0xf] }
 0x58d   : > { %v2999_v47 = vmul.f32 %v9275_v43, %v11213_v37  ;;  %v7448_v3 = vld [vmem:[%s12423_s3 + $0x108] sm:$0xf0]  ;;  %v7395_v9 = vor.u32 %v8858_v44, %v7392_v50  ;;  %vm3004_vm7 = vweird.f32 %v9275_v43  ;;  %v3007_v35 = vand.u32 2147483647, %v11213_v37  ;;  %v8901_v44 = vld [vmem:[#allocation6 + $0x68] sm:$0xff] }
 0x58e   : > { %3602 = vmatpush.bf16.msra.mxu0 %v7471_v20  ;;  %3615 = vmatpush.bf16.msra.mxu1 %v7347_v32  ;;  %v7475_v32 = vor.u32 %v8878_v24, %v7472_v29  ;;  %vm3005_vm9 = vmor %vm3003_vm8, %vm3004_vm7 }
 0x58f   : > { %3637 = vmatpush.bf16.msrb.mxu3 %v7507_v13  ;;  %v8873_v13 = vld [vmem:[%s12423_s3 + $0x104] sm:$0xf0]  ;;  %v3000_v41 = vsub.f32 1.0, %v2999_v47  ;;  %vm3008_vm10 = vcmp.eq.f32.partialorder %v3007_v35, 8.507059e+37 }
 0x590   : > { %3624 = vmatpush.bf16.msra.mxu2 %v7443_v27  ;;  %v7447_v31 = vor.u32 %v8873_v13, %v7446_v11  ;;  %v8862_v27 = vld [vmem:[%s12423_s3 + $0xb4] sm:$0xf]  ;;  %v7451_v11 = vor.u32 %v8872_v2, %v7448_v3  ;;  %v7384_v13 = vld [vmem:[%s12423_s3 + $0x88] sm:$0xf0]  ;;  %v8909_v2 = vld [vmem:[#allocation6 + $0xa8] sm:$0xff] }
 0x591   : > { %v7411_v42 = vor.u32 %v8862_v27, %v7408_v36  ;;  %v3001_v10 = vmul.f32 %v9275_v43, %v3000_v41  ;;  %v8895_v47 = vld [vmem:[#allocation6 + $0x38] sm:$0xff]  ;;  %v8910_v41 = vld [vmem:[#allocation6 + $0xb0] sm:$0xff] }
 0x592   : > { %3603 = vmatpush.bf16.msra.mxu0 %v7463_v26  ;;  %3616 = vmatpush.bf16.msra.mxu1 %v7339_v58  ;;  %v7467_v26 = vor.u32 %v8876_v38, %v7464_v8  ;;  %v7456_v58 = vld [vmem:[%s12423_s3 + $0x118] sm:$0xf0] }
 0x593   : > { %3638 = vmatpush.bf16.msrb.mxu3 %v7499_v40  ;;  %v7459_v39 = vor.u32 %v8874_v56, %v7456_v58 }
 0x594   : > { %3625 = vmatpush.bf16.msra.mxu2 %v7435_v25  ;;  %v7403_v25 = vor.u32 %v8860_v18, %v7400_v51  ;;  %v8902_v51 = vld [vmem:[#allocation6 + $0x70] sm:$0xff] }
 0x596   : > { %3604 = vmatpush.bf16.msra.mxu0 %v7455_v1  ;;  %3617 = vmatpush.bf16.msra.mxu1 %v7331_v46  ;;  %v584_v46 = vadd.f32 %v9967_v45, %v9939_v28  ;;  %v3002_v45 = vadd.f32 %v9275_v43, %v3001_v10  ;;  %v8899_v10 = vld [vmem:[#allocation6 + $0x58] sm:$0xff] }
 0x597   : > { %3639 = vmatpush.bf16.msrb.mxu3 %v7491_v55 }
 0x598   : > { %3626 = vmatpush.bf16.msra.mxu2 %v7427_v4  ;;  %v3006_v22 = vsel %vm3005_vm9, %v9275_v43, %v3002_v45 }
 0x59a   : > { %3605 = vmatpush.bf16.msra.mxu0 %v7447_v31  ;;  %3618 = vmatpush.bf16.msra.mxu1 %v7323_v19  ;;  %v3009_v19 = vand.u32 2147483648, %v11213_v37 }
 0x59b   : > { %3640 = vmatpush.bf16.msrb.mxu3 %v7483_v12  ;;  %v8856_v12 = vld [vmem:[%s12423_s3 + $0x84] sm:$0xf] }
 0x59c   : > { %3627 = vmatpush.bf16.msra.mxu2 %v7419_v21  ;;  %v7387_v17 = vor.u32 %v8856_v12, %v7384_v13  ;;  %v8907_v12 = vld [vmem:[#allocation6 + $0x98] sm:$0xff]  ;;  %v8898_v13 = vld [vmem:[#allocation6 + $0x50] sm:$0xff] }
 0x59e   : > { %3890 = vmatpush.bf16.msrb.mxu0 %v8895_v47  ;;  %v8927_v47 = vld [vmem:[%s12423_s3 + $0x74] sm:$0xf0] }
 0x59f   : > { %3641 = vmatpush.bf16.msrb.mxu3 %v7475_v32 }
 0x5a0   : > { %3628 = vmatpush.bf16.msra.mxu2 %v7411_v42  ;;  %v8903_v42 = vld [vmem:[#allocation6 + $0x78] sm:$0xff] }
 0x5a1   : > { %3903 = vmatpush.bf16.msrb.mxu1 %v8903_v42 }
 0x5a3   : > { %3642 = vmatpush.bf16.msrb.mxu3 %v7467_v26  ;;  %v8911_v26 = vld [vmem:[#allocation6 + $0xb8] sm:$0xff] }
 0x5a4   : > { %3629 = vmatpush.bf16.msra.mxu2 %v7403_v25  ;;  %v8894_v25 = vld [vmem:[#allocation6 + $0x30] sm:$0xff] }
 0x5a5   : > { %3904 = vmatpush.bf16.msrb.mxu1 %v8902_v51  ;;  %3891 = vmatpush.bf16.msrb.mxu0 %v8894_v25 }
 0x5a7   : > { %3643 = vmatpush.bf16.msrb.mxu3 %v7459_v39 }
 0x5a8   : > { %3630 = vmatpush.bf16.msra.mxu2 %v7395_v9  ;;  %v8908_v9 = vld [vmem:[#allocation6 + $0xa0] sm:$0xff] }
 0x5a9   : > { %3905 = vmatpush.bf16.msrb.mxu1 %v8901_v44  ;;  %v8923_v44 = vld [vmem:[%s12423_s3 + $0x54] sm:$0xf0] }
 0x5ab   : > { %3644 = vmatpush.bf16.msrb.mxu3 %v7451_v11  ;;  %v8891_v11 = vld [vmem:[#allocation6 + $0x18] sm:$0xff] }
 0x5ac   : > { %3631 = vmatpush.bf16.msra.mxu2 %v7387_v17  ;;  %v8906_v17 = vld [vmem:[#allocation6 + $0x90] sm:$0xff] }
 0x602   : > { %v3250_v20 = vpop.f32.mrf.mxu0 }
 0x604   : > { %v3263_v40 = vpop.f32.mrf.mxu1 }
 0x60a   : > { %v3237_v0 = vpop.f32.mrf.mxu3  ;;  %v3252_v55 = vpop.f32.mrf.mxu0 }
 0x60b   : > { %v3251_v1 = vadd.f32 %v3250_v20, %v3237_v0  ;;  %v3010_v20 = vor.u32 1.1754944e-38, %v3009_v19  ;;  %v8897_v19 = vld [vmem:[#allocation6 + $0x48] sm:$0xff] }
 0x60c   : > { %v3265_v59 = vpop.f32.mrf.mxu1 }
 0x60d   : > { %v3264_v4 = vadd.f32 %v3263_v40, %v3251_v1  ;;  %v3011_v29 = vsel %vm3008_vm10, %v3010_v20, %v3006_v22  ;;  %v8893_v1 = vld [vmem:[#allocation6 + $0x28] sm:$0xff]  ;;  %v8900_v59 = vld [vmem:[#allocation6 + $0x60] sm:$0xff] }
 0x60e   : > { %3892 = vmatpush.bf16.msrb.mxu0 %v8893_v1  ;;  %3906 = vmatpush.bf16.msrb.mxu1 %v8900_v59  ;;  %v8889_v22 = vld [vmem:[#allocation6 + $0x8] sm:$0xff]  ;;  %v7805_v1 = vld [vmem:[%s12423_s3 + $0x170] sm:$0xf]  ;;  %v8926_v59 = vld [vmem:[%s12423_s3 + $0x74] sm:$0xf] }
 0x60f   : > { %v3267_v16 = vadd.f32 %v3264_v4, %v584_v46  ;;  %v8892_v4 = vld [vmem:[#allocation6 + $0x20] sm:$0xff] }
 0x611   : > { %9276 = vtanh.f32 %v3267_v16  ;;  %v8890_v16 = vld [vmem:[#allocation6 + $0x10] sm:$0xff] }
 0x612   : > { %v3239_v31 = vpop.f32.mrf.mxu3  ;;  %3893 = vmatpush.bf16.msrb.mxu0 %v8892_v4  ;;  %3907 = vmatpush.bf16.msrb.mxu1 %v8899_v10 }
 0x616   : > { %3894 = vmatpush.bf16.msrb.mxu0 %v8891_v11  ;;  %3908 = vmatpush.bf16.msrb.mxu1 %v8898_v13  ;;  %v7717_v13 = vld [vmem:[%s12423_s3 + $0xc0] sm:$0xf] }
 0x617   : > { %v9277_v24 = vpop.eup %9276 }
 0x618   : > { %v3269_v21 = vsub.f32 %v9277_v24, %v11001_v14  ;;  %v8905_v24 = vld [vmem:[#allocation6 + $0x88] sm:$0xff] }
 0x61a   : > { %v3270_v32 = vmul.f32 %v3269_v21, %v3011_v29  ;;  %3895 = vmatpush.bf16.msrb.mxu0 %v8890_v16  ;;  %3909 = vmatpush.bf16.msrb.mxu1 %v8897_v19  ;;  %v8896_v21 = vld [vmem:[#allocation6 + $0x40] sm:$0xff]  ;;  %v7653_v16 = vld [vmem:[%s12423_s3 + $0x40] sm:$0xf] }
 0x61c   : > { %v11338_v27 = vadd.f32 %v3270_v32, %v11001_v14 }
 0x61e   : > { %7315 = vst [vmem:[%s10316_s12 + $0x18] sm:$0xff] %v11338_v27  ;;  %v3282_v36 = vpack.c.bf16 %v11338_v27, %v11338_v27  ;;  %v11345_v37 = vrot.slane %v11338_v27, 7  ;;  %v11348_v43 = vrot.slane %v11338_v27, 1  ;;  %3896 = vmatpush.bf16.msrb.mxu0 %v8889_v22  ;;  %3910 = vmatpush.bf16.msrb.mxu1 %v8896_v21 }
 0x620   : > { %3593 = vmatmul.bf16.vlgmr.msra.gmra.mxu3 %v3282_v36  ;;  %v7509_v38 = vpack.c.bf16 %v11345_v37, %v11345_v37  ;;  %v7512_v40 = vpack.c.bf16 %v11348_v43, %v11348_v43 }
 0x622   : > { %7510 = vmatmul.msk.bf16.vlgmr.msrb.gmra.mxu2 %vm10328_vm13, %v7509_v38  ;;  %7513 = vmatmul.msk.bf16.vlgmr.msra.gmra.mxu0 %vm10338_vm14, %v7512_v40 }
 0x623   : > { %7516 = vmatmul.msk.bf16.vlgmr.msra.gmra.mxu1 %vm10328_vm13, %v7509_v38  ;;  %3916 = vmatpush.bf16.msrb.mxu2 %v8911_v26  ;;  %v8904_v38 = vld [vmem:[#allocation6 + $0x80] sm:$0xff]  ;;  %v7733_v26 = vld [vmem:[%s12423_s3 + $0xe0] sm:$0xf] }
 0x627   : > { %3917 = vmatpush.bf16.msrb.mxu2 %v8910_v41 }
 0x62b   : > { %3918 = vmatpush.bf16.msrb.mxu2 %v8909_v2 }
 0x62f   : > { %3919 = vmatpush.bf16.msrb.mxu2 %v8908_v9 }
 0x630   : > { %7519 = vmatmul.msk.bf16.vlgmr.msrb.gmra.mxu3 %vm10338_vm14, %v7512_v40 }
 0x632   : > { %3632 = vmatmul.bf16.vlgmr.msra.gmra.mxu2 %v3282_v36  ;;  %v8888_v36 = vld [vmem:[#allocation6] sm:$0xff] }
 0x633   : > { %3920 = vmatpush.bf16.msrb.mxu2 %v8907_v12  ;;  %3897 = vmatpush.bf16.msrb.mxu0 %v8888_v36 }
 0x637   : > { %3921 = vmatpush.bf16.msrb.mxu2 %v8906_v17  ;;  %v8921_v17 = vld [vmem:[%s12423_s3 + $0x44] sm:$0xf0] }
 0x63b   : > { %3922 = vmatpush.bf16.msrb.mxu2 %v8905_v24 }
 0x63f   : > { %3923 = vmatpush.bf16.msrb.mxu2 %v8904_v38 }
 0x69f   : > { %v3607_v14 = vpop.f32.mrf.mxu0 }
 0x6a0   : > { %v3620_v8 = vpop.f32.mrf.mxu1 }
 0x6a3   : > { %v3594_v18 = vpop.f32.mrf.mxu3 }
 0x6a5   : > { %v3581_v56 = vpop.f32.mrf.mxu2 }
 0x6a6   : > { %v3595_v58 = vadd.f32 %v3594_v18, %v3581_v56  ;;  %v8941_v18 = vld [vmem:[%s12423_s3 + $0xe4] sm:$0xf0]  ;;  %v7669_v56 = vld [vmem:[%s12423_s3 + $0x60] sm:$0xf] }
 0x6a7   : > { %v3609_v0 = vpop.f32.mrf.mxu0  ;;  %v7734_v25 = vor.u32 %v8941_v18, %v7733_v26 }
 0x6a8   : > { %v3608_v55 = vadd.f32 %v3607_v14, %v3595_v58  ;;  %v3622_v39 = vpop.f32.mrf.mxu1  ;;  %v7741_v14 = vld [vmem:[%s12423_s3 + $0xf0] sm:$0xf]  ;;  %v8925_v58 = vld [vmem:[%s12423_s3 + $0x64] sm:$0xf0] }
 0x6a9   : > { %v7670_v41 = vor.u32 %v8925_v58, %v7669_v56  ;;  %v7725_v0 = vld [vmem:[%s12423_s3 + $0xd0] sm:$0xf] }
 0x6aa   : > { %v11363_v50 = vadd.f32 %v3608_v55, %v9970_v48  ;;  %v8939_v55 = vld [vmem:[%s12423_s3 + $0xd4] sm:$0xf0]  ;;  %v7661_v39 = vld [vmem:[%s12423_s3 + $0x50] sm:$0xf] }
 0x6ab   : > { %v3596_v3 = vpop.f32.mrf.mxu3  ;;  %v7726_v9 = vor.u32 %v8939_v55, %v7725_v0  ;;  %v7662_v12 = vor.u32 %v8923_v44, %v7661_v39  ;;  %v7709_v58 = vld [vmem:[%s12423_s3 + $0xb0] sm:$0xf]  ;;  %v7797_v0 = vld [vmem:[%s12423_s3 + $0x160] sm:$0xf]  ;;  %v8957_v39 = vld [vmem:[%s12423_s3 + $0x164] sm:$0xf0] }
 0x6ac   : > { %v8959_v3 = vld [vmem:[%s12423_s3 + $0x174] sm:$0xf0]  ;;  %v8924_v44 = vld [vmem:[%s12423_s3 + $0x64] sm:$0xf] }
 0x6ad   : > { %v3583_v46 = vpop.f32.mrf.mxu2  ;;  %v7806_v10 = vor.u32 %v8959_v3, %v7805_v1  ;;  %v7671_v1 = vld [vmem:[%s12423_s3 + $0x68] sm:$0xf0] }
 0x6ae   : > { %v7679_v46 = vld [vmem:[%s12423_s3 + $0x78] sm:$0xf0]  ;;  %v7674_v3 = vor.u32 %v8924_v44, %v7671_v1 }
 0x6af   : > { %v7682_v11 = vor.u32 %v8926_v59, %v7679_v46  ;;  %4260 = vmatpush.bf16.msra.mxu1 %v7806_v10  ;;  %v7701_v59 = vld [vmem:[%s12423_s3 + $0xa0] sm:$0xf]  ;;  %v8933_v46 = vld [vmem:[%s12423_s3 + $0xa4] sm:$0xf0] }
 0x6b0   : > { %v8917_v10 = vld [vmem:[%s12423_s3 + $0x24] sm:$0xf0] }
 0x6b1   : > { %4273 = vmatpush.bf16.msra.mxu2 %v7682_v11  ;;  %v7789_v11 = vld [vmem:[%s12423_s3 + $0x150] sm:$0xf] }
 0x6b3   : > { %v3646_v48 = vpop.f32.mrf.mxu3 }
 0x6b5   : > { %v3633_v45 = vpop.f32.mrf.mxu2  ;;  %4274 = vmatpush.bf16.msra.mxu2 %v7674_v3  ;;  %v7799_v3 = vld [vmem:[%s12423_s3 + $0x168] sm:$0xf0] }
 0x6b6   : > { %v3634_v31 = vadd.f32 %v3633_v45, %v3620_v8  ;;  %v8943_v8 = vld [vmem:[%s12423_s3 + $0xf4] sm:$0xf0] }
 0x6b7   : > { %v7742_v42 = vor.u32 %v8943_v8, %v7741_v14 }
 0x6b8   : > { %v3647_v35 = vadd.f32 %v3646_v48, %v3634_v31  ;;  %v8937_v48 = vld [vmem:[%s12423_s3 + $0xc4] sm:$0xf0]  ;;  %v7654_v31 = vor.u32 %v8921_v17, %v7653_v16  ;;  %v8922_v17 = vld [vmem:[%s12423_s3 + $0x54] sm:$0xf] }
 0x6b9   : > { %4247 = vmatpush.bf16.msra.mxu0 %v7742_v42  ;;  %v7718_v45 = vor.u32 %v8937_v48, %v7717_v13  ;;  %v3280_v42 = vsel %vm628_vm12, %v11348_v43, 0.0  ;;  %v7645_v43 = vld [vmem:[%s12423_s3 + $0x30] sm:$0xf]  ;;  %v7520_v13 = vmul.f32 -1.442695, %v11363_v50 }
 0x6ba   : > { %v3651_v20 = vadd.f32 %v3647_v35, %v9973_v49  ;;  %v7677_v49 = vld [vmem:[%s12423_s3 + $0x70] sm:$0xf]  ;;  %v8931_v50 = vld [vmem:[%s12423_s3 + $0x94] sm:$0xf0] }
 0x6bb   : > { %v3648_v29 = vpop.f32.mrf.mxu3  ;;  %v7678_v51 = vor.u32 %v8927_v47, %v7677_v49  ;;  %v3278_v49 = vsel %vm623_vm11, %v11345_v37, 0.0  ;;  %v8935_v37 = vld [vmem:[%s12423_s3 + $0xb4] sm:$0xf0] }
 0x6bc   : > { %v7521_v32 = vmul.f32 -1.442695, %v3651_v20 }
 0x6bd   : > { %v3635_v40 = vpop.f32.mrf.mxu2  ;;  %4234 = vmatpush.bf16.msra.mxu3 %v7678_v51  ;;  %4248 = vmatpush.bf16.msra.mxu0 %v7734_v25  ;;  %v7710_v25 = vor.u32 %v8935_v37, %v7709_v58  ;;  %v7773_v37 = vld [vmem:[%s12423_s3 + $0x130] sm:$0xf] }
 0x6be   : > { %9278 = vpow2.f32 %v7521_v32 }
 0x6c1   : > { %4235 = vmatpush.bf16.msra.mxu3 %v7670_v41  ;;  %4249 = vmatpush.bf16.msra.mxu0 %v7726_v9  ;;  %v8919_v41 = vld [vmem:[%s12423_s3 + $0x34] sm:$0xf0]  ;;  %v7702_v9 = vor.u32 %v8933_v46, %v7701_v59 }
 0x6c2   : > { %v7646_v55 = vor.u32 %v8919_v41, %v7645_v43  ;;  %v8918_v43 = vld [vmem:[%s12423_s3 + $0x34] sm:$0xf] }
 0x6c4   : > { %v9279_v2 = vpop.eup %9278 }
 0x6c5   : > { %v3659_v4 = vadd.f32 1.0, %v9279_v2  ;;  %4236 = vmatpush.bf16.msra.mxu3 %v7662_v12  ;;  %4250 = vmatpush.bf16.msra.mxu0 %v7718_v45  ;;  %v7798_v2 = vor.u32 %v8957_v39, %v7797_v0  ;;  %v8955_v12 = vld [vmem:[%s12423_s3 + $0x154] sm:$0xf0]  ;;  %v7663_v45 = vld [vmem:[%s12423_s3 + $0x58] sm:$0xf0] }
 0x6c6   : > { %v7790_v16 = vor.u32 %v8955_v12, %v7789_v11  ;;  %v7647_v0 = vld [vmem:[%s12423_s3 + $0x38] sm:$0xf0]  ;;  %v7639_v12 = vld [vmem:[%s12423_s3 + $0x28] sm:$0xf0] }
 0x6c7   : > { %9280 = vrcp.f32 %v3659_v4  ;;  %v3686_v24 = vand.u32 2147483648, %v3659_v4  ;;  %v3684_v21 = vand.u32 2147483647, %v3659_v4  ;;  %vm3680_vm0 = vweird.f32 %v3659_v4  ;;  %4261 = vmatpush.bf16.msra.mxu1 %v7798_v2  ;;  %v7743_v39 = vld [vmem:[%s12423_s3 + $0xf8] sm:$0xf0] }
 0x6c8   : > { %9282 = vpow2.f32 %v7520_v13  ;;  %v7650_v44 = vor.u32 %v8918_v43, %v7647_v0  ;;  %v8956_v2 = vld [vmem:[%s12423_s3 + $0x164] sm:$0xf]  ;;  %v8934_v0 = vld [vmem:[%s12423_s3 + $0xb4] sm:$0xf] }
 0x6c9   : > { %4237 = vmatpush.bf16.msra.mxu3 %v7654_v31  ;;  %v3687_v32 = vor.u32 1.1754944e-38, %v3686_v24  ;;  %vm3685_vm2 = vcmp.eq.f32.partialorder %v3684_v21, 8.507059e+37  ;;  %4251 = vmatpush.bf16.msra.mxu0 %v7710_v25  ;;  %v7666_v31 = vor.u32 %v8922_v17, %v7663_v45  ;;  %v8915_v24 = vld [vmem:[%s12423_s3 + $0x14] sm:$0xf0]  ;;  %v7781_v21 = vld [vmem:[%s12423_s3 + $0x140] sm:$0xf]  ;;  %v7802_v46 = vor.u32 %v8956_v2, %v7799_v3 }
 0x6ca   : > { %v8951_v25 = vld [vmem:[%s12423_s3 + $0x134] sm:$0xf0]  ;;  %v8940_v13 = vld [vmem:[%s12423_s3 + $0xe4] sm:$0xf]  ;;  %v8954_v45 = vld [vmem:[%s12423_s3 + $0x154] sm:$0xf] }
 0x6cb   : > { %4262 = vmatpush.bf16.msra.mxu1 %v7790_v16  ;;  %4275 = vmatpush.bf16.msra.mxu2 %v7666_v31  ;;  %v7774_v41 = vor.u32 %v8951_v25, %v7773_v37  ;;  %v7791_v31 = vld [vmem:[%s12423_s3 + $0x158] sm:$0xf0] }
 0x6cc   : > { %v7775_v25 = vld [vmem:[%s12423_s3 + $0x138] sm:$0xf0] }
 0x6cd   : > { %v9281_v19 = vpop.eup %9280  ;;  %4238 = vmatpush.bf16.msra.mxu3 %v7646_v55  ;;  %4252 = vmatpush.bf16.msra.mxu0 %v7702_v9  ;;  %v8942_v55 = vld [vmem:[%s12423_s3 + $0xf4] sm:$0xf]  ;;  %v8949_v9 = vld [vmem:[%s12423_s3 + $0x124] sm:$0xf0] }
 0x6ce   : > { %v3676_v35 = vmul.f32 %v9281_v19, %v3659_v4  ;;  %vm3681_vm15 = vweird.f32 %v9281_v19  ;;  %v7637_v4 = vld [vmem:[%s12423_s3 + $0x20] sm:$0xf]  ;;  %v7746_v1 = vor.u32 %v8942_v55, %v7743_v39  ;;  %v7711_v55 = vld [vmem:[%s12423_s3 + $0xb8] sm:$0xf0]  ;;  %v8948_v39 = vld [vmem:[%s12423_s3 + $0x124] sm:$0xf] }
 0x6cf   : > { %vm3682_vm1 = vmor %vm3680_vm0, %vm3681_vm15  ;;  %v7638_v48 = vor.u32 %v8917_v10, %v7637_v4  ;;  %v7765_v4 = vld [vmem:[%s12423_s3 + $0x120] sm:$0xf]  ;;  %v8916_v10 = vld [vmem:[%s12423_s3 + $0x24] sm:$0xf]  ;;  %v7714_v2 = vor.u32 %v8934_v0, %v7711_v55 }
 0x6d0   : > { %v3677_v22 = vsub.f32 1.0, %v3676_v35  ;;  %v7766_v11 = vor.u32 %v8949_v9, %v7765_v4  ;;  %v7642_v16 = vor.u32 %v8916_v10, %v7639_v12  ;;  %v8932_v9 = vld [vmem:[%s12423_s3 + $0xa4] sm:$0xf]  ;;  %v7703_v10 = vld [vmem:[%s12423_s3 + $0xa8] sm:$0xf0] }
 0x6d1   : > { %4239 = vmatpush.bf16.msra.mxu3 %v7638_v48  ;;  %v7735_v48 = vld [vmem:[%s12423_s3 + $0xe8] sm:$0xf0]  ;;  %v7759_v12 = vld [vmem:[%s12423_s3 + $0x118] sm:$0xf0] }
 0x6d2   : > { %v3678_v20 = vmul.f32 %v9281_v19, %v3677_v22  ;;  %v7629_v22 = vld [vmem:[%s12423_s3 + $0x10] sm:$0xf]  ;;  %v7738_v17 = vor.u32 %v8940_v13, %v7735_v48  ;;  %v7706_v13 = vor.u32 %v8932_v9, %v7703_v10  ;;  %v8966_v10 = vld [vmem:[#allocation6 + $0x30] sm:$0xff] }
 0x6d4   : > { %v3679_v29 = vadd.f32 %v9281_v19, %v3678_v20  ;;  %v7630_v20 = vor.u32 %v8915_v24, %v7629_v22  ;;  %v8914_v22 = vld [vmem:[%s12423_s3 + $0x14] sm:$0xf] }
 0x6d6   : > { %v3683_v36 = vsel %vm3682_vm1, %v9281_v19, %v3679_v29  ;;  %v7693_v19 = vld [vmem:[%s12423_s3 + $0x90] sm:$0xf]  ;;  %v8953_v29 = vld [vmem:[%s12423_s3 + $0x144] sm:$0xf0]  ;;  %4240 = vmatpush.bf16.msra.mxu3 %v7630_v20  ;;  %v7631_v20 = vld [vmem:[%s12423_s3 + $0x18] sm:$0xf0] }
 0x6d7   : > { %v3688_v38 = vsel %vm3685_vm2, %v3687_v32, %v3683_v36  ;;  %v7694_v35 = vor.u32 %v8931_v50, %v7693_v19  ;;  %v8920_v32 = vld [vmem:[%s12423_s3 + $0x44] sm:$0xf]  ;;  %v7782_v36 = vor.u32 %v8953_v29, %v7781_v21  ;;  %v7794_v19 = vor.u32 %v8954_v45, %v7791_v31  ;;  %v7757_v50 = vld [vmem:[%s12423_s3 + $0x110] sm:$0xf]  ;;  %v8938_v21 = vld [vmem:[%s12423_s3 + $0xd4] sm:$0xf] }
 0x6d8   : > { %v3693_v40 = vmul.f32 %v3688_v38, %v11338_v27  ;;  %v3690_v14 = vrot.slane %v3688_v38, 7  ;;  %v3691_v8 = vrot.slane %v3688_v38, 1  ;;  %v7655_v38 = vld [vmem:[%s12423_s3 + $0x48] sm:$0xf0]  ;;  %v7727_v29 = vld [vmem:[%s12423_s3 + $0xd8] sm:$0xf0] }
 0x6d9   : > { %4253 = vmatpush.bf16.msra.mxu0 %v7694_v35  ;;  %4263 = vmatpush.bf16.msra.mxu1 %v7782_v36  ;;  %v8947_v35 = vld [vmem:[%s12423_s3 + $0x114] sm:$0xf0]  ;;  %v7730_v36 = vor.u32 %v8938_v21, %v7727_v29  ;;  %v7695_v45 = vld [vmem:[%s12423_s3 + $0x98] sm:$0xf0] }
 0x6da   : > { %v3696_v47 = vpack.c.bf16 %v3693_v40, %v3693_v40  ;;  %v3692_v26 = vmul.f32 %v3690_v14, %v3278_v49  ;;  %v3694_v18 = vmul.f32 %v3691_v8, %v3280_v42  ;;  %v7685_v40 = vld [vmem:[%s12423_s3 + $0x80] sm:$0xf]  ;;  %v8929_v14 = vld [vmem:[%s12423_s3 + $0x84] sm:$0xf0]  ;;  %v7658_v8 = vor.u32 %v8920_v32, %v7655_v38  ;;  %v8958_v42 = vld [vmem:[%s12423_s3 + $0x174] sm:$0xf] }
 0x6db   : > { %v7686_v49 = vor.u32 %v8929_v14, %v7685_v40  ;;  %v7758_v24 = vor.u32 %v8947_v35, %v7757_v50  ;;  %v7634_v32 = vor.u32 %v8914_v22, %v7631_v20  ;;  %v8952_v38 = vld [vmem:[%s12423_s3 + $0x144] sm:$0xf]  ;;  %v7783_v40 = vld [vmem:[%s12423_s3 + $0x148] sm:$0xf0]  ;;  %v7749_v14 = vld [vmem:[%s12423_s3 + $0x100] sm:$0xf] }
 0x6dc   : > { %3911 = vmatmul.bf16.vlgmr.msrb.gmra.mxu1 %v3696_v47  ;;  %v3695_v51 = vpack.c.bf16 %v3692_v26, %v3692_v26  ;;  %v3697_v56 = vpack.c.bf16 %v3694_v18, %v3694_v18  ;;  %v7807_v47 = vld [vmem:[%s12423_s3 + $0x178] sm:$0xf0]  ;;  %v7621_v18 = vld [vmem:[%s12423_s3] sm:$0xf]  ;;  %4276 = vmatpush.bf16.msra.mxu2 %v7658_v8  ;;  %v7786_v8 = vor.u32 %v8952_v38, %v7783_v40  ;;  %v7751_v50 = vld [vmem:[%s12423_s3 + $0x108] sm:$0xf0] }
 0x6dd   : > { %v7810_v26 = vor.u32 %v8958_v42, %v7807_v47  ;;  %4254 = vmatpush.bf16.msra.mxu0 %v7686_v49  ;;  %4264 = vmatpush.bf16.msra.mxu1 %v7774_v41  ;;  %v8945_v49 = vld [vmem:[%s12423_s3 + $0x104] sm:$0xf0]  ;;  %v8912_v42 = vld [vmem:[%s12423_s3 + $0x4] sm:$0xf]  ;;  %v7623_v47 = vld [vmem:[%s12423_s3 + $0x8] sm:$0xf0] }
 0x6de   : > { %3898 = vmatmul.bf16.vlgmr.msrb.gmra.mxu0 %v3695_v51  ;;  %3924 = vmatmul.bf16.vlgmr.msrb.gmra.mxu2 %v3697_v56  ;;  %v8913_v51 = vld [vmem:[%s12423_s3 + $0x4] sm:$0xf0]  ;;  %v9283_v56 = vpop.eup %9282  ;;  %v7687_v38 = vld [vmem:[%s12423_s3 + $0x88] sm:$0xf0] }
 0x6df   : > { %v7622_v58 = vor.u32 %v8913_v51, %v7621_v18  ;;  %v11548_v59 = vadd.f32 1.0, %v9283_v56  ;;  %v7626_v18 = vor.u32 %v8912_v42, %v7623_v47  ;;  %v8936_v51 = vld [vmem:[%s12423_s3 + $0xc4] sm:$0xf]  ;;  %v7719_v56 = vld [vmem:[%s12423_s3 + $0xc8] sm:$0xf0] }
 0x6e0   : > { %4277 = vmatpush.bf16.msra.mxu2 %v7650_v44  ;;  %v7722_v37 = vor.u32 %v8936_v51, %v7719_v56 }
 0x6e1   : > { %4299 = vmatpush.bf16.msrb.mxu0 %v7810_v26  ;;  %4241 = vmatpush.bf16.msra.mxu3 %v7622_v58  ;;  %9284 = vrcp.f32 %v11548_v59  ;;  %v7750_v26 = vor.u32 %v8945_v49, %v7749_v14  ;;  %v8950_v58 = vld [vmem:[%s12423_s3 + $0x134] sm:$0xf]  ;;  %v3671_v49 = vand.u32 2147483648, %v11548_v59  ;;  %vm3665_vm4 = vweird.f32 %v11548_v59 }
 0x6e2   : > { %4265 = vmatpush.bf16.msra.mxu1 %v7766_v11  ;;  %v7778_v41 = vor.u32 %v8950_v58, %v7775_v25  ;;  %v8946_v11 = vld [vmem:[%s12423_s3 + $0x114] sm:$0xf]  ;;  %v3669_v42 = vand.u32 2147483647, %v11548_v59 }
 0x6e3   : > { %v3672_v51 = vor.u32 1.1754944e-38, %v3671_v49  ;;  %v8969_v49 = vld [vmem:[#allocation6 + $0x48] sm:$0xff] }
 0x6e4   : > { %4278 = vmatpush.bf16.msra.mxu2 %v7642_v16  ;;  %v7762_v16 = vor.u32 %v8946_v11, %v7759_v12  ;;  %vm3670_vm6 = vcmp.eq.f32.partialorder %v3669_v42, 8.507059e+37  ;;  %v8982_v11 = vld [vmem:[#allocation6 + $0xb0] sm:$0xff]  ;;  %v560_v42 = vadd.f32 %v9982_v54, %v9950_v34  ;;  %v8044_v54 = vld [vmem:[%s12423_s3 + $0xf0] sm:$0xf] }
 0x6e5   : > { %4286 = vmatpush.bf16.msrb.mxu3 %v7746_v1  ;;  %4300 = vmatpush.bf16.msrb.mxu0 %v7802_v46  ;;  %v7767_v1 = vld [vmem:[%s12423_s3 + $0x128] sm:$0xf0] }
 0x6e6   : > { %4266 = vmatpush.bf16.msra.mxu1 %v7758_v24  ;;  %v7770_v4 = vor.u32 %v8948_v39, %v7767_v1  ;;  %v8975_v39 = vld [vmem:[#allocation6 + $0x78] sm:$0xff] }
 0x6e7   : > { %v9285_v43 = vpop.eup %9284  ;;  %v8983_v1 = vld [vmem:[#allocation6 + $0xb8] sm:$0xff] }
 0x6e8   : > { %4279 = vmatpush.bf16.msra.mxu2 %v7634_v32  ;;  %v3661_v3 = vmul.f32 %v9285_v43, %v11548_v59  ;;  %vm3666_vm3 = vweird.f32 %v9285_v43 }
 0x6e9   : > { %4287 = vmatpush.bf16.msrb.mxu3 %v7738_v17  ;;  %4301 = vmatpush.bf16.msrb.mxu0 %v7794_v19  ;;  %v8930_v17 = vld [vmem:[%s12423_s3 + $0x94] sm:$0xf]  ;;  %v8944_v19 = vld [vmem:[%s12423_s3 + $0x104] sm:$0xf]  ;;  %vm3667_vm5 = vmor %vm3665_vm4, %vm3666_vm3 }
 0x6ea   : > { %4267 = vmatpush.bf16.msra.mxu1 %v7750_v26  ;;  %v3662_v48 = vsub.f32 1.0, %v3661_v3  ;;  %v7698_v20 = vor.u32 %v8930_v17, %v7695_v45  ;;  %v7754_v32 = vor.u32 %v8944_v19, %v7751_v50  ;;  %v8965_v45 = vld [vmem:[#allocation6 + $0x28] sm:$0xff]  ;;  %v8972_v19 = vld [vmem:[#allocation6 + $0x60] sm:$0xff] }
 0x6ec   : > { %4280 = vmatpush.bf16.msra.mxu2 %v7626_v18  ;;  %v3663_v21 = vmul.f32 %v9285_v43, %v3662_v48 }
 0x6ed   : > { %4288 = vmatpush.bf16.msrb.mxu3 %v7730_v36  ;;  %4302 = vmatpush.bf16.msrb.mxu0 %v7786_v8  ;;  %v8928_v36 = vld [vmem:[%s12423_s3 + $0x84] sm:$0xf] }
 0x6ee   : > { %v7690_v14 = vor.u32 %v8928_v36, %v7687_v38  ;;  %v3664_v8 = vadd.f32 %v9285_v43, %v3663_v21  ;;  %v8963_v21 = vld [vmem:[#allocation6 + $0x18] sm:$0xff]  ;;  %v8962_v36 = vld [vmem:[#allocation6 + $0x10] sm:$0xff] }
 0x6ef   : > { %v8978_v38 = vld [vmem:[#allocation6 + $0x90] sm:$0xff] }
 0x6f0   : > { %v3668_v26 = vsel %vm3667_vm5, %v9285_v43, %v3664_v8  ;;  %4565 = vmatpush.bf16.msrb.mxu2 %v8975_v39  ;;  %v8999_v39 = vld [vmem:[%s12423_s3 + $0x74] sm:$0xf0] }
 0x6f1   : > { %4289 = vmatpush.bf16.msrb.mxu3 %v7722_v37  ;;  %4303 = vmatpush.bf16.msrb.mxu0 %v7778_v41  ;;  %v3673_v56 = vsel %vm3670_vm6, %v3672_v51, %v3668_v26  ;;  %v8961_v26 = vld [vmem:[#allocation6 + $0x8] sm:$0xff] }
 0x6f5   : > { %4290 = vmatpush.bf16.msrb.mxu3 %v7714_v2  ;;  %4304 = vmatpush.bf16.msrb.mxu0 %v7770_v4  ;;  %v8974_v2 = vld [vmem:[#allocation6 + $0x70] sm:$0xff] }
 0x6f6   : > { %4566 = vmatpush.bf16.msrb.mxu2 %v8974_v2 }
 0x6f9   : > { %4291 = vmatpush.bf16.msrb.mxu3 %v7706_v13  ;;  %4305 = vmatpush.bf16.msrb.mxu0 %v7762_v16  ;;  %v531_v13 = vadd.f32 %v9980_v53, %v9932_v23  ;;  %v8973_v16 = vld [vmem:[#allocation6 + $0x68] sm:$0xff]  ;;  %v8971_v53 = vld [vmem:[#allocation6 + $0x58] sm:$0xff] }
 0x6fa   : > { %4567 = vmatpush.bf16.msrb.mxu2 %v8973_v16 }
 0x6fd   : > { %4292 = vmatpush.bf16.msrb.mxu3 %v7698_v20  ;;  %4306 = vmatpush.bf16.msrb.mxu0 %v7754_v32  ;;  %v8980_v20 = vld [vmem:[#allocation6 + $0xa0] sm:$0xff]  ;;  %v8970_v32 = vld [vmem:[#allocation6 + $0x50] sm:$0xff] }
 0x6fe   : > { %4568 = vmatpush.bf16.msrb.mxu2 %v8972_v19  ;;  %v7982_v19 = vld [vmem:[%s12423_s3 + $0x78] sm:$0xf0] }
 0x701   : > { %4293 = vmatpush.bf16.msrb.mxu3 %v7690_v14 }
 0x702   : > { %4569 = vmatpush.bf16.msrb.mxu2 %v8971_v53  ;;  %v8020_v53 = vld [vmem:[%s12423_s3 + $0xc0] sm:$0xf] }
 0x706   : > { %4570 = vmatpush.bf16.msrb.mxu2 %v8970_v32  ;;  %v8993_v32 = vld [vmem:[%s12423_s3 + $0x44] sm:$0xf0] }
 0x70a   : > { %4571 = vmatpush.bf16.msrb.mxu2 %v8969_v49 }
 0x759   : > { %v3912_v44 = vpop.f32.mrf.mxu1 }
 0x75b   : > { %v3899_v46 = vpop.f32.mrf.mxu0 }
 0x75c   : > { %v3913_v31 = vadd.f32 %v3912_v44, %v3899_v46  ;;  %v8967_v44 = vld [vmem:[#allocation6 + $0x38] sm:$0xff] }
 0x75d   : > { %4552 = vmatpush.bf16.msrb.mxu1 %v8967_v44  ;;  %v8036_v44 = vld [vmem:[%s12423_s3 + $0xe0] sm:$0xf] }
 0x761   : > { %v3914_v35 = vpop.f32.mrf.mxu1  ;;  %v3925_v22 = vpop.f32.mrf.mxu2  ;;  %4553 = vmatpush.bf16.msrb.mxu1 %v8966_v10  ;;  %v8028_v10 = vld [vmem:[%s12423_s3 + $0xd0] sm:$0xf] }
 0x762   : > { %v3926_v24 = vadd.f32 %v3925_v22, %v3913_v31  ;;  %v8981_v31 = vld [vmem:[#allocation6 + $0xa8] sm:$0xff] }
 0x763   : > { %v3901_v29 = vpop.f32.mrf.mxu0 }
 0x764   : > { %v3929_v40 = vadd.f32 %v3926_v24, %v9978_v52  ;;  %v8964_v24 = vld [vmem:[#allocation6 + $0x20] sm:$0xff]  ;;  %v8979_v29 = vld [vmem:[#allocation6 + $0x98] sm:$0xff] }
 0x765   : > { %4554 = vmatpush.bf16.msrb.mxu1 %v8965_v45  ;;  %v9031_v45 = vld [vmem:[%s12423_s3 + $0x174] sm:$0xf0] }
 0x766   : > { %9286 = vtanh.f32 %v3929_v40 }
 0x769   : > { %v3927_v47 = vpop.f32.mrf.mxu2  ;;  %4555 = vmatpush.bf16.msrb.mxu1 %v8964_v24 }
 0x76c   : > { %v9287_v18 = vpop.eup %9286 }
 0x76d   : > { %v3931_v52 = vsub.f32 %v9287_v18, %v11338_v27  ;;  %4556 = vmatpush.bf16.msrb.mxu1 %v8963_v21  ;;  %v8977_v18 = vld [vmem:[#allocation6 + $0x88] sm:$0xff]  ;;  %v9009_v21 = vld [vmem:[%s12423_s3 + $0xc4] sm:$0xf0] }
 0x76f   : > { %v3932_v58 = vmul.f32 %v3931_v52, %v3673_v56  ;;  %v8968_v52 = vld [vmem:[#allocation6 + $0x40] sm:$0xff] }
 0x770   : > { %4572 = vmatpush.bf16.msrb.mxu2 %v8968_v52 }
 0x771   : > { %v11672_v37 = vadd.f32 %v3932_v58, %v11338_v27  ;;  %4557 = vmatpush.bf16.msrb.mxu1 %v8962_v36  ;;  %v8960_v58 = vld [vmem:[#allocation6] sm:$0xff]  ;;  %v8021_v36 = vor.u32 %v9009_v21, %v8020_v53 }
 0x773   : > { %7618 = vst [vmem:[%s10316_s12 + $0x20] sm:$0xff] %v11672_v37  ;;  %v3944_v25 = vpack.c.bf16 %v11672_v37, %v11672_v37  ;;  %v11679_v59 = vrot.slane %v11672_v37, 7  ;;  %v11682_v43 = vrot.slane %v11672_v37, 1 }
 0x775   : > { %4255 = vmatmul.bf16.vlgmr.msra.gmra.mxu0 %v3944_v25  ;;  %v7812_v41 = vpack.c.bf16 %v11679_v59, %v11679_v59  ;;  %v7815_v0 = vpack.c.bf16 %v11682_v43, %v11682_v43  ;;  %4558 = vmatpush.bf16.msrb.mxu1 %v8961_v26 }
 0x777   : > { %7813 = vmatmul.msk.bf16.vlgmr.msra.gmra.mxu3 %vm10328_vm13, %v7812_v41  ;;  %7816 = vmatmul.msk.bf16.vlgmr.msra.gmra.mxu1 %vm10338_vm14, %v7815_v0 }
 0x778   : > { %7819 = vmatmul.msk.bf16.vlgmr.msra.gmra.mxu2 %vm10328_vm13, %v7812_v41  ;;  %4578 = vmatpush.bf16.msra.mxu3 %v8983_v1  ;;  %v9013_v1 = vld [vmem:[%s12423_s3 + $0xe4] sm:$0xf0] }
 0x779   : > { %4559 = vmatpush.bf16.msrb.mxu1 %v8960_v58 }
 0x77c   : > { %4579 = vmatpush.bf16.msra.mxu3 %v8982_v11  ;;  %v9011_v11 = vld [vmem:[%s12423_s3 + $0xd4] sm:$0xf0] }
 0x780   : > { %4580 = vmatpush.bf16.msra.mxu3 %v8981_v31  ;;  %v8998_v31 = vld [vmem:[%s12423_s3 + $0x74] sm:$0xf] }
 0x781   : > { %v7985_v24 = vor.u32 %v8998_v31, %v7982_v19  ;;  %v7940_v19 = vld [vmem:[%s12423_s3 + $0x20] sm:$0xf] }
 0x784   : > { %4581 = vmatpush.bf16.msra.mxu3 %v8980_v20 }
 0x785   : > { %7822 = vmatmul.msk.bf16.vlgmr.msrb.gmra.mxu0 %vm10338_vm14, %v7815_v0  ;;  %v9015_v0 = vld [vmem:[%s12423_s3 + $0xf4] sm:$0xf0] }
 0x787   : > { %4294 = vmatmul.bf16.vlgmr.msrb.gmra.mxu3 %v3944_v25  ;;  %v8976_v25 = vld [vmem:[#allocation6 + $0x80] sm:$0xff] }
 0x788   : > { %4582 = vmatpush.bf16.msra.mxu3 %v8979_v29  ;;  %v7956_v29 = vld [vmem:[%s12423_s3 + $0x40] sm:$0xf] }
 0x78c   : > { %4583 = vmatpush.bf16.msra.mxu3 %v8978_v38  ;;  %v7957_v38 = vor.u32 %v8993_v32, %v7956_v29  ;;  %v7996_v29 = vld [vmem:[%s12423_s3 + $0x90] sm:$0xf]  ;;  %v9003_v32 = vld [vmem:[%s12423_s3 + $0x94] sm:$0xf0] }
 0x790   : > { %4584 = vmatpush.bf16.msra.mxu3 %v8977_v18 }
 0x794   : > { %4585 = vmatpush.bf16.msra.mxu3 %v8976_v25 }
 0x798   : > { %4935 = vmatpush.bf16.msrb.mxu3 %v7985_v24  ;;  %v8994_v24 = vld [vmem:[%s12423_s3 + $0x54] sm:$0xf] }
 0x7f2   : > { %v4256_v27 = vpop.f32.mrf.mxu0 }
 0x7f4   : > { %v4269_v55 = vpop.f32.mrf.mxu1 }
 0x7fa   : > { %v4243_v3 = vpop.f32.mrf.mxu3  ;;  %v4258_v46 = vpop.f32.mrf.mxu0 }
 0x7fb   : > { %v4257_v4 = vadd.f32 %v4256_v27, %v4243_v3  ;;  %v4282_v9 = vpop.f32.mrf.mxu2  ;;  %v7980_v27 = vld [vmem:[%s12423_s3 + $0x70] sm:$0xf]  ;;  %v7972_v3 = vld [vmem:[%s12423_s3 + $0x60] sm:$0xf]  ;;  %v8997_v46 = vld [vmem:[%s12423_s3 + $0x64] sm:$0xf0] }
 0x7fc   : > { %v4271_v12 = vpop.f32.mrf.mxu1  ;;  %v7981_v2 = vor.u32 %v8999_v39, %v7980_v27  ;;  %v3940_v27 = vsel %vm623_vm11, %v11679_v59, 0.0  ;;  %v8991_v59 = vld [vmem:[%s12423_s3 + $0x34] sm:$0xf0] }
 0x7fd   : > { %v4270_v48 = vadd.f32 %v4269_v55, %v4257_v4  ;;  %v8045_v55 = vor.u32 %v9015_v0, %v8044_v54  ;;  %v8037_v4 = vor.u32 %v9013_v1, %v8036_v44  ;;  %v7964_v12 = vld [vmem:[%s12423_s3 + $0x50] sm:$0xf] }
 0x7fe   : > { %4896 = vmatpush.bf16.msra.mxu0 %v7981_v2 }
 0x7ff   : > { %v11698_v17 = vadd.f32 %v4270_v48, %v531_v13  ;;  %4909 = vmatpush.bf16.msra.mxu1 %v8045_v55  ;;  %v8995_v13 = vld [vmem:[%s12423_s3 + $0x54] sm:$0xf0]  ;;  %v8108_v48 = vld [vmem:[%s12423_s3 + $0x170] sm:$0xf]  ;;  %v3942_v55 = vsel %vm628_vm12, %v11682_v43, 0.0 }
 0x800   : > { %v7965_v20 = vor.u32 %v8995_v13, %v7964_v12  ;;  %v8100_v43 = vld [vmem:[%s12423_s3 + $0x160] sm:$0xf] }
 0x801   : > { %v7823_v31 = vmul.f32 -1.442695, %v11698_v17  ;;  %v9027_v17 = vld [vmem:[%s12423_s3 + $0x154] sm:$0xf0] }
 0x802   : > { %v4245_v50 = vpop.f32.mrf.mxu3  ;;  %v4308_v35 = vpop.f32.mrf.mxu0 }
 0x803   : > { %v4284_v22 = vpop.f32.mrf.mxu2  ;;  %4910 = vmatpush.bf16.msra.mxu1 %v8037_v4 }
 0x804   : > { %v8109_v22 = vor.u32 %v9031_v45, %v8108_v48  ;;  %v8004_v48 = vld [vmem:[%s12423_s3 + $0xa0] sm:$0xf] }
 0x806   : > { %4922 = vmatpush.bf16.msra.mxu2 %v8109_v22 }
 0x80a   : > { %v4295_v40 = vpop.f32.mrf.mxu3  ;;  %v4310_v14 = vpop.f32.mrf.mxu0 }
 0x80b   : > { %v4296_v8 = vadd.f32 %v4295_v40, %v4282_v9  ;;  %v7973_v9 = vor.u32 %v8997_v46, %v7972_v3  ;;  %v8012_v40 = vld [vmem:[%s12423_s3 + $0xb0] sm:$0xf]  ;;  %v9007_v14 = vld [vmem:[%s12423_s3 + $0xb4] sm:$0xf0] }
 0x80c   : > { %v8013_v49 = vor.u32 %v9007_v14, %v8012_v40  ;;  %v7948_v46 = vld [vmem:[%s12423_s3 + $0x30] sm:$0xf]  ;;  %v8987_v40 = vld [vmem:[%s12423_s3 + $0x14] sm:$0xf0] }
 0x80d   : > { %v4309_v47 = vadd.f32 %v4308_v35, %v4296_v8  ;;  %v8029_v35 = vor.u32 %v9011_v11, %v8028_v10  ;;  %4897 = vmatpush.bf16.msra.mxu0 %v7973_v9  ;;  %v7949_v4 = vor.u32 %v8991_v59, %v7948_v46  ;;  %v9029_v9 = vld [vmem:[%s12423_s3 + $0x164] sm:$0xf0]  ;;  %v8996_v10 = vld [vmem:[%s12423_s3 + $0x64] sm:$0xf]  ;;  %v7974_v11 = vld [vmem:[%s12423_s3 + $0x68] sm:$0xf0] }
 0x80e   : > { %v8101_v12 = vor.u32 %v9029_v9, %v8100_v43  ;;  %v7977_v13 = vor.u32 %v8996_v10, %v7974_v11  ;;  %v9014_v46 = vld [vmem:[%s12423_s3 + $0xf4] sm:$0xf]  ;;  %v8046_v59 = vld [vmem:[%s12423_s3 + $0xf8] sm:$0xf0]  ;;  %v9028_v9 = vld [vmem:[%s12423_s3 + $0x164] sm:$0xf] }
 0x80f   : > { %v4313_v51 = vadd.f32 %v4309_v47, %v560_v42  ;;  %4911 = vmatpush.bf16.msra.mxu1 %v8029_v35  ;;  %v8092_v35 = vld [vmem:[%s12423_s3 + $0x150] sm:$0xf]  ;;  %v8102_v10 = vld [vmem:[%s12423_s3 + $0x168] sm:$0xf0] }
 0x810   : > { %4923 = vmatpush.bf16.msra.mxu2 %v8101_v12  ;;  %4936 = vmatpush.bf16.msrb.mxu3 %v7977_v13  ;;  %v8093_v53 = vor.u32 %v9027_v17, %v8092_v35  ;;  %v8105_v12 = vor.u32 %v9028_v9, %v8102_v10  ;;  %v8068_v13 = vld [vmem:[%s12423_s3 + $0x120] sm:$0xf]  ;;  %v9026_v17 = vld [vmem:[%s12423_s3 + $0x154] sm:$0xf]  ;;  %v9004_v9 = vld [vmem:[%s12423_s3 + $0xa4] sm:$0xf] }
 0x811   : > { %v7824_v56 = vmul.f32 -1.442695, %v4313_v51  ;;  %4898 = vmatpush.bf16.msra.mxu0 %v7965_v20  ;;  %v7966_v20 = vld [vmem:[%s12423_s3 + $0x58] sm:$0xf0]  ;;  %v8006_v10 = vld [vmem:[%s12423_s3 + $0xa8] sm:$0xf0] }
 0x812   : > { %v4297_v41 = vpop.f32.mrf.mxu3  ;;  %v7969_v21 = vor.u32 %v8994_v24, %v7966_v20  ;;  %v8094_v24 = vld [vmem:[%s12423_s3 + $0x158] sm:$0xf0] }
 0x813   : > { %9288 = vpow2.f32 %v7824_v56  ;;  %4912 = vmatpush.bf16.msra.mxu1 %v8021_v36  ;;  %v7997_v36 = vor.u32 %v9003_v32, %v7996_v29  ;;  %v8097_v20 = vor.u32 %v9026_v17, %v8094_v24  ;;  %v8986_v29 = vld [vmem:[%s12423_s3 + $0x14] sm:$0xf]  ;;  %v8054_v17 = vld [vmem:[%s12423_s3 + $0x108] sm:$0xf0] }
 0x814   : > { %4924 = vmatpush.bf16.msra.mxu2 %v8093_v53  ;;  %4937 = vmatpush.bf16.msrb.mxu3 %v7969_v21  ;;  %v8060_v53 = vld [vmem:[%s12423_s3 + $0x110] sm:$0xf]  ;;  %v9019_v21 = vld [vmem:[%s12423_s3 + $0x114] sm:$0xf0] }
 0x815   : > { %4899 = vmatpush.bf16.msra.mxu0 %v7957_v38  ;;  %v7932_v38 = vld [vmem:[%s12423_s3 + $0x10] sm:$0xf]  ;;  %v8061_v32 = vor.u32 %v9019_v21, %v8060_v53 }
 0x816   : > { %v7933_v14 = vor.u32 %v8987_v40, %v7932_v38  ;;  %v9010_v38 = vld [vmem:[%s12423_s3 + $0xd4] sm:$0xf]  ;;  %v8030_v40 = vld [vmem:[%s12423_s3 + $0xd8] sm:$0xf0] }
 0x817   : > { %4913 = vmatpush.bf16.msra.mxu1 %v8013_v49  ;;  %v9025_v49 = vld [vmem:[%s12423_s3 + $0x144] sm:$0xf0] }
 0x819   : > { %v9289_v16 = vpop.eup %9288  ;;  %4900 = vmatpush.bf16.msra.mxu0 %v7949_v4  ;;  %v8049_v4 = vor.u32 %v9014_v46, %v8046_v59 }
 0x81a   : > { %v4321_v50 = vadd.f32 1.0, %v9289_v16  ;;  %v9005_v16 = vld [vmem:[%s12423_s3 + $0xa4] sm:$0xf0] }
 0x81b   : > { %v8005_v45 = vor.u32 %v9005_v16, %v8004_v48  ;;  %v9021_v48 = vld [vmem:[%s12423_s3 + $0x124] sm:$0xf0]  ;;  %v8988_v16 = vld [vmem:[%s12423_s3 + $0x24] sm:$0xf] }
 0x81c   : > { %9290 = vrcp.f32 %v4321_v50  ;;  %v4348_v26 = vand.u32 2147483648, %v4321_v50  ;;  %v4346_v51 = vand.u32 2147483647, %v4321_v50  ;;  %vm4342_vm8 = vweird.f32 %v4321_v50 }
 0x81d   : > { %4914 = vmatpush.bf16.msra.mxu1 %v8005_v45  ;;  %9292 = vpow2.f32 %v7823_v31  ;;  %v8069_v45 = vor.u32 %v9021_v48, %v8068_v13  ;;  %v7942_v31 = vld [vmem:[%s12423_s3 + $0x28] sm:$0xf0]  ;;  %v8062_v13 = vld [vmem:[%s12423_s3 + $0x118] sm:$0xf0]  ;;  %v8009_v48 = vor.u32 %v9004_v9, %v8006_v10 }
 0x81e   : > { %v4349_v56 = vor.u32 1.1754944e-38, %v4348_v26  ;;  %vm4347_vm10 = vcmp.eq.f32.partialorder %v4346_v51, 8.507059e+37  ;;  %v7958_v26 = vld [vmem:[%s12423_s3 + $0x48] sm:$0xf0]  ;;  %v9001_v51 = vld [vmem:[%s12423_s3 + $0x84] sm:$0xf0]  ;;  %v7945_v35 = vor.u32 %v8988_v16, %v7942_v31 }
 0x81f   : > { %v9037_v9 = vld [vmem:[#allocation6 + $0x28] sm:$0xff] }
 0x820   : > { %v9053_v10 = vld [vmem:[#allocation6 + $0xa8] sm:$0xff] }
 0x821   : > { %4915 = vmatpush.bf16.msra.mxu1 %v7997_v36  ;;  %v7934_v36 = vld [vmem:[%s12423_s3 + $0x18] sm:$0xf0] }
 0x822   : > { %v9291_v8 = vpop.eup %9290 }
 0x823   : > { %v4338_v42 = vmul.f32 %v9291_v8, %v4321_v50  ;;  %vm4343_vm7 = vweird.f32 %v9291_v8  ;;  %v8989_v50 = vld [vmem:[%s12423_s3 + $0x24] sm:$0xf0] }
 0x824   : > { %vm4344_vm9 = vmor %vm4342_vm8, %vm4343_vm7  ;;  %v7941_v22 = vor.u32 %v8989_v50, %v7940_v19  ;;  %v9012_v19 = vld [vmem:[%s12423_s3 + $0xe4] sm:$0xf]  ;;  %v8038_v50 = vld [vmem:[%s12423_s3 + $0xe8] sm:$0xf0] }
 0x825   : > { %v4339_v47 = vsub.f32 1.0, %v4338_v42  ;;  %v8992_v42 = vld [vmem:[%s12423_s3 + $0x44] sm:$0xf] }
 0x826   : > { %4901 = vmatpush.bf16.msra.mxu0 %v7941_v22  ;;  %v8041_v22 = vor.u32 %v9012_v19, %v8038_v50  ;;  %v9002_v19 = vld [vmem:[%s12423_s3 + $0x94] sm:$0xf]  ;;  %v7998_v50 = vld [vmem:[%s12423_s3 + $0x98] sm:$0xf0] }
 0x827   : > { %v4340_v18 = vmul.f32 %v9291_v8, %v4339_v47  ;;  %v8001_v21 = vor.u32 %v9002_v19, %v7998_v50  ;;  %v9036_v50 = vld [vmem:[#allocation6 + $0x20] sm:$0xff] }
 0x829   : > { %v4341_v52 = vadd.f32 %v9291_v8, %v4340_v18  ;;  %v7988_v18 = vld [vmem:[%s12423_s3 + $0x80] sm:$0xf] }
 0x82a   : > { %4902 = vmatpush.bf16.msra.mxu0 %v7933_v14  ;;  %v7937_v14 = vor.u32 %v8986_v29, %v7934_v36 }
 0x82b   : > { %v4345_v58 = vsel %vm4344_vm9, %v9291_v8, %v4341_v52  ;;  %v8084_v8 = vld [vmem:[%s12423_s3 + $0x140] sm:$0xf]  ;;  %v7961_v52 = vor.u32 %v8992_v42, %v7958_v26  ;;  %v8086_v42 = vld [vmem:[%s12423_s3 + $0x148] sm:$0xf0] }
 0x82c   : > { %v4350_v25 = vsel %vm4347_vm10, %v4349_v56, %v4345_v58  ;;  %v8085_v47 = vor.u32 %v9025_v49, %v8084_v8  ;;  %v7989_v56 = vor.u32 %v9001_v51, %v7988_v18  ;;  %v9030_v58 = vld [vmem:[%s12423_s3 + $0x174] sm:$0xf]  ;;  %v8033_v8 = vor.u32 %v9010_v38, %v8030_v40  ;;  %v9024_v49 = vld [vmem:[%s12423_s3 + $0x144] sm:$0xf]  ;;  %v9017_v18 = vld [vmem:[%s12423_s3 + $0x104] sm:$0xf0] }
 0x82d   : > { %v4355_v41 = vmul.f32 %v4350_v25, %v11672_v37  ;;  %v4352_v54 = vrot.slane %v4350_v25, 7  ;;  %v4353_v0 = vrot.slane %v4350_v25, 1  ;;  %v8110_v25 = vld [vmem:[%s12423_s3 + $0x178] sm:$0xf0]  ;;  %4938 = vmatpush.bf16.msrb.mxu3 %v7961_v52  ;;  %v8089_v26 = vor.u32 %v9024_v49, %v8086_v42  ;;  %v8984_v51 = vld [vmem:[%s12423_s3 + $0x4] sm:$0xf] }
 0x82e   : > { %4925 = vmatpush.bf16.msra.mxu2 %v8085_v47  ;;  %4916 = vmatpush.bf16.msra.mxu1 %v7989_v56  ;;  %v8052_v47 = vld [vmem:[%s12423_s3 + $0x100] sm:$0xf]  ;;  %v7926_v52 = vld [vmem:[%s12423_s3 + $0x8] sm:$0xf0]  ;;  %v9000_v38 = vld [vmem:[%s12423_s3 + $0x84] sm:$0xf] }
 0x82f   : > { %v4358_v39 = vpack.c.bf16 %v4355_v41, %v4355_v41  ;;  %v4354_v44 = vmul.f32 %v4352_v54, %v3940_v27  ;;  %v4356_v1 = vmul.f32 %v4353_v0, %v3942_v55  ;;  %v8113_v41 = vor.u32 %v9030_v58, %v8110_v25  ;;  %v7924_v54 = vld [vmem:[%s12423_s3] sm:$0xf]  ;;  %v8985_v0 = vld [vmem:[%s12423_s3 + $0x4] sm:$0xf0]  ;;  %v9293_v27 = vpop.eup %9292  ;;  %v9008_v25 = vld [vmem:[%s12423_s3 + $0xc4] sm:$0xf] }
 0x830   : > { %v7925_v55 = vor.u32 %v8985_v0, %v7924_v54  ;;  %v11884_v11 = vadd.f32 1.0, %v9293_v27  ;;  %v8053_v56 = vor.u32 %v9017_v18, %v8052_v47  ;;  %v7929_v58 = vor.u32 %v8984_v51, %v7926_v52  ;;  %v9022_v54 = vld [vmem:[%s12423_s3 + $0x134] sm:$0xf]  ;;  %v8078_v27 = vld [vmem:[%s12423_s3 + $0x138] sm:$0xf0] }
 0x831   : > { %4573 = vmatmul.bf16.vlgmr.msrb.gmra.mxu2 %v4358_v39  ;;  %v4357_v2 = vpack.c.bf16 %v4354_v44, %v4354_v44  ;;  %v4359_v3 = vpack.c.bf16 %v4356_v1, %v4356_v1  ;;  %v8076_v39 = vld [vmem:[%s12423_s3 + $0x130] sm:$0xf]  ;;  %v9023_v44 = vld [vmem:[%s12423_s3 + $0x134] sm:$0xf0]  ;;  %v8990_v1 = vld [vmem:[%s12423_s3 + $0x34] sm:$0xf] }
 0x832   : > { %4903 = vmatpush.bf16.msra.mxu0 %v7925_v55  ;;  %9294 = vrcp.f32 %v11884_v11  ;;  %v7990_v40 = vld [vmem:[%s12423_s3 + $0x88] sm:$0xf0]  ;;  %v4333_v42 = vand.u32 2147483648, %v11884_v11  ;;  %vm4327_vm0 = vweird.f32 %v11884_v11  ;;  %v4331_v47 = vand.u32 2147483647, %v11884_v11 }
 0x833   : > { %4560 = vmatmul.bf16.vlgmr.msrb.gmra.mxu1 %v4357_v2  ;;  %4586 = vmatmul.bf16.vlgmr.msra.gmra.mxu3 %v4359_v3  ;;  %v8077_v2 = vor.u32 %v9023_v44, %v8076_v39  ;;  %v7950_v3 = vld [vmem:[%s12423_s3 + $0x38] sm:$0xf0]  ;;  %v8081_v39 = vor.u32 %v9022_v54, %v8078_v27  ;;  %v9006_v44 = vld [vmem:[%s12423_s3 + $0xb4] sm:$0xf] }
 0x834   : > { %4961 = vmatpush.bf16.msrb.mxu1 %v8113_v41  ;;  %v7953_v43 = vor.u32 %v8990_v1, %v7950_v3  ;;  %v8022_v41 = vld [vmem:[%s12423_s3 + $0xc8] sm:$0xf0]  ;;  %v8014_v1 = vld [vmem:[%s12423_s3 + $0xb8] sm:$0xf0]  ;;  %v4334_v52 = vor.u32 1.1754944e-38, %v4333_v42  ;;  %vm4332_vm2 = vcmp.eq.f32.partialorder %v4331_v47, 8.507059e+37 }
 0x835   : > { %4926 = vmatpush.bf16.msra.mxu2 %v8077_v2  ;;  %v8025_v0 = vor.u32 %v9008_v25, %v8022_v41  ;;  %v9020_v2 = vld [vmem:[%s12423_s3 + $0x124] sm:$0xf]  ;;  %v8070_v3 = vld [vmem:[%s12423_s3 + $0x128] sm:$0xf0]  ;;  %v8017_v46 = vor.u32 %v9006_v44, %v8014_v1  ;;  %v9040_v42 = vld [vmem:[#allocation6 + $0x40] sm:$0xff] }
 0x836   : > { %4939 = vmatpush.bf16.msrb.mxu3 %v7953_v43  ;;  %4948 = vmatpush.bf16.msrb.mxu0 %v8049_v4  ;;  %v8073_v4 = vor.u32 %v9020_v2, %v8070_v3  ;;  %v9055_v44 = vld [vmem:[#allocation6 + $0xb8] sm:$0xff]  ;;  %v9046_v2 = vld [vmem:[#allocation6 + $0x70] sm:$0xff] }
 0x838   : > { %4962 = vmatpush.bf16.msrb.mxu1 %v8105_v12  ;;  %v9295_v55 = vpop.eup %9294  ;;  %v9018_v12 = vld [vmem:[%s12423_s3 + $0x114] sm:$0xf] }
 0x839   : > { %4927 = vmatpush.bf16.msra.mxu2 %v8069_v45  ;;  %v4323_v59 = vmul.f32 %v9295_v55, %v11884_v11  ;;  %v8065_v31 = vor.u32 %v9018_v12, %v8062_v13  ;;  %vm4328_vm15 = vweird.f32 %v9295_v55 }
 0x83a   : > { %4940 = vmatpush.bf16.msrb.mxu3 %v7945_v35  ;;  %4949 = vmatpush.bf16.msrb.mxu0 %v8041_v22  ;;  %v9016_v22 = vld [vmem:[%s12423_s3 + $0x104] sm:$0xf]  ;;  %vm4329_vm1 = vmor %vm4327_vm0, %vm4328_vm15 }
 0x83b   : > { %v4324_v16 = vsub.f32 1.0, %v4323_v59  ;;  %v8057_v36 = vor.u32 %v9016_v22, %v8054_v17  ;;  %v9038_v59 = vld [vmem:[#allocation6 + $0x30] sm:$0xff]  ;;  %v9043_v22 = vld [vmem:[#allocation6 + $0x58] sm:$0xff] }
 0x83c   : > { %4963 = vmatpush.bf16.msrb.mxu1 %v8097_v20  ;;  %v589_v20 = vadd.f32 %v9984_v57, %v9939_v28  ;;  %v9035_v17 = vld [vmem:[#allocation6 + $0x18] sm:$0xff] }
 0x83d   : > { %4928 = vmatpush.bf16.msra.mxu2 %v8061_v32  ;;  %v4325_v29 = vmul.f32 %v9295_v55, %v4324_v16 }
 0x83e   : > { %4941 = vmatpush.bf16.msrb.mxu3 %v7937_v14  ;;  %4950 = vmatpush.bf16.msrb.mxu0 %v8033_v8  ;;  %v7993_v8 = vor.u32 %v9000_v38, %v7990_v40  ;;  %v9041_v40 = vld [vmem:[#allocation6 + $0x48] sm:$0xff] }
 0x83f   : > { %v4326_v57 = vadd.f32 %v9295_v55, %v4325_v29 }
 0x840   : > { %4964 = vmatpush.bf16.msrb.mxu1 %v8089_v26 }
 0x841   : > { %4929 = vmatpush.bf16.msra.mxu2 %v8053_v56  ;;  %v4330_v18 = vsel %vm4329_vm1, %v9295_v55, %v4326_v57  ;;  %v9049_v57 = vld [vmem:[#allocation6 + $0x88] sm:$0xff] }
 0x842   : > { %4942 = vmatpush.bf16.msrb.mxu3 %v7929_v58  ;;  %4951 = vmatpush.bf16.msrb.mxu0 %v8025_v0  ;;  %v4335_v58 = vsel %vm4332_vm2, %v4334_v52, %v4330_v18  ;;  %v9032_v18 = vld [vmem:[#allocation6] sm:$0xff] }
 0x844   : > { %4965 = vmatpush.bf16.msrb.mxu1 %v8081_v39  ;;  %v9039_v39 = vld [vmem:[#allocation6 + $0x38] sm:$0xff] }
 0x845   : > { %5214 = vmatpush.bf16.msrb.mxu2 %v9039_v39  ;;  %v8275_v39 = vld [vmem:[%s12423_s3 + $0x60] sm:$0xf] }
 0x846   : > { %4952 = vmatpush.bf16.msrb.mxu0 %v8017_v46 }
 0x848   : > { %4966 = vmatpush.bf16.msrb.mxu1 %v8073_v4  ;;  %v9045_v4 = vld [vmem:[#allocation6 + $0x68] sm:$0xff] }
 0x849   : > { %5215 = vmatpush.bf16.msrb.mxu2 %v9038_v59  ;;  %v8267_v59 = vld [vmem:[%s12423_s3 + $0x50] sm:$0xf] }
 0x84a   : > { %4953 = vmatpush.bf16.msrb.mxu0 %v8009_v48 }
 0x84c   : > { %4967 = vmatpush.bf16.msrb.mxu1 %v8065_v31 }
 0x84d   : > { %5216 = vmatpush.bf16.msrb.mxu2 %v9037_v9 }
 0x84e   : > { %4954 = vmatpush.bf16.msrb.mxu0 %v8001_v21 }
 0x850   : > { %4968 = vmatpush.bf16.msrb.mxu1 %v8057_v36  ;;  %v9050_v36 = vld [vmem:[#allocation6 + $0x90] sm:$0xff] }
 0x851   : > { %5217 = vmatpush.bf16.msrb.mxu2 %v9036_v50  ;;  %v8323_v50 = vld [vmem:[%s12423_s3 + $0xc0] sm:$0xf] }
 0x852   : > { %4955 = vmatpush.bf16.msrb.mxu0 %v7993_v8  ;;  %v9033_v8 = vld [vmem:[#allocation6 + $0x8] sm:$0xff] }
 0x855   : > { %5218 = vmatpush.bf16.msrb.mxu2 %v9035_v17  ;;  %v8259_v17 = vld [vmem:[%s12423_s3 + $0x40] sm:$0xf] }
 0x8b0   : > { %v4561_v43 = vpop.f32.mrf.mxu1 }
 0x8b4   : > { %v4574_v45 = vpop.f32.mrf.mxu2 }
 0x8b5   : > { %v4575_v35 = vadd.f32 %v4574_v45, %v4561_v43  ;;  %v9054_v43 = vld [vmem:[#allocation6 + $0xb0] sm:$0xff]  ;;  %v9044_v45 = vld [vmem:[#allocation6 + $0x60] sm:$0xff] }
 0x8b6   : > { %v4587_v24 = vpop.f32.mrf.mxu3 }
 0x8b7   : > { %v4588_v53 = vadd.f32 %v4587_v24, %v4575_v35  ;;  %v9052_v35 = vld [vmem:[#allocation6 + $0xa0] sm:$0xff]  ;;  %v9051_v24 = vld [vmem:[#allocation6 + $0x98] sm:$0xff] }
 0x8b8   : > { %v4563_v32 = vpop.f32.mrf.mxu1 }
 0x8b9   : > { %v4591_v14 = vadd.f32 %v4588_v53, %v589_v20  ;;  %v9042_v20 = vld [vmem:[#allocation6 + $0x50] sm:$0xff] }
 0x8ba   : > { %v9034_v32 = vld [vmem:[#allocation6 + $0x10] sm:$0xff] }
 0x8bb   : > { %9296 = vtanh.f32 %v4591_v14  ;;  %5219 = vmatpush.bf16.msrb.mxu2 %v9034_v32 }
 0x8bc   : > { %v4576_v49 = vpop.f32.mrf.mxu2 }
 0x8be   : > { %v4589_v26 = vpop.f32.mrf.mxu3 }
 0x8bf   : > { %5220 = vmatpush.bf16.msrb.mxu2 %v9033_v8 }
 0x8c1   : > { %v9297_v51 = vpop.eup %9296 }
 0x8c2   : > { %v4593_v56 = vsub.f32 %v9297_v51, %v11672_v37  ;;  %v9048_v51 = vld [vmem:[#allocation6 + $0x80] sm:$0xff] }
 0x8c3   : > { %5221 = vmatpush.bf16.msrb.mxu2 %v9032_v18 }
 0x8c4   : > { %v4594_v25 = vmul.f32 %v4593_v56, %v4335_v58  ;;  %v8347_v56 = vld [vmem:[%s12423_s3 + $0xf0] sm:$0xf]  ;;  %v9087_v58 = vld [vmem:[%s12423_s3 + $0xf4] sm:$0xf0] }
 0x8c6   : > { %v12009_v41 = vadd.f32 %v4594_v25, %v11672_v37  ;;  %v9047_v37 = vld [vmem:[#allocation6 + $0x78] sm:$0xff]  ;;  %v8348_v25 = vor.u32 %v9087_v58, %v8347_v56 }
 0x8c7   : > { %5227 = vmatpush.bf16.msra.mxu3 %v9047_v37 }
 0x8c8   : > { %7921 = vst [vmem:[%s10316_s12 + $0x28] sm:$0xff] %v12009_v41  ;;  %v4606_v54 = vpack.c.bf16 %v12009_v41, %v12009_v41  ;;  %v12016_v11 = vrot.slane %v12009_v41, 7  ;;  %v12019_v0 = vrot.slane %v12009_v41, 1 }
 0x8ca   : > { %4917 = vmatmul.bf16.vlgmr.msra.gmra.mxu1 %v4606_v54  ;;  %v8115_v27 = vpack.c.bf16 %v12016_v11, %v12016_v11  ;;  %v8118_v55 = vpack.c.bf16 %v12019_v0, %v12019_v0  ;;  %v4604_v18 = vsel %vm628_vm12, %v12019_v0, 0.0  ;;  %v8251_v0 = vld [vmem:[%s12423_s3 + $0x30] sm:$0xf] }
 0x8cb   : > { %5228 = vmatpush.bf16.msra.mxu3 %v9046_v2 }
 0x8cc   : > { %8116 = vmatmul.msk.bf16.vlgmr.msra.gmra.mxu0 %vm10328_vm13, %v8115_v27  ;;  %8119 = vmatmul.msk.bf16.vlgmr.msra.gmra.mxu2 %vm10338_vm14, %v8118_v55 }
 0x8cd   : > { %8122 = vmatmul.msk.bf16.vlgmr.msrb.gmra.mxu3 %vm10328_vm13, %v8115_v27  ;;  %5240 = vmatpush.bf16.msra.mxu0 %v9055_v44  ;;  %v8339_v27 = vld [vmem:[%s12423_s3 + $0xe0] sm:$0xf]  ;;  %v9069_v44 = vld [vmem:[%s12423_s3 + $0x64] sm:$0xf0] }
 0x8ce   : > { %5571 = vmatpush.bf16.msra.mxu2 %v8348_v25  ;;  %v8276_v2 = vor.u32 %v9069_v44, %v8275_v39  ;;  %v8315_v25 = vld [vmem:[%s12423_s3 + $0xb0] sm:$0xf] }
 0x8cf   : > { %5229 = vmatpush.bf16.msra.mxu3 %v9045_v4  ;;  %v8411_v4 = vld [vmem:[%s12423_s3 + $0x170] sm:$0xf] }
 0x8d1   : > { %5241 = vmatpush.bf16.msra.mxu0 %v9054_v43  ;;  %v9067_v43 = vld [vmem:[%s12423_s3 + $0x54] sm:$0xf0] }
 0x8d3   : > { %5230 = vmatpush.bf16.msra.mxu3 %v9044_v45  ;;  %v8285_v45 = vld [vmem:[%s12423_s3 + $0x78] sm:$0xf0] }
 0x8d5   : > { %5242 = vmatpush.bf16.msra.mxu0 %v9053_v10  ;;  %v9103_v10 = vld [vmem:[%s12423_s3 + $0x174] sm:$0xf0] }
 0x8d7   : > { %5231 = vmatpush.bf16.msra.mxu3 %v9043_v22 }
 0x8d9   : > { %5243 = vmatpush.bf16.msra.mxu0 %v9052_v35  ;;  %v9081_v35 = vld [vmem:[%s12423_s3 + $0xc4] sm:$0xf0] }
 0x8da   : > { %8125 = vmatmul.msk.bf16.vlgmr.msrb.gmra.mxu1 %vm10338_vm14, %v8118_v55  ;;  %v9085_v55 = vld [vmem:[%s12423_s3 + $0xe4] sm:$0xf0] }
 0x8db   : > { %5232 = vmatpush.bf16.msra.mxu3 %v9042_v20  ;;  %v8324_v20 = vor.u32 %v9081_v35, %v8323_v50  ;;  %v9075_v50 = vld [vmem:[%s12423_s3 + $0x94] sm:$0xf0] }
 0x8dc   : > { %4956 = vmatmul.bf16.vlgmr.msrb.gmra.mxu0 %v4606_v54  ;;  %v9071_v54 = vld [vmem:[%s12423_s3 + $0x74] sm:$0xf0] }
 0x8dd   : > { %5244 = vmatpush.bf16.msra.mxu0 %v9051_v24  ;;  %v9065_v24 = vld [vmem:[%s12423_s3 + $0x44] sm:$0xf0] }
 0x8df   : > { %5233 = vmatpush.bf16.msra.mxu3 %v9041_v40 }
 0x8e1   : > { %5245 = vmatpush.bf16.msra.mxu0 %v9050_v36 }
 0x8e3   : > { %5234 = vmatpush.bf16.msra.mxu3 %v9040_v42 }
 0x8e5   : > { %5246 = vmatpush.bf16.msra.mxu0 %v9049_v57 }
 0x8e9   : > { %5247 = vmatpush.bf16.msra.mxu0 %v9048_v51 }
 0x947   : > { %v4918_v1 = vpop.f32.mrf.mxu1 }
 0x949   : > { %v4905_v3 = vpop.f32.mrf.mxu0 }
 0x94a   : > { %v4919_v46 = vadd.f32 %v4918_v1, %v4905_v3  ;;  %v8340_v1 = vor.u32 %v9085_v55, %v8339_v27  ;;  %v8331_v3 = vld [vmem:[%s12423_s3 + $0xd0] sm:$0xf]  ;;  %v9063_v27 = vld [vmem:[%s12423_s3 + $0x34] sm:$0xf0]  ;;  %v8403_v55 = vld [vmem:[%s12423_s3 + $0x160] sm:$0xf] }
 0x94b   : > { %v8252_v39 = vor.u32 %v9063_v27, %v8251_v0  ;;  %v9100_v27 = vld [vmem:[%s12423_s3 + $0x164] sm:$0xf] }
 0x94c   : > { %5572 = vmatpush.bf16.msra.mxu2 %v8340_v1  ;;  %v9068_v1 = vld [vmem:[%s12423_s3 + $0x64] sm:$0xf] }
 0x94f   : > { %v4920_v12 = vpop.f32.mrf.mxu1  ;;  %v4931_v13 = vpop.f32.mrf.mxu2 }
 0x950   : > { %v4932_v48 = vadd.f32 %v4931_v13, %v4919_v46  ;;  %v4944_v16 = vpop.f32.mrf.mxu3  ;;  %v9083_v46 = vld [vmem:[%s12423_s3 + $0xd4] sm:$0xf0]  ;;  %v9070_v12 = vld [vmem:[%s12423_s3 + $0x74] sm:$0xf] }
 0x951   : > { %v4907_v31 = vpop.f32.mrf.mxu0  ;;  %v8288_v22 = vor.u32 %v9070_v12, %v8285_v45  ;;  %v8269_v45 = vld [vmem:[%s12423_s3 + $0x58] sm:$0xf0] }
 0x952   : > { %v12034_v19 = vadd.f32 %v4932_v48, %v9987_v62  ;;  %v8332_v48 = vor.u32 %v9083_v46, %v8331_v3  ;;  %v8268_v31 = vor.u32 %v9067_v43, %v8267_v59  ;;  %v8307_v46 = vld [vmem:[%s12423_s3 + $0xa0] sm:$0xf]  ;;  %v9077_v59 = vld [vmem:[%s12423_s3 + $0xa4] sm:$0xf0] }
 0x953   : > { %5597 = vmatpush.bf16.msrb.mxu0 %v8288_v22  ;;  %v8308_v43 = vor.u32 %v9077_v59, %v8307_v46  ;;  %v8245_v46 = vld [vmem:[%s12423_s3 + $0x28] sm:$0xf0]  ;;  %v9084_v59 = vld [vmem:[%s12423_s3 + $0xe4] sm:$0xf] }
 0x954   : > { %5573 = vmatpush.bf16.msra.mxu2 %v8332_v48  ;;  %v9099_v48 = vld [vmem:[%s12423_s3 + $0x154] sm:$0xf0] }
 0x957   : > { %v4933_v53 = vpop.f32.mrf.mxu2  ;;  %v4970_v21 = vpop.f32.mrf.mxu1 }
 0x958   : > { %v4946_v29 = vpop.f32.mrf.mxu3  ;;  %v8260_v53 = vor.u32 %v9065_v24, %v8259_v17  ;;  %5574 = vmatpush.bf16.msra.mxu2 %v8324_v20  ;;  %v8235_v17 = vld [vmem:[%s12423_s3 + $0x10] sm:$0xf]  ;;  %v9059_v24 = vld [vmem:[%s12423_s3 + $0x14] sm:$0xf0] }
 0x959   : > { %v4957_v38 = vpop.f32.mrf.mxu0  ;;  %v8236_v20 = vor.u32 %v9059_v24, %v8235_v17  ;;  %v9096_v24 = vld [vmem:[%s12423_s3 + $0x144] sm:$0xf] }
 0x95a   : > { %v4958_v62 = vadd.f32 %v4957_v38, %v4944_v16  ;;  %v8412_v16 = vor.u32 %v9103_v10, %v8411_v4  ;;  %v8126_v4 = vmul.f32 -1.442695, %v12034_v19  ;;  %v9061_v10 = vld [vmem:[%s12423_s3 + $0x24] sm:$0xf0]  ;;  %v9066_v19 = vld [vmem:[%s12423_s3 + $0x54] sm:$0xf] }
 0x95b   : > { %v8272_v35 = vor.u32 %v9066_v19, %v8269_v45  ;;  %v9091_v19 = vld [vmem:[%s12423_s3 + $0x114] sm:$0xf0] }
 0x95c   : > { %v4971_v14 = vadd.f32 %v4970_v21, %v4958_v62  ;;  %5584 = vmatpush.bf16.msrb.mxu3 %v8412_v16 }
 0x95e   : > { %v4975_v49 = vadd.f32 %v4971_v14, %v9990_v63  ;;  %v8283_v63 = vld [vmem:[%s12423_s3 + $0x70] sm:$0xf] }
 0x95f   : > { %v4972_v47 = vpop.f32.mrf.mxu1  ;;  %v8284_v37 = vor.u32 %v9071_v54, %v8283_v63 }
 0x960   : > { %v8127_v26 = vmul.f32 -1.442695, %v4975_v49 }
 0x961   : > { %v4959_v52 = vpop.f32.mrf.mxu0  ;;  %5558 = vmatpush.bf16.msra.mxu1 %v8284_v37  ;;  %v9101_v37 = vld [vmem:[%s12423_s3 + $0x164] sm:$0xf0] }
 0x962   : > { %9298 = vpow2.f32 %v8127_v26  ;;  %v4602_v26 = vsel %vm623_vm11, %v12016_v11, 0.0  ;;  %v9079_v11 = vld [vmem:[%s12423_s3 + $0xb4] sm:$0xf0]  ;;  %v8404_v44 = vor.u32 %v9101_v37, %v8403_v55  ;;  %v8405_v55 = vld [vmem:[%s12423_s3 + $0x168] sm:$0xf0] }
 0x963   : > { %v8316_v54 = vor.u32 %v9079_v11, %v8315_v25  ;;  %v9086_v25 = vld [vmem:[%s12423_s3 + $0xf4] sm:$0xf]  ;;  %v8349_v11 = vld [vmem:[%s12423_s3 + $0xf8] sm:$0xf0] }
 0x964   : > { %5585 = vmatpush.bf16.msrb.mxu3 %v8404_v44  ;;  %v8371_v44 = vld [vmem:[%s12423_s3 + $0x120] sm:$0xf] }
 0x965   : > { %5559 = vmatpush.bf16.msra.mxu1 %v8276_v2  ;;  %v8277_v2 = vld [vmem:[%s12423_s3 + $0x68] sm:$0xf0]  ;;  %5575 = vmatpush.bf16.msra.mxu2 %v8316_v54  ;;  %v8352_v54 = vor.u32 %v9086_v25, %v8349_v11  ;;  %v9076_v11 = vld [vmem:[%s12423_s3 + $0xa4] sm:$0xf] }
 0x966   : > { %v8280_v3 = vor.u32 %v9068_v1, %v8277_v2  ;;  %v9093_v1 = vld [vmem:[%s12423_s3 + $0x124] sm:$0xf0]  ;;  %v9060_v2 = vld [vmem:[%s12423_s3 + $0x24] sm:$0xf] }
 0x968   : > { %v9299_v9 = vpop.eup %9298  ;;  %5598 = vmatpush.bf16.msrb.mxu0 %v8280_v3  ;;  %v8372_v3 = vor.u32 %v9093_v1, %v8371_v44 }
 0x969   : > { %v4983_v13 = vadd.f32 1.0, %v9299_v9  ;;  %5560 = vmatpush.bf16.msra.mxu1 %v8268_v31  ;;  %5576 = vmatpush.bf16.msra.mxu2 %v8308_v43  ;;  %v8243_v9 = vld [vmem:[%s12423_s3 + $0x20] sm:$0xf]  ;;  %v8299_v31 = vld [vmem:[%s12423_s3 + $0x90] sm:$0xf] }
 0x96a   : > { %v8244_v12 = vor.u32 %v9061_v10, %v8243_v9  ;;  %v8300_v22 = vor.u32 %v9075_v50, %v8299_v31  ;;  %v8341_v43 = vld [vmem:[%s12423_s3 + $0xe8] sm:$0xf0]  ;;  %v9098_v10 = vld [vmem:[%s12423_s3 + $0x154] sm:$0xf]  ;;  %v8237_v31 = vld [vmem:[%s12423_s3 + $0x18] sm:$0xf0] }
 0x96b   : > { %9300 = vrcp.f32 %v4983_v13  ;;  %v5010_v36 = vand.u32 2147483648, %v4983_v13  ;;  %v5008_v62 = vand.u32 2147483647, %v4983_v13  ;;  %vm5004_vm4 = vweird.f32 %v4983_v13  ;;  %v9082_v50 = vld [vmem:[%s12423_s3 + $0xd4] sm:$0xf] }
 0x96c   : > { %9302 = vpow2.f32 %v8126_v4  ;;  %5599 = vmatpush.bf16.msrb.mxu0 %v8272_v35  ;;  %v8248_v4 = vor.u32 %v9060_v2, %v8245_v46  ;;  %v8344_v9 = vor.u32 %v9084_v59, %v8341_v43  ;;  %v8333_v35 = vld [vmem:[%s12423_s3 + $0xd8] sm:$0xf0]  ;;  %v9088_v43 = vld [vmem:[%s12423_s3 + $0x104] sm:$0xf] }
 0x96d   : > { %5561 = vmatpush.bf16.msra.mxu1 %v8260_v53  ;;  %v5011_v14 = vor.u32 1.1754944e-38, %v5010_v36  ;;  %vm5009_vm6 = vcmp.eq.f32.partialorder %v5008_v62, 8.507059e+37  ;;  %5577 = vmatpush.bf16.msra.mxu2 %v8300_v22  ;;  %v8387_v53 = vld [vmem:[%s12423_s3 + $0x140] sm:$0xf]  ;;  %v8261_v36 = vld [vmem:[%s12423_s3 + $0x48] sm:$0xf0]  ;;  %v8336_v17 = vor.u32 %v9082_v50, %v8333_v35 }
 0x96e   : > { %v9073_v62 = vld [vmem:[%s12423_s3 + $0x84] sm:$0xf0]  ;;  %v8301_v46 = vld [vmem:[%s12423_s3 + $0x98] sm:$0xf0] }
 0x971   : > { %v9301_v21 = vpop.eup %9300  ;;  %5562 = vmatpush.bf16.msra.mxu1 %v8252_v39  ;;  %v8408_v39 = vor.u32 %v9100_v27, %v8405_v55  ;;  %v8365_v27 = vld [vmem:[%s12423_s3 + $0x118] sm:$0xf0] }
 0x972   : > { %v5000_v29 = vmul.f32 %v9301_v21, %v4983_v13  ;;  %vm5005_vm3 = vweird.f32 %v9301_v21  ;;  %v8395_v13 = vld [vmem:[%s12423_s3 + $0x150] sm:$0xf] }
 0x973   : > { %vm5006_vm5 = vmor %vm5004_vm4, %vm5005_vm3  ;;  %v8396_v16 = vor.u32 %v9099_v48, %v8395_v13  ;;  %v8363_v48 = vld [vmem:[%s12423_s3 + $0x110] sm:$0xf] }
 0x974   : > { %v5001_v32 = vsub.f32 1.0, %v5000_v29  ;;  %v9064_v29 = vld [vmem:[%s12423_s3 + $0x44] sm:$0xf]  ;;  %v8364_v45 = vor.u32 %v9091_v19, %v8363_v48 }
 0x975   : > { %5563 = vmatpush.bf16.msra.mxu1 %v8244_v12  ;;  %5586 = vmatpush.bf16.msrb.mxu3 %v8396_v16  ;;  %v8397_v12 = vld [vmem:[%s12423_s3 + $0x158] sm:$0xf0]  ;;  %v9058_v16 = vld [vmem:[%s12423_s3 + $0x14] sm:$0xf]  ;;  %v9072_v19 = vld [vmem:[%s12423_s3 + $0x84] sm:$0xf] }
 0x976   : > { %v5002_v38 = vmul.f32 %v9301_v21, %v5001_v32  ;;  %v8400_v13 = vor.u32 %v9098_v10, %v8397_v12  ;;  %v8240_v22 = vor.u32 %v9058_v16, %v8237_v31  ;;  %v8293_v16 = vld [vmem:[%s12423_s3 + $0x88] sm:$0xf0] }
 0x977   : > { %v8296_v50 = vor.u32 %v9072_v19, %v8293_v16  ;;  %v9121_v19 = vld [vmem:[#allocation6 + $0x88] sm:$0xff] }
 0x978   : > { %v5003_v40 = vadd.f32 %v9301_v21, %v5002_v38  ;;  %v8291_v38 = vld [vmem:[%s12423_s3 + $0x80] sm:$0xf] }
 0x979   : > { %5564 = vmatpush.bf16.msra.mxu1 %v8236_v20  ;;  %v8389_v20 = vld [vmem:[%s12423_s3 + $0x148] sm:$0xf0] }
 0x97a   : > { %v5007_v8 = vsel %vm5006_vm5, %v9301_v21, %v5003_v40  ;;  %v9097_v21 = vld [vmem:[%s12423_s3 + $0x144] sm:$0xf0]  ;;  %v8264_v40 = vor.u32 %v9064_v29, %v8261_v36  ;;  %v8229_v36 = vld [vmem:[%s12423_s3 + $0x8] sm:$0xf0] }
 0x97b   : > { %v5012_v57 = vsel %vm5009_vm6, %v5011_v14, %v5007_v8  ;;  %v8388_v32 = vor.u32 %v9097_v21, %v8387_v53  ;;  %v8292_v14 = vor.u32 %v9073_v62, %v8291_v38  ;;  %v9102_v8 = vld [vmem:[%s12423_s3 + $0x174] sm:$0xf]  ;;  %v8355_v53 = vld [vmem:[%s12423_s3 + $0x100] sm:$0xf]  ;;  %v8392_v21 = vor.u32 %v9096_v24, %v8389_v20  ;;  %v9089_v29 = vld [vmem:[%s12423_s3 + $0x104] sm:$0xf0] }
 0x97c   : > { %v5017_v49 = vmul.f32 %v5012_v57, %v12009_v41  ;;  %v5014_v42 = vrot.slane %v5012_v57, 7  ;;  %v5015_v47 = vrot.slane %v5012_v57, 1  ;;  %v8413_v57 = vld [vmem:[%s12423_s3 + $0x178] sm:$0xf0]  ;;  %5600 = vmatpush.bf16.msrb.mxu0 %v8264_v40  ;;  %v8356_v38 = vor.u32 %v9089_v29, %v8355_v53  ;;  %v9080_v40 = vld [vmem:[%s12423_s3 + $0xc4] sm:$0xf] }
 0x97d   : > { %5587 = vmatpush.bf16.msrb.mxu3 %v8388_v32  ;;  %5578 = vmatpush.bf16.msra.mxu2 %v8292_v14  ;;  %v9056_v32 = vld [vmem:[%s12423_s3 + $0x4] sm:$0xf]  ;;  %v8325_v14 = vld [vmem:[%s12423_s3 + $0xc8] sm:$0xf0] }
 0x97e   : > { %v5020_v51 = vpack.c.bf16 %v5017_v49, %v5017_v49  ;;  %v5016_v52 = vmul.f32 %v5014_v42, %v4602_v26  ;;  %v5018_v56 = vmul.f32 %v5015_v47, %v4604_v18  ;;  %v8416_v49 = vor.u32 %v9102_v8, %v8413_v57  ;;  %v8227_v42 = vld [vmem:[%s12423_s3] sm:$0xf]  ;;  %v9057_v47 = vld [vmem:[%s12423_s3 + $0x4] sm:$0xf0]  ;;  %v9303_v26 = vpop.eup %9302  ;;  %v9094_v8 = vld [vmem:[%s12423_s3 + $0x134] sm:$0xf] }
 0x97f   : > { %v8228_v18 = vor.u32 %v9057_v47, %v8227_v42  ;;  %v12219_v37 = vadd.f32 1.0, %v9303_v26  ;;  %v8232_v62 = vor.u32 %v9056_v32, %v8229_v36  ;;  %v8328_v57 = vor.u32 %v9080_v40, %v8325_v14  ;;  %v9078_v26 = vld [vmem:[%s12423_s3 + $0xb4] sm:$0xf] }
 0x980   : > { %5235 = vmatmul.bf16.vlgmr.msra.gmra.mxu3 %v5020_v51  ;;  %v5019_v58 = vpack.c.bf16 %v5016_v52, %v5016_v52  ;;  %v5021_v63 = vpack.c.bf16 %v5018_v56, %v5018_v56  ;;  %v8379_v51 = vld [vmem:[%s12423_s3 + $0x130] sm:$0xf]  ;;  %v9095_v52 = vld [vmem:[%s12423_s3 + $0x134] sm:$0xf0]  ;;  %v9062_v56 = vld [vmem:[%s12423_s3 + $0x34] sm:$0xf] }
 0x981   : > { %5565 = vmatpush.bf16.msra.mxu1 %v8228_v18  ;;  %9304 = vrcp.f32 %v12219_v37  ;;  %v8317_v18 = vld [vmem:[%s12423_s3 + $0xb8] sm:$0xf0]  ;;  %vm4989_vm8 = vweird.f32 %v12219_v37  ;;  %v4993_v24 = vand.u32 2147483647, %v12219_v37 }
 0x982   : > { %5222 = vmatmul.bf16.vlgmr.msrb.gmra.mxu2 %v5019_v58  ;;  %5248 = vmatmul.bf16.vlgmr.msra.gmra.mxu0 %v5021_v63  ;;  %v8380_v58 = vor.u32 %v9095_v52, %v8379_v51  ;;  %v8253_v63 = vld [vmem:[%s12423_s3 + $0x38] sm:$0xf0]  ;;  %v9092_v51 = vld [vmem:[%s12423_s3 + $0x124] sm:$0xf] }
 0x983   : > { %5623 = vmatpush.bf16.msrb.mxu2 %v8416_v49  ;;  %v8256_v0 = vor.u32 %v9062_v56, %v8253_v63  ;;  %v8381_v49 = vld [vmem:[%s12423_s3 + $0x138] sm:$0xf0]  ;;  %v8373_v56 = vld [vmem:[%s12423_s3 + $0x128] sm:$0xf0]  ;;  %vm4994_vm10 = vcmp.eq.f32.partialorder %v4993_v24, 8.507059e+37 }
 0x984   : > { %5588 = vmatpush.bf16.msrb.mxu3 %v8380_v58  ;;  %v8384_v47 = vor.u32 %v9094_v8, %v8381_v49  ;;  %v8320_v58 = vor.u32 %v9078_v26, %v8317_v18  ;;  %v8376_v25 = vor.u32 %v9092_v51, %v8373_v56  ;;  %v9111_v8 = vld [vmem:[#allocation6 + $0x38] sm:$0xff]  ;;  %v9110_v26 = vld [vmem:[#allocation6 + $0x30] sm:$0xff]  ;;  %v536_v56 = vadd.f32 %v9995_v6, %v9932_v23 }
 0x985   : > { %5601 = vmatpush.bf16.msrb.mxu0 %v8256_v0  ;;  %5610 = vmatpush.bf16.msrb.mxu1 %v8352_v54  ;;  %v8309_v0 = vld [vmem:[%s12423_s3 + $0xa8] sm:$0xf0]  ;;  %v9090_v54 = vld [vmem:[%s12423_s3 + $0x114] sm:$0xf]  ;;  %v9126_v18 = vld [vmem:[#allocation6 + $0xb0] sm:$0xff] }
 0x986   : > { %v8368_v2 = vor.u32 %v9090_v54, %v8365_v27  ;;  %v9116_v27 = vld [vmem:[#allocation6 + $0x60] sm:$0xff]  ;;  %v9107_v23 = vld [vmem:[#allocation6 + $0x18] sm:$0xff] }
 0x987   : > { %5624 = vmatpush.bf16.msrb.mxu2 %v8408_v39  ;;  %v9305_v42 = vpop.eup %9304  ;;  %v8312_v39 = vor.u32 %v9076_v11, %v8309_v0  ;;  %v9123_v6 = vld [vmem:[#allocation6 + $0x98] sm:$0xff] }
 0x988   : > { %5589 = vmatpush.bf16.msrb.mxu3 %v8372_v3  ;;  %v4985_v63 = vmul.f32 %v9305_v42, %v12219_v37  ;;  %v9074_v3 = vld [vmem:[%s12423_s3 + $0x94] sm:$0xf]  ;;  %vm4990_vm7 = vweird.f32 %v9305_v42 }
 0x989   : > { %5602 = vmatpush.bf16.msrb.mxu0 %v8248_v4  ;;  %5611 = vmatpush.bf16.msrb.mxu1 %v8344_v9  ;;  %v8357_v4 = vld [vmem:[%s12423_s3 + $0x108] sm:$0xf0]  ;;  %v8304_v12 = vor.u32 %v9074_v3, %v8301_v46  ;;  %vm4991_vm9 = vmor %vm4989_vm8, %vm4990_vm7  ;;  %v9114_v3 = vld [vmem:[#allocation6 + $0x50] sm:$0xff] }
 0x98a   : > { %v4986_v44 = vsub.f32 1.0, %v4985_v63  ;;  %v8360_v48 = vor.u32 %v9088_v43, %v8357_v4  ;;  %v9109_v63 = vld [vmem:[#allocation6 + $0x28] sm:$0xff]  ;;  %v9122_v43 = vld [vmem:[#allocation6 + $0x90] sm:$0xff] }
 0x98b   : > { %5625 = vmatpush.bf16.msrb.mxu2 %v8400_v13 }
 0x98c   : > { %5590 = vmatpush.bf16.msrb.mxu3 %v8364_v45  ;;  %v4987_v13 = vmul.f32 %v9305_v42, %v4986_v44 }
 0x98d   : > { %5603 = vmatpush.bf16.msrb.mxu0 %v8240_v22  ;;  %5612 = vmatpush.bf16.msrb.mxu1 %v8336_v17  ;;  %v4995_v17 = vand.u32 2147483648, %v12219_v37 }
 0x98e   : > { %v4988_v35 = vadd.f32 %v9305_v42, %v4987_v13 }
 0x98f   : > { %5626 = vmatpush.bf16.msrb.mxu2 %v8392_v21 }
 0x990   : > { %5591 = vmatpush.bf16.msrb.mxu3 %v8356_v38  ;;  %v4992_v20 = vsel %vm4991_vm9, %v9305_v42, %v4988_v35  ;;  %v9104_v35 = vld [vmem:[#allocation6] sm:$0xff] }
 0x991   : > { %5604 = vmatpush.bf16.msrb.mxu0 %v8232_v62  ;;  %5613 = vmatpush.bf16.msrb.mxu1 %v8328_v57  ;;  %v9127_v57 = vld [vmem:[#allocation6 + $0xb8] sm:$0xff] }
 0x993   : > { %5627 = vmatpush.bf16.msrb.mxu2 %v8384_v47  ;;  %v9118_v47 = vld [vmem:[#allocation6 + $0x70] sm:$0xff] }
 0x994   : > { %5876 = vmatpush.bf16.msra.mxu3 %v9111_v8 }
 0x995   : > { %5614 = vmatpush.bf16.msrb.mxu1 %v8320_v58 }
 0x997   : > { %5628 = vmatpush.bf16.msrb.mxu2 %v8376_v25  ;;  %v9125_v25 = vld [vmem:[#allocation6 + $0xa8] sm:$0xff] }
 0x998   : > { %5877 = vmatpush.bf16.msra.mxu3 %v9110_v26 }
 0x999   : > { %5615 = vmatpush.bf16.msrb.mxu1 %v8312_v39  ;;  %v9124_v39 = vld [vmem:[#allocation6 + $0xa0] sm:$0xff] }
 0x99b   : > { %5629 = vmatpush.bf16.msrb.mxu2 %v8368_v2 }
 0x99c   : > { %5878 = vmatpush.bf16.msra.mxu3 %v9109_v63 }
 0x99d   : > { %5616 = vmatpush.bf16.msrb.mxu1 %v8304_v12  ;;  %v565_v12 = vadd.f32 %v9997_v7, %v9950_v34 }
 0x99f   : > { %5630 = vmatpush.bf16.msrb.mxu2 %v8360_v48  ;;  %v9105_v48 = vld [vmem:[#allocation6 + $0x8] sm:$0xff] }
 0x9a1   : > { %5617 = vmatpush.bf16.msrb.mxu1 %v8296_v50 }
 0x9ff   : > { %v5249_v52 = vpop.f32.mrf.mxu0 }
 0xa03   : > { %v5236_v55 = vpop.f32.mrf.mxu3 }
 0xa05   : > { %v5223_v1 = vpop.f32.mrf.mxu2 }
 0xa06   : > { %v5237_v59 = vadd.f32 %v5236_v55, %v5223_v1  ;;  %v9108_v55 = vld [vmem:[#allocation6 + $0x20] sm:$0xff]  ;;  %v9115_v1 = vld [vmem:[#allocation6 + $0x58] sm:$0xff] }
 0xa07   : > { %v5251_v9 = vpop.f32.mrf.mxu0  ;;  %5879 = vmatpush.bf16.msra.mxu3 %v9108_v55 }
 0xa08   : > { %v5250_v10 = vadd.f32 %v5249_v52, %v5237_v59  ;;  %v9106_v59 = vld [vmem:[#allocation6 + $0x10] sm:$0xff]  ;;  %v9113_v9 = vld [vmem:[#allocation6 + $0x48] sm:$0xff] }
 0xa0a   : > { %v5253_v45 = vadd.f32 %v5250_v10, %v9993_v5  ;;  %v4996_v5 = vor.u32 1.1754944e-38, %v4995_v17 }
 0xa0b   : > { %v5238_v31 = vpop.f32.mrf.mxu3  ;;  %5880 = vmatpush.bf16.msra.mxu3 %v9107_v23 }
 0xa0c   : > { %9306 = vtanh.f32 %v5253_v45  ;;  %v4997_v29 = vsel %vm4994_vm10, %v4996_v5, %v4992_v20  ;;  %v9112_v45 = vld [vmem:[#allocation6 + $0x40] sm:$0xff] }
 0xa0d   : > { %v5225_v22 = vpop.f32.mrf.mxu2 }
 0xa0e   : > { %v9120_v22 = vld [vmem:[#allocation6 + $0x80] sm:$0xff] }
 0xa0f   : > { %5881 = vmatpush.bf16.msra.mxu3 %v9106_v59 }
 0xa12   : > { %v9307_v53 = vpop.eup %9306 }
 0xa13   : > { %v5255_v21 = vsub.f32 %v9307_v53, %v12009_v41  ;;  %5882 = vmatpush.bf16.msra.mxu3 %v9105_v48 }
 0xa15   : > { %v5256_v32 = vmul.f32 %v5255_v21, %v4997_v29 }
 0xa17   : > { %v12343_v36 = vadd.f32 %v5256_v32, %v12009_v41  ;;  %v9119_v41 = vld [vmem:[#allocation6 + $0x78] sm:$0xff]  ;;  %5883 = vmatpush.bf16.msra.mxu3 %v9104_v35 }
 0xa18   : > { %5889 = vmatpush.bf16.msra.mxu0 %v9119_v41 }
 0xa19   : > { %8224 = vst [vmem:[%s10316_s12 + $0x30] sm:$0xff] %v12343_v36  ;;  %v5268_v38 = vpack.c.bf16 %v12343_v36, %v12343_v36  ;;  %v12350_v37 = vrot.slane %v12343_v36, 7  ;;  %v12353_v62 = vrot.slane %v12343_v36, 1 }
 0xa1b   : > { %5579 = vmatmul.bf16.vlgmr.msra.gmra.mxu2 %v5268_v38  ;;  %v8418_v40 = vpack.c.bf16 %v12350_v37, %v12350_v37  ;;  %v8421_v14 = vpack.c.bf16 %v12353_v62, %v12353_v62 }
 0xa1c   : > { %5890 = vmatpush.bf16.msra.mxu0 %v9118_v47 }
 0xa1d   : > { %8419 = vmatmul.msk.bf16.vlgmr.msra.gmra.mxu1 %vm10328_vm13, %v8418_v40  ;;  %8422 = vmatmul.msk.bf16.vlgmr.msrb.gmra.mxu3 %vm10338_vm14, %v8421_v14 }
 0xa1e   : > { %8425 = vmatmul.msk.bf16.vlgmr.msrb.gmra.mxu0 %vm10328_vm13, %v8418_v40  ;;  %5902 = vmatpush.bf16.msra.mxu1 %v9127_v57 }
 0xa20   : > { %5891 = vmatpush.bf16.msra.mxu0 %v9117_v60 }
 0xa22   : > { %5903 = vmatpush.bf16.msra.mxu1 %v9126_v18 }
 0xa24   : > { %5892 = vmatpush.bf16.msra.mxu0 %v9116_v27  ;;  %v594_v27 = vadd.f32 %v9999_v15, %v9939_v28 }
 0xa26   : > { %5904 = vmatpush.bf16.msra.mxu1 %v9125_v25 }
 0xa28   : > { %5893 = vmatpush.bf16.msra.mxu0 %v9115_v1 }
 0xa2a   : > { %5905 = vmatpush.bf16.msra.mxu1 %v9124_v39 }
 0xa2b   : > { %8428 = vmatmul.msk.bf16.vlgmr.msrb.gmra.mxu2 %vm10338_vm14, %v8421_v14 }
 0xa2c   : > { %5894 = vmatpush.bf16.msra.mxu0 %v9114_v3 }
 0xa2d   : > { %5618 = vmatmul.bf16.vlgmr.msrb.gmra.mxu1 %v5268_v38 }
 0xa2e   : > { %5906 = vmatpush.bf16.msra.mxu1 %v9123_v6 }
 0xa30   : > { %5895 = vmatpush.bf16.msra.mxu0 %v9113_v9 }
 0xa32   : > { %5907 = vmatpush.bf16.msra.mxu1 %v9122_v43 }
 0xa34   : > { %5896 = vmatpush.bf16.msra.mxu0 %v9112_v45 }
 0xa36   : > { %5908 = vmatpush.bf16.msra.mxu1 %v9121_v19 }
 0xa3a   : > { %5909 = vmatpush.bf16.msra.mxu1 %v9120_v22 }
 0xa9a   : > { %v5567_v49 = vpop.f32.mrf.mxu1 }
 0xa9b   : > { %v5606_v42 = vpop.f32.mrf.mxu0 }
 0xa9e   : > { %v5580_v51 = vpop.f32.mrf.mxu2 }
 0xa9f   : > { %v5581_v52 = vadd.f32 %v5580_v51, %v5567_v49  ;;  %v5264_v49 = vsel %vm623_vm11, %v12350_v37, 0.0 }
 0xaa0   : > { %v5593_v61 = vpop.f32.mrf.mxu3 }
 0xaa1   : > { %v5594_v58 = vadd.f32 %v5593_v61, %v5581_v52 }
 0xaa2   : > { %v5569_v11 = vpop.f32.mrf.mxu1 }
 0xaa3   : > { %v12369_v0 = vadd.f32 %v5594_v58, %v536_v56  ;;  %v5608_v54 = vpop.f32.mrf.mxu0 }
 0xaa5   : > { %v8429_v60 = vmul.f32 -1.442695, %v12369_v0 }
 0xaa6   : > { %v5582_v44 = vpop.f32.mrf.mxu2 }
 0xaa8   : > { %v5595_v2 = vpop.f32.mrf.mxu3 }
 0xaaa   : > { %v5619_v46 = vpop.f32.mrf.mxu1 }
 0xaab   : > { %v5620_v4 = vadd.f32 %v5619_v46, %v5606_v42  ;;  %v5266_v42 = vsel %vm628_vm12, %v12353_v62, 0.0 }
 0xaae   : > { %v5632_v10 = vpop.f32.mrf.mxu2 }
 0xaaf   : > { %v5633_v13 = vadd.f32 %v5632_v10, %v5620_v4 }
 0xab1   : > { %v5637_v16 = vadd.f32 %v5633_v13, %v565_v12 }
 0xab2   : > { %v5621_v31 = vpop.f32.mrf.mxu1 }
 0xab3   : > { %v8430_v50 = vmul.f32 -1.442695, %v5637_v16 }
 0xab5   : > { %9308 = vpow2.f32 %v8430_v50 }
 0xab6   : > { %v5634_v17 = vpop.f32.mrf.mxu2 }
 0xabb   : > { %v9309_v34 = vpop.eup %9308 }
 0xabc   : > { %v5645_v7 = vadd.f32 1.0, %v9309_v34 }
 0xabe   : > { %9310 = vrcp.f32 %v5645_v7  ;;  %v5672_v5 = vand.u32 2147483648, %v5645_v7  ;;  %v5670_v29 = vand.u32 2147483647, %v5645_v7  ;;  %vm5666_vm14 = vweird.f32 %v5645_v7 }
 0xabf   : > { %9312 = vpow2.f32 %v8429_v60 }
 0xac0   : > { %v5673_v38 = vor.u32 1.1754944e-38, %v5672_v5  ;;  %vm5671_vm0 = vcmp.eq.f32.partialorder %v5670_v29, 8.507059e+37 }
 0xac4   : > { %v9311_v24 = vpop.eup %9310 }
 0xac5   : > { %v5662_v20 = vmul.f32 %v9311_v24, %v5645_v7  ;;  %vm5667_vm13 = vweird.f32 %v9311_v24  ;;  %v9313_v61 = vpop.eup %9312 }
 0xac6   : > { %vm5668_vm15 = vmor %vm5666_vm14, %vm5667_vm13  ;;  %v5644_v56 = vadd.f32 1.0, %v9313_v61 }
 0xac7   : > { %v5663_v53 = vsub.f32 1.0, %v5662_v20 }
 0xac8   : > { %9314 = vrcp.f32 %v5644_v56  ;;  %v5657_v2 = vand.u32 2147483648, %v5644_v56  ;;  %vm5651_vm12 = vweird.f32 %v5644_v56  ;;  %v5655_v23 = vand.u32 2147483647, %v5644_v56 }
 0xac9   : > { %v5664_v21 = vmul.f32 %v9311_v24, %v5663_v53 }
 0xaca   : > { %v5658_v6 = vor.u32 1.1754944e-38, %v5657_v2  ;;  %vm5656_vm2 = vcmp.eq.f32.partialorder %v5655_v23, 8.507059e+37 }
 0xacb   : > { %v5665_v32 = vadd.f32 %v9311_v24, %v5664_v21 }
 0xacd   : > { %v5669_v40 = vsel %vm5668_vm15, %v9311_v24, %v5665_v32 }
 0xace   : > { %v5674_v14 = vsel %vm5671_vm0, %v5673_v38, %v5669_v40  ;;  %v9315_v37 = vpop.eup %9314 }
 0xacf   : > { %v5679_v41 = vmul.f32 %v5674_v14, %v12343_v36  ;;  %v5676_v8 = vrot.slane %v5674_v14, 7  ;;  %v5677_v57 = vrot.slane %v5674_v14, 1  ;;  %v5647_v30 = vmul.f32 %v9315_v37, %v5644_v56 }
 0xad0   : > { %vm5652_vm11 = vweird.f32 %v9315_v37 }
 0xad1   : > { %v5682_v47 = vpack.c.bf16 %v5679_v41, %v5679_v41  ;;  %v5678_v26 = vmul.f32 %v5676_v8, %v5264_v49  ;;  %v5680_v18 = vmul.f32 %v5677_v57, %v5266_v42  ;;  %v5648_v62 = vsub.f32 1.0, %v5647_v30  ;;  %vm5653_vm1 = vmor %vm5651_vm12, %vm5652_vm11 }
 0xad3   : > { %5897 = vmatmul.bf16.vlgmr.msra.gmra.mxu0 %v5682_v47  ;;  %v5681_v51 = vpack.c.bf16 %v5678_v26, %v5678_v26  ;;  %v5683_v52 = vpack.c.bf16 %v5680_v18, %v5680_v18  ;;  %v5649_v39 = vmul.f32 %v9315_v37, %v5648_v62 }
 0xad5   : > { %5884 = vmatmul.bf16.vlgmr.msra.gmra.mxu3 %v5681_v51  ;;  %5910 = vmatmul.bf16.vlgmr.msra.gmra.mxu1 %v5683_v52  ;;  %v5650_v44 = vadd.f32 %v9315_v37, %v5649_v39 }
 0xad7   : > { %v5654_v28 = vsel %vm5653_vm1, %v9315_v37, %v5650_v44 }
 0xad8   : > { %v5659_v46 = vsel %vm5656_vm2, %v5658_v6, %v5654_v28 }
 0xb50   : > { %v5898_v33 = vpop.f32.mrf.mxu0 }
 0xb52   : > { %v5911_v58 = vpop.f32.mrf.mxu1 }
 0xb58   : > { %v5885_v63 = vpop.f32.mrf.mxu3  ;;  %v5900_v25 = vpop.f32.mrf.mxu0 }
 0xb59   : > { %v5899_v11 = vadd.f32 %v5898_v33, %v5885_v63 }
 0xb5a   : > { %v5913_v54 = vpop.f32.mrf.mxu1 }
 0xb5b   : > { %v5912_v55 = vadd.f32 %v5911_v58, %v5899_v11 }
 0xb5d   : > { %v5915_v0 = vadd.f32 %v5912_v55, %v594_v27 }
 0xb5f   : > { %9316 = vtanh.f32 %v5915_v0 }
 0xb60   : > { %v5887_v1 = vpop.f32.mrf.mxu3 }
 0xb65   : > { %v9317_v15 = vpop.eup %9316 }
 0xb66   : > { %v5917_v3 = vsub.f32 %v9317_v15, %v12343_v36 }
 0xb68   : > { %v5918_v59 = vmul.f32 %v5917_v3, %v5659_v46 }
 0xb6a   : > { %v5919_v43 = vadd.f32 %v5918_v59, %v12343_v36 }
 0xb6c   : > { %8527 = vst [vmem:[%s10316_s12 + $0x38] sm:$0xff] %v5919_v43 }
 0xb6d   : > { %9405 = shalt.err (!%p9402_p8)
}
 0xb6e   : > { %s9459_s10 = smov 128   ;;  %s9460_s12 = smov 8  }
 0xb6f   : > { %9137 = dma.vmem_to_hbm [thread:$0]  (%p9529_p5), %s5936_s26, 1024, %s5938_s6, %s5923_s22, %s9459_s10, %s9459_s10, %s9460_s12  }
 0xb70 PF: > { %p9154_p9 = scmp.ge.s32.totalorder %s9448_s21, 2  ;;  %s5952_s16 = sand.u32 1, %s9436_s18  }
 0xb71   : > { %s5953_s17 = scalar_lea.sflag [#allocation5], %s5952_s16 }
 0xb72   : > { %p9147_p10 = pnand %p9154_p9, %p9533_p6 }
 0xb74   : > { %p9148_p11 = pneg %p9147_p10 }
 0xb76   : > { %9431 = dma.done.wait (%p9148_p11), %s5953_s17, 1024  }
 0xb77   : > { %9433 = vsyncadd (%p9148_p11), %s5953_s17, 4294966272  ;;  %p17_p12 = scmp.ge.s32.totalorder %s9516_s24, 4   ;;  %s12433_s18 = smov %s9440_s19 }
 0xb78   : > { %s12434_s19 = smov %s9444_s20  ;;  %s12435_s20 = smov %s9527_s27 }
 0xb79   : > { %s12436_s21 = smov %s9516_s24  ;;  %19 = sbr.rel (!%p17_p12) target bundleno = 5 (0x5), region = 91 }
 0xb7e   :  { %5959 = vsyncpa [#allocation4], 1 }
 0xb7f   :  { %5961 = vsyncpa [#allocation4 + $0x1], 1 }
 0xb80   :  { %5962 = vsyncpa [#allocation7], 1 }
 0xb81   :  { %5963 = vsyncpa [#allocation5], 1 }
 0xb82   :  { %5965 = vsyncpa [#allocation5 + $0x1], 1 }

</bundles_post_ra>
